<compile_context>
chip_gen: v5e
topology: v5e:2x2
jax: 0.10.0
libtpu: 0.0.40
codegen_flags: <defaults>
</compile_context>

<pallas_src>
import functools

import jax
import jax.numpy as jnp
from jax.experimental import pallas as pl
from jax.experimental.pallas import tpu as pltpu


# --------------------------------------------------------------------------
# Kernels
# --------------------------------------------------------------------------
def pool_kernel(x_ref, sum_ref, max_ref):
    """One pass over x: per-batch sum and max over L (grid axis 1 is the
    reduction axis; both outputs stay resident in VMEM across it)."""
    l = pl.program_id(1)
    x = x_ref[0]                                   # [tL, C] f32
    tile_sum = jnp.sum(x, axis=0, keepdims=True)   # [1, C]
    tile_max = jnp.max(x, axis=0, keepdims=True)   # [1, C]

    @pl.when(l == 0)
    def _():
        sum_ref[0] = tile_sum
        max_ref[0] = tile_max

    @pl.when(l > 0)
    def _():
        sum_ref[0] = sum_ref[0] + tile_sum
        max_ref[0] = jnp.maximum(max_ref[0], tile_max)


def _aff_tile(x, w1, b1, w2, b2g):
    """Local-attention branch on one [tL, C] tile + sigmoid gate + fuse.
    The per-batch global gate (avg + max branches) is pre-folded into b2g."""
    x_bf = x.astype(jnp.bfloat16)                  # MXU operand
    # conv1x1(C->inter) + BN + ReLU   (BN folded into w1/b1)
    h = jnp.dot(x_bf, w1, preferred_element_type=jnp.float32)
    h = jnp.maximum(h + b1, 0.0)                   # [tL, inter] f32
    # conv1x1(inter->C) + BN + gate   (BN folded into w2; gate folded into b2g)
    xl = jnp.dot(h.astype(jnp.bfloat16), w2,
                 preferred_element_type=jnp.float32) + b2g
    wei = jax.nn.sigmoid(xl)                       # f32 tail (v5e-safe)
    # Exactly the module's expression.  NOTE: with residual == x (as in the
    # original module) this is algebraically 2*x; kept literal for fidelity.
    xo = 2.0 * x * wei + 2.0 * x * (1.0 - wei)
    return xo, wei


def aff_kernel(x_ref, w1_ref, b1_ref, w2_ref, b2g_ref, o_ref):
    xo, _ = _aff_tile(x_ref[0], w1_ref[...], b1_ref[...], w2_ref[...],
                      b2g_ref[0])
    o_ref[0] = xo.astype(o_ref.dtype)


def aff_kernel_with_wei(x_ref, w1_ref, b1_ref, w2_ref, b2g_ref, o_ref, wei_ref):
    """Validation variant: also emits the sigmoid gate so the attention path
    (matmuls / BN-fold / sigmoid) can be checked directly."""
    xo, wei = _aff_tile(x_ref[0], w1_ref[...], b1_ref[...], w2_ref[...],
                        b2g_ref[0])
    o_ref[0] = xo.astype(o_ref.dtype)
    wei_ref[0] = wei.astype(wei_ref.dtype)


# --------------------------------------------------------------------------
# Parameters (deterministic init + inference-mode BN folding)
# --------------------------------------------------------------------------
def _fold_bn(conv_w, conv_b, gamma, beta, mean, var, eps=1e-5):
    """Fold inference-mode BN into a 1x1 conv.  conv_w: [out, in].
    Returns (w_t [in, out], bias [1, out]) so y = x @ w_t + bias."""
    scale = gamma / jnp.sqrt(var + eps)
    w = conv_w * scale[:, None]
    b = scale * (conv_b - mean) + beta
    return w.T, b[None, :]


def make_aff_params(key, channels, r=4):
    """Three branches (local / global-avg / global-max), each =
    conv1x1 + BN + ReLU + conv1x1 + BN, with BN folded."""
    inter = channels // r

    def conv(k, cout, cin):
        kw, kb = jax.random.split(k)
        w = jax.random.normal(kw, (cout, cin), jnp.float32) / jnp.sqrt(cin)
        b = 0.05 * jax.random.normal(kb, (cout,), jnp.float32)
        return w, b

    def bn(k, c):
        k1, k2, k3, k4 = jax.random.split(k, 4)
        gamma = 1.0 + 0.1 * jax.random.normal(k1, (c,), jnp.float32)
        beta = 0.1 * jax.random.normal(k2, (c,), jnp.float32)
        mean = 0.1 * jax.random.normal(k3, (c,), jnp.float32)
        var = jax.random.uniform(k4, (c,), jnp.float32, minval=0.5, maxval=1.5)
        return gamma, beta, mean, var

    keys = jax.random.split(key, 12)
    params = {}
    for i, name in enumerate(("l", "a", "m")):     # local, global-avg, global-max
        w1, b1 = conv(keys[4 * i + 0], inter, channels)
        bn1 = bn(keys[4 * i + 1], inter)
        w2, b2 = conv(keys[4 * i + 2], channels, inter)
        bn2 = bn(keys[4 * i + 3], channels)
        params[name + "1"] = _fold_bn(w1, b1, *bn1)   # ([C, inter], [1, inter])
        params[name + "2"] = _fold_bn(w2, b2, *bn2)   # ([inter, C], [1, C])
    return params


def _mlp(p, p1, p2):
    h = jnp.maximum(p @ p1[0] + p1[1], 0.0)
    return h @ p2[0] + p2[1]


# --------------------------------------------------------------------------
# Tiling choice: pipeline depth > tile size (memory-bound op)
# --------------------------------------------------------------------------
def pick_tile_l(B, L, *, target_steps=8, max_tile=512):
    """Multiple-of-8 divisor of L giving >= target_steps total grid steps
    (>= 4 pipelined steps per TensorCore on v7x megacore), preferring an even
    total step count; among those, the largest tile (fewest per-step overheads).
    """
    divisors = [t for t in range(8, min(L, max_tile) + 1, 8) if L % t == 0]
    if not divisors:
        return L                       # full-L block (full-dim blocks are legal)
    deep = [t for t in divisors if B * (L // t) >= target_steps]
    even = [t for t in deep if (B * (L // t)) % 2 == 0]
    if even:
        return max(even)
    if deep:
        return max(deep)
    return min(divisors)               # tiny problem: maximize step count


# --------------------------------------------------------------------------
# Wrapper
# --------------------------------------------------------------------------
@functools.partial(jax.jit, static_argnames=("tile_l", "return_wei"))
def aff_pallas(x, params, *, tile_l, return_wei=False):
    """x: [B, L, C] float32 -> [B, L, C] float32 (same as PyTorch AFF)."""
    B, L, C = x.shape
    w1l, b1l = params["l1"]
    w2l, b2l = params["l2"]
    inter = w1l.shape[1]
    assert L % tile_l == 0

    xp = x.astype(jnp.float32)
    grid = (B, L // tile_l)

    # ---- one-pass pooled stats (AdaptiveAvgPool2d(1) / AdaptiveMaxPool2d(1)) --
    x_sum, x_max = pl.pallas_call(
        pool_kernel,
        out_shape=(jax.ShapeDtypeStruct((B, 1, C), jnp.float32),
                   jax.ShapeDtypeStruct((B, 1, C), jnp.float32)),
        grid_spec=pltpu.PrefetchScalarGridSpec(
            num_scalar_prefetch=0,
            grid=grid,
            in_specs=[pl.BlockSpec((1, tile_l, C), lambda b, l: (b, l, 0))],
            out_specs=(pl.BlockSpec((1, 1, C), lambda b, l: (b, 0, 0)),
                       pl.BlockSpec((1, 1, C), lambda b, l: (b, 0, 0))),
        ),
        compiler_params=pltpu.CompilerParams(
            dimension_semantics=("parallel", "arbitrary")),
    )(xp)

    # ---- tiny global-branch MLPs on pooled [B, C] rows (plain JAX glue) ------
    xg = _mlp(x_sum[:, 0, :] / L, params["a1"], params["a2"])    # avg branch
    xg2 = _mlp(x_max[:, 0, :], params["m1"], params["m2"])       # max branch
    # fold the per-batch global gate into the second conv bias: [B, 1, C]
    b2g = (b2l + xg + xg2)[:, None, :]

    # ---- main fused kernel ---------------------------------------------------
    in_specs = [
        pl.BlockSpec((1, tile_l, C), lambda b, l: (b, l, 0)),    # x tile
        pl.BlockSpec((C, inter), lambda b, l: (0, 0)),           # W1 (folded, bf16)
        pl.BlockSpec((1, inter), lambda b, l: (0, 0)),           # b1 (f32)
        pl.BlockSpec((inter, C), lambda b, l: (0, 0)),           # W2 (folded, bf16)
        pl.BlockSpec((1, 1, C), lambda b, l: (b, 0, 0)),         # b2 + gate (f32)
    ]
    out_spec = pl.BlockSpec((1, tile_l, C), lambda b, l: (b, l, 0))

    if return_wei:
        kernel = aff_kernel_with_wei
        out_shape = (jax.ShapeDtypeStruct((B, L, C), x.dtype),
                     jax.ShapeDtypeStruct((B, L, C), jnp.float32))
        out_specs = (out_spec, out_spec)
    else:
        kernel = aff_kernel
        out_shape = jax.ShapeDtypeStruct((B, L, C), x.dtype)
        out_specs = out_spec

    return pl.pallas_call(
        kernel,
        out_shape=out_shape,
        grid_spec=pltpu.PrefetchScalarGridSpec(
            num_scalar_prefetch=0,
            grid=grid,
            in_specs=in_specs,
            out_specs=out_specs,
        ),
        compiler_params=pltpu.CompilerParams(
            dimension_semantics=("parallel", "parallel")),
    )(xp,
      w1l.astype(jnp.bfloat16), b1l,
      w2l.astype(jnp.bfloat16), b2g)


# --------------------------------------------------------------------------
# Pure-JAX reference
# --------------------------------------------------------------------------
def aff_reference(x, params):
    """Reference of the full forward.  The local branch uses bf16-rounded
    weights (like the kernel) so `wei` can be compared tightly."""
    xp = x.astype(jnp.float32)

    def mlp_bf16(p, p1, p2):
        h = jnp.dot(p.astype(jnp.bfloat16), p1[0].astype(jnp.bfloat16),
                    preferred_element_type=jnp.float32) + p1[1]
        h = jnp.maximum(h, 0.0)
        return jnp.dot(h.astype(jnp.bfloat16), p2[0].astype(jnp.bfloat16),
                       preferred_element_type=jnp.float32) + p2[1]

    xl = mlp_bf16(xp, params["l1"], params["l2"])
    xg = _mlp(jnp.mean(xp, axis=1, keepdims=True), params["a1"], params["a2"])
    xg2 = _mlp(jnp.max(xp, axis=1, keepdims=True), params["m1"], params["m2"])
    wei = jax.nn.sigmoid(xl + xg + xg2)
    xo = 2.0 * xp * wei + 2.0 * xp * (1.0 - wei)
    return xo, wei


if __name__ == "__main__":
    key = jax.random.PRNGKey(0)
    kx, kp = jax.random.split(key)

    # Shapes from the PyTorch module: x = torch.ones([2, 320, 768]), r = 4.
    B, L, C, r = 2, 320, 768, 4
    x = jax.random.normal(kx, (B, L, C), dtype=jnp.float32)
    params = make_aff_params(kp, C, r)

    tile_l = pick_tile_l(B, L)          # -> 80: grid (2, 4), 8 pipelined steps

    # Validation path: also emit the sigmoid gate, because the fused output of
    # this module reduces to ~2*x and alone would not exercise the attention
    # branch numerics.
    out, wei = aff_pallas(x, params, tile_l=tile_l, return_wei=True)
    out = jax.block_until_ready(out)

    ref_out, ref_wei = aff_reference(x, params)
    assert out.shape == (B, L, C)
    err_out = float(jnp.max(jnp.abs(out - ref_out)))
    err_wei = float(jnp.max(jnp.abs(wei - ref_wei)))
    assert err_out < 1e-3, f"output mismatch vs reference: {err_out}"
    assert err_wei < 5e-3, f"gate mismatch vs reference: {err_wei}"

    # Production path (single lane-dense output, no extra writeback).
    out2 = jax.block_until_ready(aff_pallas(x, params, tile_l=tile_l))
    err_out2 = float(jnp.max(jnp.abs(out2 - ref_out)))
    assert err_out2 < 1e-3, f"output mismatch vs reference: {err_out2}"

    print("KERNEL_OK")
</pallas_src>

<mosaic_0001>
module attributes {stable_mosaic.version = 11 : i64} {
  func.func @pool_kernel(%arg0: i32, %arg1: i32, %arg2: memref<1x80x768xf32, #tpu.memory_space<vmem>>, %arg3: memref<1x1x768xf32, #tpu.memory_space<vmem>>, %arg4: memref<1x1x768xf32, #tpu.memory_space<vmem>>) attributes {dimension_semantics = [#tpu.dimension_semantics<parallel>, #tpu.dimension_semantics<arbitrary>], iteration_bounds = array<i64: 2, 4>, scalar_prefetch = 0 : i64, scratch_operands = 0 : i64, tpu.core_type = #tpu.core_type<tc>, window_params = [{transform_indices = @transform_0, window_bounds = array<i64: 1, 80, 768>}, {transform_indices = @transform_1, window_bounds = array<i64: 1, 1, 768>}, {transform_indices = @transform_2, window_bounds = array<i64: 1, 1, 768>}]} {
    %c0 = arith.constant 0 : index
    %c0_0 = arith.constant 0 : index
    %c0_1 = arith.constant 0 : index
    %0 = vector.load %arg2[%c0, %c0_0, %c0_1] : memref<1x80x768xf32, #tpu.memory_space<vmem>>, vector<1x80x768xf32>
    %1 = vector.shape_cast %0 : vector<1x80x768xf32> to vector<80x768xf32>
    %cst = arith.constant dense<0.000000e+00> : vector<768xf32>
    %2 = vector.multi_reduction <add>, %1, %cst [0] : vector<80x768xf32> to vector<768xf32>
    %3 = vector.shape_cast %2 : vector<768xf32> to vector<1x768xf32>
    %cst_2 = arith.constant dense<0xFF800000> : vector<768xf32>
    %4 = vector.multi_reduction <maximumf>, %1, %cst_2 [0] : vector<80x768xf32> to vector<768xf32>
    %5 = vector.shape_cast %4 : vector<768xf32> to vector<1x768xf32>
    %c0_i32 = arith.constant 0 : i32
    %6 = arith.cmpi eq, %arg1, %c0_i32 : i32
    %7 = arith.extui %6 : i1 to i32
    %c0_i32_3 = arith.constant 0 : i32
    %8 = arith.cmpi ne, %7, %c0_i32_3 : i32
    scf.if %8 {
      %c0_6 = arith.constant 0 : index
      %c0_7 = arith.constant 0 : index
      %c0_8 = arith.constant 0 : index
      %12 = vector.load %arg3[%c0_6, %c0_7, %c0_8] : memref<1x1x768xf32, #tpu.memory_space<vmem>>, vector<1x1x768xf32>
      %13 = vector.shape_cast %12 : vector<1x1x768xf32> to vector<1x768xf32>
      %14 = vector.shape_cast %3 : vector<1x768xf32> to vector<1x1x768xf32>
      tpu.vector_store %arg3[%c0_6, %c0_7, %c0_8], %14 {strides = array<i32>} : memref<1x1x768xf32, #tpu.memory_space<vmem>>, vector<1x1x768xf32>,
      %c0_9 = arith.constant 0 : index
      %c0_10 = arith.constant 0 : index
      %c0_11 = arith.constant 0 : index
      %15 = vector.load %arg4[%c0_9, %c0_10, %c0_11] : memref<1x1x768xf32, #tpu.memory_space<vmem>>, vector<1x1x768xf32>
      %16 = vector.shape_cast %15 : vector<1x1x768xf32> to vector<1x768xf32>
      %17 = vector.shape_cast %5 : vector<1x768xf32> to vector<1x1x768xf32>
      tpu.vector_store %arg4[%c0_9, %c0_10, %c0_11], %17 {strides = array<i32>} : memref<1x1x768xf32, #tpu.memory_space<vmem>>, vector<1x1x768xf32>,
    } else {
    }
    %c0_i32_4 = arith.constant 0 : i32
    %9 = arith.cmpi sgt, %arg1, %c0_i32_4 : i32
    %10 = arith.extui %9 : i1 to i32
    %c0_i32_5 = arith.constant 0 : i32
    %11 = arith.cmpi ne, %10, %c0_i32_5 : i32
    scf.if %11 {
      %c0_6 = arith.constant 0 : index
      %c0_7 = arith.constant 0 : index
      %c0_8 = arith.constant 0 : index
      %12 = vector.load %arg3[%c0_6, %c0_7, %c0_8] : memref<1x1x768xf32, #tpu.memory_space<vmem>>, vector<1x1x768xf32>
      %13 = vector.shape_cast %12 : vector<1x1x768xf32> to vector<1x768xf32>
      %14 = arith.addf %13, %3 : vector<1x768xf32>
      %c0_9 = arith.constant 0 : index
      %c0_10 = arith.constant 0 : index
      %c0_11 = arith.constant 0 : index
      %15 = vector.load %arg3[%c0_9, %c0_10, %c0_11] : memref<1x1x768xf32, #tpu.memory_space<vmem>>, vector<1x1x768xf32>
      %16 = vector.shape_cast %15 : vector<1x1x768xf32> to vector<1x768xf32>
      %17 = vector.shape_cast %14 : vector<1x768xf32> to vector<1x1x768xf32>
      tpu.vector_store %arg3[%c0_9, %c0_10, %c0_11], %17 {strides = array<i32>} : memref<1x1x768xf32, #tpu.memory_space<vmem>>, vector<1x1x768xf32>,
      %c0_12 = arith.constant 0 : index
      %c0_13 = arith.constant 0 : index
      %c0_14 = arith.constant 0 : index
      %18 = vector.load %arg4[%c0_12, %c0_13, %c0_14] : memref<1x1x768xf32, #tpu.memory_space<vmem>>, vector<1x1x768xf32>
      %19 = vector.shape_cast %18 : vector<1x1x768xf32> to vector<1x768xf32>
      %20 = arith.maximumf %19, %5 : vector<1x768xf32>
      %c0_15 = arith.constant 0 : index
      %c0_16 = arith.constant 0 : index
      %c0_17 = arith.constant 0 : index
      %21 = vector.load %arg4[%c0_15, %c0_16, %c0_17] : memref<1x1x768xf32, #tpu.memory_space<vmem>>, vector<1x1x768xf32>
      %22 = vector.shape_cast %21 : vector<1x1x768xf32> to vector<1x768xf32>
      %23 = vector.shape_cast %20 : vector<1x768xf32> to vector<1x1x768xf32>
      tpu.vector_store %arg4[%c0_15, %c0_16, %c0_17], %23 {strides = array<i32>} : memref<1x1x768xf32, #tpu.memory_space<vmem>>, vector<1x1x768xf32>,
    } else {
    }
    return
  }
  func.func @transform_0(%arg0: i32, %arg1: i32) -> (i32, i32, i32) {
    %c0_i32 = arith.constant 0 : i32
    %c0_i32_0 = arith.constant 0 : i32
    return %arg0, %arg1, %c0_i32 : i32, i32, i32
  }
  func.func @transform_1(%arg0: i32, %arg1: i32) -> (i32, i32, i32) {
    %c0_i32 = arith.constant 0 : i32
    %c0_i32_0 = arith.constant 0 : i32
    %c0_i32_1 = arith.constant 0 : i32
    return %arg0, %c0_i32, %c0_i32_0 : i32, i32, i32
  }
  func.func @transform_2(%arg0: i32, %arg1: i32) -> (i32, i32, i32) {
    %c0_i32 = arith.constant 0 : i32
    %c0_i32_0 = arith.constant 0 : i32
    %c0_i32_1 = arith.constant 0 : i32
    return %arg0, %c0_i32, %c0_i32_0 : i32, i32, i32
  }
}

module attributes {stable_mosaic.version = 11 : i64} {
  func.func @aff_kernel_with_wei(%arg0: i32, %arg1: i32, %arg2: memref<1x80x768xf32, #tpu.memory_space<vmem>>, %arg3: memref<768x192xbf16, #tpu.memory_space<vmem>>, %arg4: memref<1x192xf32, #tpu.memory_space<vmem>>, %arg5: memref<192x768xbf16, #tpu.memory_space<vmem>>, %arg6: memref<1x1x768xf32, #tpu.memory_space<vmem>>, %arg7: memref<1x80x768xf32, #tpu.memory_space<vmem>>, %arg8: memref<1x80x768xf32, #tpu.memory_space<vmem>>) attributes {dimension_semantics = [#tpu.dimension_semantics<parallel>, #tpu.dimension_semantics<parallel>], iteration_bounds = array<i64: 2, 4>, scalar_prefetch = 0 : i64, scratch_operands = 0 : i64, tpu.core_type = #tpu.core_type<tc>, window_params = [{transform_indices = @transform_0, window_bounds = array<i64: 1, 80, 768>}, {pipeline_mode = #tpu.pipeline_mode<synchronous>, transform_indices = @transform_1, window_bounds = array<i64: 768, 192>}, {pipeline_mode = #tpu.pipeline_mode<synchronous>, transform_indices = @transform_2, window_bounds = array<i64: 1, 192>}, {pipeline_mode = #tpu.pipeline_mode<synchronous>, transform_indices = @transform_3, window_bounds = array<i64: 192, 768>}, {transform_indices = @transform_4, window_bounds = array<i64: 1, 1, 768>}, {transform_indices = @transform_5, window_bounds = array<i64: 1, 80, 768>}, {transform_indices = @transform_6, window_bounds = array<i64: 1, 80, 768>}]} {
    %c0 = arith.constant 0 : index
    %c0_0 = arith.constant 0 : index
    %c0_1 = arith.constant 0 : index
    %0 = vector.load %arg2[%c0, %c0_0, %c0_1] : memref<1x80x768xf32, #tpu.memory_space<vmem>>, vector<1x80x768xf32>
    %1 = vector.shape_cast %0 : vector<1x80x768xf32> to vector<80x768xf32>
    %c0_2 = arith.constant 0 : index
    %c0_3 = arith.constant 0 : index
    %2 = vector.load %arg3[%c0_2, %c0_3] : memref<768x192xbf16, #tpu.memory_space<vmem>>, vector<768x192xbf16>
    %c0_4 = arith.constant 0 : index
    %c0_5 = arith.constant 0 : index
    %3 = vector.load %arg4[%c0_4, %c0_5] : memref<1x192xf32, #tpu.memory_space<vmem>>, vector<1x192xf32>
    %c0_6 = arith.constant 0 : index
    %c0_7 = arith.constant 0 : index
    %4 = vector.load %arg5[%c0_6, %c0_7] : memref<192x768xbf16, #tpu.memory_space<vmem>>, vector<192x768xbf16>
    %c0_8 = arith.constant 0 : index
    %c0_9 = arith.constant 0 : index
    %c0_10 = arith.constant 0 : index
    %5 = vector.load %arg6[%c0_8, %c0_9, %c0_10] : memref<1x1x768xf32, #tpu.memory_space<vmem>>, vector<1x1x768xf32>
    %6 = vector.shape_cast %5 : vector<1x1x768xf32> to vector<1x768xf32>
    %7 = arith.truncf %1 : vector<80x768xf32> to vector<80x768xbf16>
    %cst = arith.constant dense<0.000000e+00> : vector<80x192xf32>
    %8 = tpu.matmul %7, %2, %cst {dimension_numbers = #tpu.dot_dimension_numbers<[1], [0], [0], [1], [0, 0, 1, 1], [], []>} : vector<80x768xbf16>, vector<768x192xbf16>, vector<80x192xf32> -> vector<80x192xf32>
    %9 = vector.broadcast %3 : vector<1x192xf32> to vector<80x192xf32>
    %10 = arith.addf %8, %9 : vector<80x192xf32>
    %cst_11 = arith.constant 0.000000e+00 : f32
    %11 = vector.broadcast %cst_11 : f32 to vector<80x192xf32>
    %12 = arith.maximumf %10, %11 : vector<80x192xf32>
    %13 = arith.truncf %12 : vector<80x192xf32> to vector<80x192xbf16>
    %cst_12 = arith.constant dense<0.000000e+00> : vector<80x768xf32>
    %14 = tpu.matmul %13, %4, %cst_12 {dimension_numbers = #tpu.dot_dimension_numbers<[1], [0], [0], [1], [0, 0, 1, 1], [], []>} : vector<80x192xbf16>, vector<192x768xbf16>, vector<80x768xf32> -> vector<80x768xf32>
    %15 = vector.broadcast %6 : vector<1x768xf32> to vector<80x768xf32>
    %16 = arith.addf %14, %15 : vector<80x768xf32>
    %17 = arith.negf %16 : vector<80x768xf32>
    %18 = math.exp %17 : vector<80x768xf32>
    %cst_13 = arith.constant 1.000000e+00 : f32
    %19 = vector.broadcast %cst_13 : f32 to vector<80x768xf32>
    %20 = arith.addf %19, %18 : vector<80x768xf32>
    %21 = arith.divf %19, %20 : vector<80x768xf32>
    %cst_14 = arith.constant 2.000000e+00 : f32
    %22 = vector.broadcast %cst_14 : f32 to vector<80x768xf32>
    %23 = arith.mulf %22, %1 : vector<80x768xf32>
    %24 = arith.mulf %23, %21 : vector<80x768xf32>
    %cst_15 = arith.constant 2.000000e+00 : f32
    %25 = vector.broadcast %cst_15 : f32 to vector<80x768xf32>
    %26 = arith.mulf %25, %1 : vector<80x768xf32>
    %cst_16 = arith.constant 1.000000e+00 : f32
    %27 = vector.broadcast %cst_16 : f32 to vector<80x768xf32>
    %28 = arith.subf %27, %21 : vector<80x768xf32>
    %29 = arith.mulf %26, %28 : vector<80x768xf32>
    %30 = arith.addf %24, %29 : vector<80x768xf32>
    %c0_17 = arith.constant 0 : index
    %c0_18 = arith.constant 0 : index
    %c0_19 = arith.constant 0 : index
    %31 = vector.load %arg7[%c0_17, %c0_18, %c0_19] : memref<1x80x768xf32, #tpu.memory_space<vmem>>, vector<1x80x768xf32>
    %32 = vector.shape_cast %31 : vector<1x80x768xf32> to vector<80x768xf32>
    %33 = vector.shape_cast %30 : vector<80x768xf32> to vector<1x80x768xf32>
    tpu.vector_store %arg7[%c0_17, %c0_18, %c0_19], %33 {strides = array<i32>} : memref<1x80x768xf32, #tpu.memory_space<vmem>>, vector<1x80x768xf32>,
    %c0_20 = arith.constant 0 : index
    %c0_21 = arith.constant 0 : index
    %c0_22 = arith.constant 0 : index
    %34 = vector.load %arg8[%c0_20, %c0_21, %c0_22] : memref<1x80x768xf32, #tpu.memory_space<vmem>>, vector<1x80x768xf32>
    %35 = vector.shape_cast %34 : vector<1x80x768xf32> to vector<80x768xf32>
    %36 = vector.shape_cast %21 : vector<80x768xf32> to vector<1x80x768xf32>
    tpu.vector_store %arg8[%c0_20, %c0_21, %c0_22], %36 {strides = array<i32>} : memref<1x80x768xf32, #tpu.memory_space<vmem>>, vector<1x80x768xf32>,
    return
  }
  func.func @transform_0(%arg0: i32, %arg1: i32) -> (i32, i32, i32) {
    %c0_i32 = arith.constant 0 : i32
    %c0_i32_0 = arith.constant 0 : i32
    return %arg0, %arg1, %c0_i32 : i32, i32, i32
  }
  func.func @transform_1(%arg0: i32, %arg1: i32) -> (i32, i32) {
    %c0_i32 = arith.constant 0 : i32
    %c0_i32_0 = arith.constant 0 : i32
    %c0_i32_1 = arith.constant 0 : i32
    return %c0_i32, %c0_i32_0 : i32, i32
  }
  func.func @transform_2(%arg0: i32, %arg1: i32) -> (i32, i32) {
    %c0_i32 = arith.constant 0 : i32
    %c0_i32_0 = arith.constant 0 : i32
    %c0_i32_1 = arith.constant 0 : i32
    return %c0_i32, %c0_i32_0 : i32, i32
  }
  func.func @transform_3(%arg0: i32, %arg1: i32) -> (i32, i32) {
    %c0_i32 = arith.constant 0 : i32
    %c0_i32_0 = arith.constant 0 : i32
    %c0_i32_1 = arith.constant 0 : i32
    return %c0_i32, %c0_i32_0 : i32, i32
  }
  func.func @transform_4(%arg0: i32, %arg1: i32) -> (i32, i32, i32) {
    %c0_i32 = arith.constant 0 : i32
    %c0_i32_0 = arith.constant 0 : i32
    %c0_i32_1 = arith.constant 0 : i32
    return %arg0, %c0_i32, %c0_i32_0 : i32, i32, i32
  }
  func.func @transform_5(%arg0: i32, %arg1: i32) -> (i32, i32, i32) {
    %c0_i32 = arith.constant 0 : i32
    %c0_i32_0 = arith.constant 0 : i32
    return %arg0, %arg1, %c0_i32 : i32, i32, i32
  }
  func.func @transform_6(%arg0: i32, %arg1: i32) -> (i32, i32, i32) {
    %c0_i32 = arith.constant 0 : i32
    %c0_i32_0 = arith.constant 0 : i32
    return %arg0, %arg1, %c0_i32 : i32, i32, i32
  }
}

</mosaic_0001>

<bundles_post_ra>
// kernel: aff_pallas.2
= control target key start
LH: loop header
LB: loop body
LE: loop exit
PB: predicated region body
PF: predicated region fallthrough
CT: control target
= control target key end

     0   :  { %8 = vsyncpa [#allocation3], 0  ;;  %s1291_s0 = inlined_call_operand.hbm [shape: f32[2,320,768], index: 0, kind: input, shape index: {}]   ;;  %s1292_s1 = inlined_call_operand.vmem [shape: f32[2,1,768], index: 1, kind: output, shape index: {0}]   ;;  %s1293_s2 = inlined_call_operand.vmem [shape: f32[2,1,768], index: 2, kind: output, shape index: {1}]  }
   0x1   :  { %10 = vsyncpa [#allocation3 + $0x1], 0  ;;  %s849_s9 = smov 0   ;;  %s851_s10 = smov 0  }
   0x2   :  { %s853_s11 = smov 0   ;;  %s855_s12 = smov 0  }
   0x3   :  { %s857_s13 = smov 0   ;;  %s859_s14 = smov 0  }
   0x4   :  { %s861_s15 = smov 0   ;;  %s863_s16 = smov 0  }
   0x5 LB: > { %s645_s17 = sadd.s32 4294967295, %s830_s16   ;;  %s25_s18 = sadd.s32 1, %s822_s14  ;;  %s830_s16 = sphi %s863_s16, %s16_s16   ;;  %s826_s15 = sphi %s861_s15, %s1305_s15   ;;  %s822_s14 = sphi %s859_s14, %s1304_s14   ;;  %s818_s13 = sphi %s857_s13, %s1303_s13   ;;  %s814_s12 = sphi %s855_s12, %s1302_s12   ;;  %s810_s11 = sphi %s853_s11, %s1301_s11   ;;  %s806_s10 = sphi %s851_s10, %s1300_s10   ;;  %s802_s9 = sphi %s849_s9, %s1299_s9  }
   0x6   : > { %p26_p0 = scmp.ge.s32.totalorder %s25_s18, 4  ;;  %s28_s19 = sadd.s32 1, %s826_s15 }
   0x7   : > { %s37_s20 = sadd.s32 1, %s810_s11  ;;  %p44_p1 = scmp.ne.s32.totalorder %s810_s11, %s806_s10 }
   0x8   : > { %s1307_s18 = smov (%p26_p0, %s25_s18), 0  ;;  %s1309_s19 = smov (!%p26_p0, %s28_s19), %s826_s15 }
   0x9   : > { %s33_s21 = ssub.s32 %s822_s14, %s1307_s18  ;;  %p45_p2 = scmp.eq.s32.totalorder %s830_s16, 0 }
   0xa   : > { %p30_p3 = scmp.ge.s32.totalorder %s1309_s19, 2  ;;  %p50_p4 = scmp.ne.s32.totalorder %s806_s10, %s802_s9 }
   0xb   : > { %p46_p5 = por %p45_p2, %p44_p1  ;;  %p51_p6 = scmp.eq.s32.totalorder %s645_s17, 0 }
   0xc   : > { %s1311_s19 = smov (%p30_p3, %s1309_s19), 0  ;;  %p666_p8 = scmp.lt.s32.totalorder %s830_s16, 8 }
   0xd   : > { %p902_p7 = por %p51_p6, %p50_p4  ;;  %s32_s23 = ssub.s32 %s826_s15, %s1311_s19 }
   0xe   : > { %s34_s24 = sor.u32 %s33_s21, %s32_s23  ;;  %s126_s25 = sand.u32 1, %s810_s11  }
   0xf   : > { %p35_p9 = scmp.eq.s32.totalorder %s34_s24, 0  ;;  %s655_s26 = smul.u32 480, %s126_s25 }
  0x10   : > { %p910_p10 = pnand %p666_p8, %p46_p5  ;;  %s667_s29 = smul.u32 60, %s822_s14 }
  0x11   : > { %s915_s28 = scalar_select %p35_p9, %s810_s11, %s37_s20  }
  0x12   : > { %s130_s30 = scalar_lea.vmem [#allocation2], %s655_s26  ;;  %s657_s4 = smul.u32 240, %s826_s15 }
  0x13   : > { %s141_s3 = sshll.u32 %s130_s30, 4  ;;  %p650_p11 = scmp.ge.s32.totalorder %s830_s16, 1  ;;  %s142_s3 = int_to_ptr.vmem [resolvable:$true] %s141_s3 }
  0x14   : > { %s136_s5 = sadd.s32 %s667_s29, %s657_s4  ;;  %p149_p12 = scmp.lt.s32.totalorder %s830_s16, 9 }
  0x15   : > { %s649_s6 = sshll.u32 %s136_s5, 3  ;;  %s127_s21 = scalar_lea.sflag [#allocation3], %s126_s25 }
  0x16   : > { %s138_s9 = scalar_lea.hbm %s1291_s0, %s649_s6  ;;  %p150_p13 = pnand %p650_p11, %p149_p12 }
  0x17   : > { %s139_s17 = sshll.u32 %s138_s9, 4  ;;  %s832_s20 = smov 768   ;;  %s140_s17 = int_to_ptr.hbm [resolvable:$true] %s139_s17 }
  0x18   : > { %s833_s23 = smov 48   ;;  %153 = sbr.rel (%p150_p13) target bundleno = 113 (0x71), region = 24 }
  0x19   : > { %665 = dma.hbm_to_vmem [thread:$0]  (!%p910_p10), %s140_s17, 7680, %s142_s3, %s127_s21, %s832_s20, %s832_s20, %s833_s23  }
  0x1a   : > { %s155_s24 = sand.u32 (!%p150_p13), 1, %s806_s10  }
  0x1b   : > { %s658_s26 = smul.u32 (!%p150_p13), 480, %s155_s24  ;;  %s156_s29 = scalar_lea.sflag (!%p150_p13), [#allocation3], %s155_s24 }
  0x1d   : > { %s927_s30 = scalar_lea.vmem [#allocation2], %s658_s26 }
  0x1e   : > { %797 = dma.done.wait (%p902_p7), %s156_s29, 7680  }
  0x1f   : > { %799 = vsyncadd (%p902_p7), %s156_s29, 4294959616  ;;  %p185_p0 = scmp.lt.s32.totalorder %s818_s13, 1  ;;  %v946_v0 = vld [vmem:[%s927_s30] sm:$0xff]  ;;  %v949_v1 = vld [vmem:[%s927_s30 + $0x8] sm:$0xff]  ;;  %p651_p1 = scmp.ne.s32.totalorder %s814_s12, 0 }
  0x20   : > { %v952_v2 = vld [vmem:[%s927_s30 + $0x10] sm:$0xff]  ;;  %v955_v3 = vld [vmem:[%s927_s30 + $0x18] sm:$0xff]  ;;  %v958_v4 = vld [vmem:[%s927_s30 + $0x20] sm:$0xff] }
  0x21   : > { %s1313_s13 = smov (!%p185_p0, %s818_s13), 1  ;;  %v961_v5 = vld [vmem:[%s927_s30 + $0x28] sm:$0xff]  ;;  %v964_v6 = vld [vmem:[%s927_s30 + $0x30] sm:$0xff]  ;;  %v967_v7 = vld [vmem:[%s927_s30 + $0x38] sm:$0xff] }
  0x22   : > { %s659_s25 = smul.u32 6, %s1313_s13  ;;  %v970_v8 = vld [vmem:[%s927_s30 + $0x40] sm:$0xff]  ;;  %v973_v9 = vld [vmem:[%s927_s30 + $0x48] sm:$0xff]  ;;  %v976_v10 = vld [vmem:[%s927_s30 + $0x50] sm:$0xff]  ;;  %v253_v12 = vadd.f32 %v964_v6, %v946_v0  ;;  %v268_v13 = vadd.f32 %v967_v7, %v949_v1  ;;  %v343_v15 = vmax.f32 %v946_v0, %v964_v6  ;;  %v358_v22 = vmax.f32 %v949_v1, %v967_v7 }
  0x23   : > { %v979_v11 = vld [vmem:[%s927_s30 + $0x58] sm:$0xff]  ;;  %v283_v14 = vadd.f32 %v970_v8, %v952_v2  ;;  %v205_v16 = vld [vmem:[%s927_s30 + $0x60] sm:$0xff]  ;;  %v206_v17 = vld [vmem:[%s927_s30 + $0x68] sm:$0xff]  ;;  %v298_v19 = vadd.f32 %v973_v9, %v955_v3  ;;  %v313_v20 = vadd.f32 %v976_v10, %v958_v4 }
  0x24   : > { %s938_s3 = scalar_lea.vmem %s1292_s1, %s659_s25  ;;  %s943_s6 = scalar_lea.vmem %s1293_s2, %s659_s25  ;;  %v207_v18 = vld [vmem:[%s927_s30 + $0x70] sm:$0xff]  ;;  %v328_v21 = vadd.f32 %v979_v11, %v961_v5  ;;  %v208_v23 = vld [vmem:[%s927_s30 + $0x78] sm:$0xff]  ;;  %v209_v24 = vld [vmem:[%s927_s30 + $0x80] sm:$0xff]  ;;  %v254_v26 = vadd.f32 %v253_v12, %v205_v16  ;;  %v269_v27 = vadd.f32 %v268_v13, %v206_v17 }
  0x25   : > { %v210_v25 = vld [vmem:[%s927_s30 + $0x88] sm:$0xff]  ;;  %v1003_v28 = vadd.f32 %v283_v14, %v207_v18  ;;  %v211_v30 = vld [vmem:[%s927_s30 + $0x90] sm:$0xff]  ;;  %v212_v31 = vld [vmem:[%s927_s30 + $0x98] sm:$0xff]  ;;  %v1012_v33 = vadd.f32 %v298_v19, %v208_v23  ;;  %v1014_v34 = vadd.f32 %v313_v20, %v209_v24 }
  0x26   : > { %v1010_v32 = vld [vmem:[%s927_s30 + $0xa0] sm:$0xff]  ;;  %v1016_v35 = vadd.f32 %v328_v21, %v210_v25  ;;  %v344_v37 = vmax.f32 %v211_v30, %v205_v16  ;;  %v359_v38 = vmax.f32 %v212_v31, %v206_v17  ;;  %v1022_v40 = vld [vmem:[%s927_s30 + $0xa8] sm:$0xff]  ;;  %v1025_v41 = vld [vmem:[%s927_s30 + $0xb0] sm:$0xff]  ;;  %v255_v43 = vadd.f32 %v254_v26, %v211_v30 }
  0x27   : > { %v374_v39 = vmax.f32 %v1010_v32, %v207_v18  ;;  %v1028_v42 = vld [vmem:[%s927_s30 + $0xb8] sm:$0xff]  ;;  %v389_v44 = vmax.f32 %v1022_v40, %v208_v23  ;;  %v404_v45 = vmax.f32 %v1025_v41, %v209_v24  ;;  %v217_v47 = vld [vmem:[%s927_s30 + $0xc0] sm:$0xff]  ;;  %v218_v48 = vld [vmem:[%s927_s30 + $0xc8] sm:$0xff]  ;;  %v270_v50 = vadd.f32 %v269_v27, %v212_v31 }
  0x28   : > { %v419_v46 = vmax.f32 %v1028_v42, %v210_v25  ;;  %v1036_v49 = vld [vmem:[%s927_s30 + $0xd0] sm:$0xff]  ;;  %v345_v51 = vmax.f32 %v344_v37, %v217_v47  ;;  %v360_v52 = vmax.f32 %v359_v38, %v218_v48  ;;  %v1040_v54 = vld [vmem:[%s927_s30 + $0xd8] sm:$0xff]  ;;  %v1043_v55 = vld [vmem:[%s927_s30 + $0xe0] sm:$0xff]  ;;  %v256_v57 = vadd.f32 %v255_v43, %v217_v47 }
  0x29   : > { %v375_v53 = vmax.f32 %v374_v39, %v1036_v49  ;;  %v1046_v56 = vld [vmem:[%s927_s30 + $0xe8] sm:$0xff]  ;;  %v390_v58 = vmax.f32 %v389_v44, %v1040_v54  ;;  %v405_v59 = vmax.f32 %v404_v45, %v1043_v55  ;;  %v223_v61 = vld [vmem:[%s927_s30 + $0xf0] sm:$0xff]  ;;  %v224_v62 = vld [vmem:[%s927_s30 + $0xf8] sm:$0xff]  ;;  %v271_v12 = vadd.f32 %v270_v50, %v218_v48 }
  0x2a   : > { %v420_v60 = vmax.f32 %v419_v46, %v1046_v56  ;;  %v1054_v63 = vld [vmem:[%s927_s30 + $0x100] sm:$0xff]  ;;  %v346_v13 = vmax.f32 %v345_v51, %v223_v61  ;;  %v361_v14 = vmax.f32 %v360_v52, %v224_v62  ;;  %v1058_v17 = vld [vmem:[%s927_s30 + $0x108] sm:$0xff]  ;;  %v1061_v18 = vld [vmem:[%s927_s30 + $0x110] sm:$0xff]  ;;  %v257_v20 = vadd.f32 %v256_v57, %v223_v61 }
  0x2b   : > { %v376_v16 = vmax.f32 %v375_v53, %v1054_v63  ;;  %v1064_v19 = vld [vmem:[%s927_s30 + $0x118] sm:$0xff]  ;;  %v391_v21 = vmax.f32 %v390_v58, %v1058_v17  ;;  %v406_v23 = vmax.f32 %v405_v59, %v1061_v18  ;;  %v229_v25 = vld [vmem:[%s927_s30 + $0x120] sm:$0xff]  ;;  %v230_v26 = vld [vmem:[%s927_s30 + $0x128] sm:$0xff]  ;;  %v272_v30 = vadd.f32 %v271_v12, %v224_v62 }
  0x2c   : > { %v421_v24 = vmax.f32 %v420_v60, %v1064_v19  ;;  %v1072_v27 = vld [vmem:[%s927_s30 + $0x130] sm:$0xff]  ;;  %v347_v31 = vmax.f32 %v346_v13, %v229_v25  ;;  %v362_v37 = vmax.f32 %v361_v14, %v230_v26  ;;  %v1076_v39 = vld [vmem:[%s927_s30 + $0x138] sm:$0xff]  ;;  %v1079_v43 = vld [vmem:[%s927_s30 + $0x140] sm:$0xff]  ;;  %v258_v45 = vadd.f32 %v257_v20, %v229_v25 }
  0x2d   : > { %v377_v38 = vmax.f32 %v376_v16, %v1072_v27  ;;  %v1082_v44 = vld [vmem:[%s927_s30 + $0x148] sm:$0xff]  ;;  %v392_v46 = vmax.f32 %v391_v21, %v1076_v39  ;;  %v407_v47 = vmax.f32 %v406_v23, %v1079_v43  ;;  %v235_v50 = vld [vmem:[%s927_s30 + $0x150] sm:$0xff]  ;;  %v236_v51 = vld [vmem:[%s927_s30 + $0x158] sm:$0xff]  ;;  %v273_v53 = vadd.f32 %v272_v30, %v230_v26 }
  0x2e   : > { %v422_v48 = vmax.f32 %v421_v24, %v1082_v44  ;;  %v1090_v52 = vld [vmem:[%s927_s30 + $0x160] sm:$0xff]  ;;  %v348_v57 = vmax.f32 %v347_v31, %v235_v50  ;;  %v363_v58 = vmax.f32 %v362_v37, %v236_v51  ;;  %v1094_v60 = vld [vmem:[%s927_s30 + $0x168] sm:$0xff]  ;;  %v1097_v61 = vld [vmem:[%s927_s30 + $0x170] sm:$0xff]  ;;  %v259_v12 = vadd.f32 %v258_v45, %v235_v50 }
  0x2f   : > { %v378_v59 = vmax.f32 %v377_v38, %v1090_v52  ;;  %v1100_v62 = vld [vmem:[%s927_s30 + $0x178] sm:$0xff]  ;;  %v393_v13 = vmax.f32 %v392_v46, %v1094_v60  ;;  %v408_v14 = vmax.f32 %v407_v47, %v1097_v61  ;;  %v241_v20 = vld [vmem:[%s927_s30 + $0x180] sm:$0xff]  ;;  %v242_v21 = vld [vmem:[%s927_s30 + $0x188] sm:$0xff]  ;;  %v274_v24 = vadd.f32 %v273_v53, %v236_v51 }
  0x30   : > { %v423_v16 = vmax.f32 %v422_v48, %v1100_v62  ;;  %v1108_v23 = vld [vmem:[%s927_s30 + $0x190] sm:$0xff]  ;;  %v349_v25 = vmax.f32 %v348_v57, %v241_v20  ;;  %v364_v26 = vmax.f32 %v363_v58, %v242_v21  ;;  %v1114_v31 = vld [vmem:[%s927_s30 + $0x198] sm:$0xff]  ;;  %v1117_v37 = vld [vmem:[%s927_s30 + $0x1a0] sm:$0xff]  ;;  %v260_v45 = vadd.f32 %v259_v12, %v241_v20 }
  0x31   : > { %v1111_v30 = vmax.f32 %v378_v59, %v1108_v23  ;;  %v1120_v38 = vld [vmem:[%s927_s30 + $0x1a8] sm:$0xff]  ;;  %v1123_v46 = vmax.f32 %v393_v13, %v1114_v31  ;;  %v1126_v47 = vmax.f32 %v408_v14, %v1117_v37  ;;  %v247_v50 = vld [vmem:[%s927_s30 + $0x1b0] sm:$0xff]  ;;  %v248_v51 = vld [vmem:[%s927_s30 + $0x1b8] sm:$0xff]  ;;  %v275_v57 = vadd.f32 %v274_v24, %v242_v21 }
  0x32   : > { %v1129_v48 = vmax.f32 %v423_v16, %v1120_v38  ;;  %v1134_v53 = vld [vmem:[%s927_s30 + $0x1c0] sm:$0xff]  ;;  %v350_v58 = vmax.f32 %v349_v25, %v247_v50  ;;  %v365_v59 = vmax.f32 %v364_v26, %v248_v51  ;;  %v1139_v12 = vld [vmem:[%s927_s30 + $0x1c8] sm:$0xff]  ;;  %v1142_v13 = vld [vmem:[%s927_s30 + $0x1d0] sm:$0xff]  ;;  %v261_v14 = vadd.f32 %v260_v45, %v247_v50 }
  0x33   : > { %v380_v36 = vmax.f32 %v1111_v30, %v1134_v53  ;;  %v1145_v20 = vld [vmem:[%s927_s30 + $0x1d8] sm:$0xff]  ;;  %v395_v16 = vmax.f32 %v1123_v46, %v1139_v12  ;;  %v276_v24 = vadd.f32 %v275_v57, %v248_v51  ;;  %v285_v26 = vadd.f32 %v1003_v28, %v1010_v32 }
  0x34   : > { %v425_v21 = vmax.f32 %v1129_v48, %v1145_v20  ;;  %v262_v25 = vrot.slane %v261_v14, 4  ;;  %v300_v30 = vadd.f32 %v1012_v33, %v1022_v40  ;;  %v315_v45 = vadd.f32 %v1014_v34, %v1025_v41 }
  0x35   : > { %v277_v50 = vrot.slane %v276_v24, 4  ;;  %v330_v46 = vadd.f32 %v1016_v35, %v1028_v42  ;;  %v351_v29 = vmax.f32 %v350_v58, %v343_v15  ;;  %v366_v51 = vmax.f32 %v365_v59, %v358_v22 }
  0x36   : > { %v263_v57 = vadd.f32 %v262_v25, %v261_v14  ;;  %v286_v28 = vadd.f32 %v285_v26, %v1036_v49  ;;  %v301_v32 = vadd.f32 %v300_v30, %v1040_v54  ;;  %v316_v33 = vadd.f32 %v315_v45, %v1043_v55 }
  0x37   : > { %v278_v34 = vadd.f32 %v277_v50, %v276_v24  ;;  %v331_v40 = vadd.f32 %v330_v46, %v1046_v56  ;;  %v352_v41 = vrot.slane %v351_v29, 4  ;;  %v367_v35 = vrot.slane %v366_v51, 4 }
  0x38   : > { %v264_v42 = vrot.slane %v263_v57, 2  ;;  %v287_v0 = vadd.f32 %v286_v28, %v1054_v63  ;;  %v302_v6 = vadd.f32 %v301_v32, %v1058_v17  ;;  %v317_v1 = vadd.f32 %v316_v33, %v1061_v18 }
  0x39   : > { %v279_v7 = vrot.slane %v278_v34, 2  ;;  %v332_v15 = vadd.f32 %v331_v40, %v1064_v19  ;;  %v353_v22 = vmax.f32 %v351_v29, %v352_v41  ;;  %v368_v49 = vmax.f32 %v366_v51, %v367_v35 }
  0x3a   : > { %v265_v54 = vadd.f32 %v264_v42, %v263_v57  ;;  %v288_v55 = vadd.f32 %v287_v0, %v1072_v27  ;;  %v303_v58 = vadd.f32 %v302_v6, %v1076_v39  ;;  %v318_v56 = vadd.f32 %v317_v1, %v1079_v43 }
  0x3b   : > { %v280_v59 = vadd.f32 %v279_v7, %v278_v34  ;;  %v333_v14 = vadd.f32 %v332_v15, %v1082_v44  ;;  %v354_v63 = vrot.slane %v353_v22, 2  ;;  %v369_v24 = vrot.slane %v368_v49, 2 }
  0x3c   : > { %v266_v17 = vrot.slane %v265_v54, 1  ;;  %v289_v18 = vadd.f32 %v288_v55, %v1090_v52  ;;  %v304_v25 = vadd.f32 %v303_v58, %v1094_v60  ;;  %v319_v29 = vadd.f32 %v318_v56, %v1097_v61 }
  0x3d   : > { %v281_v19 = vrot.slane %v280_v59, 1  ;;  %v334_v26 = vadd.f32 %v333_v14, %v1100_v62  ;;  %v355_v27 = vmax.f32 %v353_v22, %v354_v63  ;;  %v370_v30 = vmax.f32 %v368_v49, %v369_v24 }
  0x3e   : > { %v1183_v39 = vadd.f32 %v266_v17, %v265_v54  ;;  %v290_v43 = vadd.f32 %v289_v18, %v1108_v23  ;;  %v305_v44 = vadd.f32 %v304_v25, %v1114_v31  ;;  %v320_v45 = vadd.f32 %v319_v29, %v1117_v37 }
  0x3f   : > { %v1188_v50 = vadd.f32 %v281_v19, %v280_v59  ;;  %v335_v52 = vadd.f32 %v334_v26, %v1120_v38  ;;  %v356_v60 = vrot.slane %v355_v27, 1  ;;  %v371_v46 = vrot.slane %v370_v30, 1 }
  0x40   : > { %v291_v61 = vadd.f32 %v290_v43, %v1134_v53  ;;  %v306_v62 = vadd.f32 %v305_v44, %v1139_v12  ;;  %v321_v51 = vadd.f32 %v320_v45, %v1142_v13  ;;  %v1296_v57 = vmax.f32 %v952_v2, %v970_v8 }
  0x41   : > { %v336_v31 = vadd.f32 %v335_v52, %v1145_v20  ;;  %v1198_v28 = vmax.f32 %v355_v27, %v356_v60  ;;  %v1200_v37 = vmax.f32 %v370_v30, %v371_v46  ;;  %v1297_v38 = vmax.f32 %v955_v3, %v973_v9 }
  0x42   : > { %v381_v23 = vmax.f32 %v380_v36, %v1296_v57  ;;  %v292_v33 = vrot.slane %v291_v61, 4  ;;  %v307_v53 = vrot.slane %v306_v62, 4  ;;  %v322_v34 = vrot.slane %v321_v51, 4 }
  0x43   : > { %v396_v32 = vmax.f32 %v395_v16, %v1297_v38  ;;  %v337_v40 = vrot.slane %v336_v31, 4  ;;  %v403_v2 = vmax.f32 %v958_v4, %v976_v10  ;;  %v418_v8 = vmax.f32 %v961_v5, %v979_v11 }
  0x44   : > { %v382_v12 = vrot.slane %v381_v23, 4  ;;  %v293_v36 = vadd.f32 %v292_v33, %v291_v61  ;;  %v308_v35 = vadd.f32 %v307_v53, %v306_v62  ;;  %v323_v42 = vadd.f32 %v322_v34, %v321_v51 }
  0x45   : > { %v397_v41 = vrot.slane %v396_v32, 4  ;;  %v338_v6 = vadd.f32 %v337_v40, %v336_v31  ;;  %v1298_v3 = vmax.f32 %v1126_v47, %v1142_v13  ;;  %v426_v16 = vmax.f32 %v425_v21, %v418_v8 }
  0x46   : > { %v383_v0 = vmax.f32 %v381_v23, %v382_v12  ;;  %v294_v7 = vrot.slane %v293_v36, 2  ;;  %v309_v15 = vrot.slane %v308_v35, 2  ;;  %v324_v4 = vrot.slane %v323_v42, 2 }
  0x47   : > { %v398_v1 = vmax.f32 %v396_v32, %v397_v41  ;;  %v411_v9 = vmax.f32 %v1298_v3, %v403_v2  ;;  %v339_v22 = vrot.slane %v338_v6, 2  ;;  %v427_v49 = vrot.slane %v426_v16, 4 }
  0x48   : > { %v384_v10 = vrot.slane %v383_v0, 2  ;;  %v295_v54 = vadd.f32 %v294_v7, %v293_v36  ;;  %v310_v55 = vadd.f32 %v309_v15, %v308_v35  ;;  %v325_v58 = vadd.f32 %v324_v4, %v323_v42 }
  0x49   : > { %v399_v5 = vrot.slane %v398_v1, 2  ;;  %v412_v11 = vrot.slane %v411_v9, 4  ;;  %v340_v59 = vadd.f32 %v339_v22, %v338_v6  ;;  %v428_v13 = vmax.f32 %v426_v16, %v427_v49 }
  0x4a   : > { %v385_v56 = vmax.f32 %v383_v0, %v384_v10  ;;  %v296_v63 = vrot.slane %v295_v54, 1  ;;  %v311_v24 = vrot.slane %v310_v55, 1  ;;  %v326_v48 = vrot.slane %v325_v58, 1 }
  0x4b   : > { %v400_v14 = vmax.f32 %v398_v1, %v399_v5  ;;  %v413_v47 = vmax.f32 %v411_v9, %v412_v11  ;;  %v341_v21 = vrot.slane %v340_v59, 1  ;;  %v429_v25 = vrot.slane %v428_v13, 2 }
  0x4c   : > { %v386_v20 = vrot.slane %v385_v56, 1  ;;  %v297_v29 = vadd.f32 %v296_v63, %v295_v54  ;;  %v312_v19 = vadd.f32 %v311_v24, %v310_v55  ;;  %v327_v26 = vadd.f32 %v326_v48, %v325_v58 }
  0x4d   : > { %v401_v17 = vrot.slane %v400_v14, 1  ;;  %v414_v18 = vrot.slane %v413_v47, 2  ;;  %v342_v30 = vadd.f32 %v341_v21, %v340_v59  ;;  %v430_v45 = vmax.f32 %v428_v13, %v429_v25 }
  0x4e   : > { %v1215_v27 = vmax.f32 %v385_v56, %v386_v20 }
  0x4f   : > { %v1217_v43 = vmax.f32 %v400_v14, %v401_v17  ;;  %v415_v44 = vmax.f32 %v413_v47, %v414_v18  ;;  %v431_v60 = vrot.slane %v430_v45, 1  ;;  %436 = sbr.rel (%p651_p1) target bundleno = 94 (0x5e), region = 32 }
  0x51   : > { %v416_v52 = vrot.slane %v415_v44, 1  ;;  %v1221_v61 = vmax.f32 %v430_v45, %v431_v60 }
  0x53   : > { %v1219_v46 = vmax.f32 %v415_v44, %v416_v52 }
  0x54   : > { %v443_v62 = vrot.slane %v1188_v50, 7  ;;  %v444_v51 = vrot.slane %v297_v29, 6  ;;  %v445_v57 = vrot.slane %v312_v19, 5  ;;  %v446_v23 = vrot.slane %v327_v26, 4 }
  0x55   : > { %v447_v31 = vrot.slane %v342_v30, 3  ;;  %vm448_vm0 = vcmask 1040384   ;;  %vm450_vm1 = vcmask 1041408   ;;  %vm452_vm2 = vcmask 1043459  }
  0x56   : > { %v449_v38 = vsel %vm448_vm0, %v1183_v39, %v443_v62  ;;  %v453_v32 = vsel %vm452_vm2, %v445_v57, %v446_v23  ;;  %vm454_vm3 = vcmask 1044483   ;;  %vm456_vm4 = vcmask 1042432  }
  0x57   : > { %v451_v33 = vsel %vm450_vm1, %v449_v38, %v444_v51  ;;  %v455_v53 = vsel %vm454_vm3, %v453_v32, %v447_v31  ;;  %v459_v34 = vlaneseq  ;;  %v470_v12 = vrot.slane %v1200_v37, 7 }
  0x58   : > { %v457_v40 = vsel %vm456_vm4, %v451_v33, %v455_v53  ;;  %v471_v41 = vrot.slane %v1215_v27, 6  ;;  %v472_v2 = vrot.slane %v1217_v43, 5  ;;  %v473_v8 = vrot.slane %v1219_v46, 4 }
  0x59   : > { %vm461_vm5 = vcmp.lt.s32.totalorder %v459_v34, 768  ;;  %v474_v36 = vrot.slane %v1221_v61, 3  ;;  %v475_v35 = vsel %vm448_vm0, %v1198_v28, %v470_v12 }
  0x5a   : > { %463 = vst.msk [vmem:[%s938_s3] sm:$0x3f] %vm461_vm5, %v457_v40  ;;  %v476_v42 = vsel %vm450_vm1, %v475_v35, %v471_v41  ;;  %v477_v0 = vsel %vm452_vm2, %v472_v2, %v473_v8 }
  0x5b   : > { %v478_v6 = vsel %vm454_vm3, %v477_v0, %v474_v36 }
  0x5c   : > { %v479_v1 = vsel %vm456_vm4, %v476_v42, %v478_v6 }
  0x5d   : > { %481 = vst.msk [vmem:[%s943_s6] sm:$0x3f] %vm461_vm5, %v479_v1 }
  0x5e PF: > { %p652_p2 = scmp.le.s32.totalorder %s814_s12, 0 }
  0x60   : > { %485 = sbr.rel (%p652_p2) target bundleno = 113 (0x71), region = 36 }
  0x65   : > { %v493_v3 = vrot.slane %v1188_v50, 7  ;;  %v494_v9 = vrot.slane %v297_v29, 6  ;;  %v495_v16 = vrot.slane %v312_v19, 5  ;;  %v496_v7 = vrot.slane %v327_v26, 4  ;;  %v486_v4 = vld [vmem:[%s938_s3] sm:$0x3f] }
  0x66   : > { %v497_v15 = vrot.slane %v342_v30, 3  ;;  %vm498_vm6 = vcmask 1040384   ;;  %vm500_vm7 = vcmask 1041408   ;;  %vm502_vm8 = vcmask 1043459   ;;  %v515_v47 = vld [vmem:[%s943_s6] sm:$0x3f] }
  0x67   : > { %v499_v10 = vsel %vm498_vm6, %v1183_v39, %v493_v3  ;;  %v503_v22 = vsel %vm502_vm8, %v495_v16, %v496_v7  ;;  %vm504_vm9 = vcmask 1044483   ;;  %vm506_vm10 = vcmask 1042432  }
  0x68   : > { %v501_v5 = vsel %vm500_vm7, %v499_v10, %v494_v9  ;;  %v505_v50 = vsel %vm504_vm9, %v503_v22, %v497_v15  ;;  %v510_v11 = vlaneseq  ;;  %v522_v49 = vrot.slane %v1200_v37, 7 }
  0x69   : > { %v507_v54 = vsel %vm506_vm10, %v501_v5, %v505_v50  ;;  %v523_v55 = vrot.slane %v1215_v27, 6  ;;  %v524_v39 = vrot.slane %v1217_v43, 5  ;;  %v525_v58 = vrot.slane %v1219_v46, 4 }
  0x6a   : > { %v509_v56 = vadd.f32 %v507_v54, %v486_v4  ;;  %vm512_vm11 = vcmp.lt.s32.totalorder %v510_v11, 768  ;;  %v526_v59 = vrot.slane %v1221_v61, 3  ;;  %v527_v14 = vsel %vm498_vm6, %v1198_v28, %v522_v49 }
  0x6b   : > { %v528_v13 = vsel %vm500_vm7, %v527_v14, %v523_v55  ;;  %v529_v37 = vsel %vm502_vm8, %v524_v39, %v525_v58 }
  0x6c   : > { %514 = vst.msk [vmem:[%s938_s3] sm:$0x3f] %vm512_vm11, %v509_v56  ;;  %v530_v63 = vsel %vm504_vm9, %v529_v37, %v526_v59 }
  0x6d   : > { %v531_v24 = vsel %vm506_vm10, %v528_v13, %v530_v63 }
  0x6e   : > { %v533_v48 = vmax.f32 %v515_v47, %v531_v24 }
  0x70   : > { %534 = vst.msk [vmem:[%s943_s6] sm:$0x3f] %vm512_vm11, %v533_v48 }
  0x71 PF: > { %s16_s16 = sadd.s32 1, %s830_s16   ;;  %s1299_s9 = smov %s806_s10 }
  0x72   : > { %p13_p3 = scmp.ge.s32.totalorder %s16_s16, 10   ;;  %s1300_s10 = smov %s810_s11 }
  0x73   : > { %s1301_s11 = smov %s915_s28  ;;  %s1302_s12 = smov %s822_s14 }
  0x74   : > { %s1303_s13 = smov %s826_s15  ;;  %s1304_s14 = smov %s1307_s18 }
  0x75   : > { %s1305_s15 = smov %s1311_s19  ;;  %15 = sbr.rel (!%p13_p3) target bundleno = 5 (0x5), region = 84 }
  0x7a   :  { %568 = vsyncpa [#allocation3], 1 }
  0x7b   :  { %570 = vsyncpa [#allocation3 + $0x1], 1 }

// kernel: aff_pallas.3
= control target key start
LH: loop header
LB: loop body
LE: loop exit
PB: predicated region body
PF: predicated region fallthrough
CT: control target
= control target key end

     0   :  { %s8827_s0 = inlined_call_operand.vmem [shape: f32[2,320,768], index: 0, kind: input, shape index: {}]   ;;  %s8828_s1 = inlined_call_operand.vmem [shape: bf16[768,192], index: 1, kind: input, shape index: {}]   ;;  %s8829_s2 = inlined_call_operand.vmem [shape: f32[1,192], index: 2, kind: input, shape index: {}]   ;;  %s8830_s3 = inlined_call_operand.vmem [shape: bf16[192,768], index: 3, kind: input, shape index: {}]   ;;  %s8831_s4 = inlined_call_operand.vmem [shape: f32[2,1,768], index: 4, kind: input, shape index: {}]   ;;  %s8832_s5 = inlined_call_operand.hbm [shape: f32[2,320,768], index: 5, kind: output, shape index: {0}]   ;;  %s8833_s6 = inlined_call_operand.hbm [shape: f32[2,320,768], index: 6, kind: output, shape index: {1}]  }
   0x1   :  { %8865 = sst [smem:[#allocation39_spill]] %s8827_s0 }
   0x2   :  { %12 = vsyncpa [#allocation3], 0 }
   0x3   :  { %14 = vsyncpa [#allocation3 + $0x1], 0 }
   0x4   :  { %15 = vsyncpa [#allocation5], 0 }
   0x5   :  { %17 = vsyncpa [#allocation5 + $0x1], 0  ;;  %s5527_s21 = smov 0   ;;  %s5529_s22 = smov 0  }
   0x6   :  { %s5531_s23 = smov 0   ;;  %s5533_s24 = smov 0  }
   0x7   :  { %s5535_s25 = smov 0   ;;  %s5537_s26 = smov 0  }
   0x8   :  { %s5539_s27 = smov 0   ;;  %s5541_s28 = smov 0  }
   0x9 LB: > { %s4033_s29 = sadd.s32 4294967295, %s5488_s28   ;;  %s4034_s30 = sadd.s32 4294967294, %s5488_s28   ;;  %s5488_s28 = sphi %s5541_s28, %s23_s28   ;;  %s5484_s27 = sphi %s5539_s27, %s9031_s27   ;;  %s5480_s26 = sphi %s5537_s26, %s9030_s26   ;;  %s5476_s25 = sphi %s5535_s25, %s9029_s25   ;;  %s5472_s24 = sphi %s5533_s24, %s9028_s24   ;;  %s5468_s23 = sphi %s5531_s23, %s9027_s23   ;;  %s5464_s22 = sphi %s5529_s22, %s9026_s22   ;;  %s5460_s21 = sphi %s5527_s21, %s9025_s21  }
   0xa   : > { %s32_s7 = sadd.s32 1, %s5480_s26  ;;  %s35_s8 = sadd.s32 1, %s5484_s27 }
   0xb   : > { %p33_p0 = scmp.ge.s32.totalorder %s32_s7, 4  ;;  %p171_p1 = scmp.ne.s32.totalorder %s5468_s23, %s5464_s22 }
   0xc   : > { %p172_p2 = scmp.eq.s32.totalorder %s4033_s29, 7  ;;  %p177_p5 = scmp.ne.s32.totalorder %s5464_s22, %s5460_s21 }
   0xd   : > { %s9033_s7 = smov (%p33_p0, %s32_s7), 0  ;;  %s9035_s8 = smov (!%p33_p0, %s35_s8), %s5484_s27 }
   0xe   : > { %8866 = sst [smem:[#allocation8_spill]] %s9033_s7  ;;  %s157_s9 = ssub.s32 %s5480_s26, %s9033_s7 }
   0xf   : > { %p5578_p3 = por %p172_p2, %p171_p1  ;;  %p37_p4 = scmp.ge.s32.totalorder %s9035_s8, 2 }
  0x10   : > { %p178_p6 = scmp.eq.s32.totalorder %s4034_s30, 7  ;;  %p4037_p7 = scmp.ge.s32.totalorder %s5488_s28, 1 }
  0x11   : > { %s9037_s8 = smov (%p37_p4, %s9035_s8), 0  ;;  %p254_p9 = scmp.lt.s32.totalorder %s5488_s28, 9 }
  0x12   : > { %8868 = sst [smem:[#allocation9_spill]] %s9037_s8  ;;  %p5587_p8 = por %p178_p6, %p177_p5 }
  0x13   : > { %s156_s12 = ssub.s32 %s5484_s27, %s9037_s8  ;;  %s161_s13 = sadd.s32 1, %s5468_s23 }
  0x14   : > { %s158_s14 = sor.u32 %s157_s9, %s156_s12  ;;  %p255_p10 = pnand %p4037_p7, %p254_p9 }
  0x15   : > { %p159_p11 = scmp.eq.s32.totalorder %s158_s14, 0 }
  0x16   : > { %258 = sbr.rel (%p255_p10) target bundleno = 870 (0x366), region = 40 }
  0x17   : > { %s5596_s15 = scalar_select %p159_p11, %s5468_s23, %s161_s13  }
  0x1b   : > { %v4097_v0 = vld [vmem:[%s8828_s1 + $0x70] sm:$0xf]  ;;  %v4820_v1 = vld [vmem:[%s8828_s1 + $0x74] sm:$0xf0]  ;;  %v4089_v11 = vld [vmem:[%s8828_s1 + $0x60] sm:$0xf] }
  0x1c   : > { %v4161_v2 = vld [vmem:[%s8828_s1 + $0xf0] sm:$0xf]  ;;  %v4098_v3 = vor.u32 %v4820_v1, %v4097_v0  ;;  %v4836_v4 = vld [vmem:[%s8828_s1 + $0xf4] sm:$0xf0]  ;;  %v4818_v13 = vld [vmem:[%s8828_s1 + $0x64] sm:$0xf0] }
  0x1d   : > { %v4225_v5 = vld [vmem:[%s8828_s1 + $0x170] sm:$0xf]  ;;  %v4852_v6 = vld [vmem:[%s8828_s1 + $0x174] sm:$0xf0]  ;;  %v4162_v7 = vor.u32 %v4836_v4, %v4161_v2  ;;  %v4153_v14 = vld [vmem:[%s8828_s1 + $0xe0] sm:$0xf]  ;;  %v4090_v16 = vor.u32 %v4818_v13, %v4089_v11 }
  0x1e   : > { %v4226_v8 = vor.u32 %v4852_v6, %v4225_v5  ;;  %v4289_v9 = vld [vmem:[%s8828_s1 + $0x1f0] sm:$0xf]  ;;  %v4868_v10 = vld [vmem:[%s8828_s1 + $0x1f4] sm:$0xf0]  ;;  %1061 = vmatpush.bf16.msra.mxu0 %v4098_v3  ;;  %v4834_v15 = vld [vmem:[%s8828_s1 + $0xe4] sm:$0xf0] }
  0x1f   : > { %v4290_v12 = vor.u32 %v4868_v10, %v4289_v9  ;;  %1095 = vmatpush.bf16.msra.mxu1 %v4162_v7  ;;  %v4154_v17 = vor.u32 %v4834_v15, %v4153_v14  ;;  %v4217_v18 = vld [vmem:[%s8828_s1 + $0x160] sm:$0xf]  ;;  %v4850_v19 = vld [vmem:[%s8828_s1 + $0x164] sm:$0xf0]  ;;  %v4081_v23 = vld [vmem:[%s8828_s1 + $0x50] sm:$0xf] }
  0x20   : > { %1129 = vmatpush.bf16.msra.mxu2 %v4226_v8  ;;  %v4281_v20 = vld [vmem:[%s8828_s1 + $0x1e0] sm:$0xf]  ;;  %v4218_v21 = vor.u32 %v4850_v19, %v4217_v18  ;;  %v4866_v22 = vld [vmem:[%s8828_s1 + $0x1e4] sm:$0xf0]  ;;  %v4816_v24 = vld [vmem:[%s8828_s1 + $0x54] sm:$0xf0] }
  0x21   : > { %1163 = vmatpush.bf16.msra.mxu3 %v4290_v12  ;;  %v4282_v25 = vor.u32 %v4866_v22, %v4281_v20  ;;  %v4145_v26 = vld [vmem:[%s8828_s1 + $0xd0] sm:$0xf]  ;;  %v4832_v27 = vld [vmem:[%s8828_s1 + $0xd4] sm:$0xf0]  ;;  %v4082_v29 = vor.u32 %v4816_v24, %v4081_v23  ;;  %v4073_v35 = vld [vmem:[%s8828_s1 + $0x40] sm:$0xf] }
  0x22   : > { %v4209_v28 = vld [vmem:[%s8828_s1 + $0x150] sm:$0xf]  ;;  %1062 = vmatpush.bf16.msra.mxu0 %v4090_v16  ;;  %v4848_v30 = vld [vmem:[%s8828_s1 + $0x154] sm:$0xf0]  ;;  %v4146_v33 = vor.u32 %v4832_v27, %v4145_v26  ;;  %v4814_v36 = vld [vmem:[%s8828_s1 + $0x44] sm:$0xf0] }
  0x23   : > { %v4273_v31 = vld [vmem:[%s8828_s1 + $0x1d0] sm:$0xf]  ;;  %v4864_v32 = vld [vmem:[%s8828_s1 + $0x1d4] sm:$0xf0]  ;;  %1096 = vmatpush.bf16.msra.mxu1 %v4154_v17  ;;  %v4210_v34 = vor.u32 %v4848_v30, %v4209_v28  ;;  %v4137_v37 = vld [vmem:[%s8828_s1 + $0xc0] sm:$0xf]  ;;  %v4074_v44 = vor.u32 %v4814_v36, %v4073_v35 }
  0x24   : > { %1130 = vmatpush.bf16.msra.mxu2 %v4218_v21  ;;  %v4274_v38 = vor.u32 %v4864_v32, %v4273_v31  ;;  %v4830_v39 = vld [vmem:[%s8828_s1 + $0xc4] sm:$0xf0]  ;;  %v4201_v40 = vld [vmem:[%s8828_s1 + $0x140] sm:$0xf]  ;;  %v4065_v47 = vld [vmem:[%s8828_s1 + $0x30] sm:$0xf] }
  0x25   : > { %1164 = vmatpush.bf16.msra.mxu3 %v4282_v25  ;;  %v4846_v41 = vld [vmem:[%s8828_s1 + $0x144] sm:$0xf0]  ;;  %v4265_v42 = vld [vmem:[%s8828_s1 + $0x1c0] sm:$0xf]  ;;  %v4138_v45 = vor.u32 %v4830_v39, %v4137_v37  ;;  %v4812_v48 = vld [vmem:[%s8828_s1 + $0x34] sm:$0xf0] }
  0x26   : > { %v4862_v43 = vld [vmem:[%s8828_s1 + $0x1c4] sm:$0xf0]  ;;  %1063 = vmatpush.bf16.msra.mxu0 %v4082_v29  ;;  %v4202_v46 = vor.u32 %v4846_v41, %v4201_v40  ;;  %v4129_v49 = vld [vmem:[%s8828_s1 + $0xb0] sm:$0xf]  ;;  %v4828_v51 = vld [vmem:[%s8828_s1 + $0xb4] sm:$0xf0]  ;;  %v4066_v56 = vor.u32 %v4812_v48, %v4065_v47 }
  0x27   : > { %1097 = vmatpush.bf16.msra.mxu1 %v4146_v33  ;;  %v4266_v50 = vor.u32 %v4862_v43, %v4265_v42  ;;  %v4193_v52 = vld [vmem:[%s8828_s1 + $0x130] sm:$0xf]  ;;  %v4844_v53 = vld [vmem:[%s8828_s1 + $0x134] sm:$0xf0]  ;;  %v4130_v57 = vor.u32 %v4828_v51, %v4129_v49  ;;  %v4057_v59 = vld [vmem:[%s8828_s1 + $0x20] sm:$0xf] }
  0x28   : > { %1131 = vmatpush.bf16.msra.mxu2 %v4210_v34  ;;  %v4257_v54 = vld [vmem:[%s8828_s1 + $0x1b0] sm:$0xf]  ;;  %v4860_v55 = vld [vmem:[%s8828_s1 + $0x1b4] sm:$0xf0]  ;;  %v4194_v58 = vor.u32 %v4844_v53, %v4193_v52  ;;  %v4810_v60 = vld [vmem:[%s8828_s1 + $0x24] sm:$0xf0] }
  0x29   : > { %1165 = vmatpush.bf16.msra.mxu3 %v4274_v38  ;;  %v4121_v61 = vld [vmem:[%s8828_s1 + $0xa0] sm:$0xf]  ;;  %v4258_v62 = vor.u32 %v4860_v55, %v4257_v54  ;;  %v4826_v63 = vld [vmem:[%s8828_s1 + $0xa4] sm:$0xf0]  ;;  %v4058_v4 = vor.u32 %v4810_v60, %v4057_v59  ;;  %v4049_v5 = vld [vmem:[%s8828_s1 + $0x10] sm:$0xf] }
  0x2a   : > { %1064 = vmatpush.bf16.msra.mxu0 %v4074_v44  ;;  %v4185_v0 = vld [vmem:[%s8828_s1 + $0x120] sm:$0xf]  ;;  %v4842_v1 = vld [vmem:[%s8828_s1 + $0x124] sm:$0xf0]  ;;  %v4808_v6 = vld [vmem:[%s8828_s1 + $0x14] sm:$0xf0]  ;;  %v4122_v7 = vor.u32 %v4826_v63, %v4121_v61 }
  0x2b   : > { %1098 = vmatpush.bf16.msra.mxu1 %v4138_v45  ;;  %v4249_v2 = vld [vmem:[%s8828_s1 + $0x1a0] sm:$0xf]  ;;  %v4858_v3 = vld [vmem:[%s8828_s1 + $0x1a4] sm:$0xf0]  ;;  %v4186_v8 = vor.u32 %v4842_v1, %v4185_v0  ;;  %v4113_v9 = vld [vmem:[%s8828_s1 + $0x90] sm:$0xf]  ;;  %v4050_v18 = vor.u32 %v4808_v6, %v4049_v5 }
  0x2c   : > { %1132 = vmatpush.bf16.msra.mxu2 %v4202_v46  ;;  %v4824_v10 = vld [vmem:[%s8828_s1 + $0x94] sm:$0xf0]  ;;  %v4177_v11 = vld [vmem:[%s8828_s1 + $0x110] sm:$0xf]  ;;  %v4250_v12 = vor.u32 %v4858_v3, %v4249_v2  ;;  %s298_s16 = smul.u32 10, %s5472_s24  ;;  %p299_p12 = scmp.lt.s32.totalorder %s5476_s25, 1 }
  0x2d   : > { %1166 = vmatpush.bf16.msra.mxu3 %v4266_v50  ;;  %v4840_v13 = vld [vmem:[%s8828_s1 + $0x114] sm:$0xf0]  ;;  %v4241_v14 = vld [vmem:[%s8828_s1 + $0x190] sm:$0xf]  ;;  %v4041_v16 = vld [vmem:[%s8828_s1] sm:$0xf]  ;;  %v4114_v22 = vor.u32 %v4824_v10, %v4113_v9 }
  0x2e   : > { %1065 = vmatpush.bf16.msra.mxu0 %v4066_v56  ;;  %v4856_v15 = vld [vmem:[%s8828_s1 + $0x194] sm:$0xf0]  ;;  %v4806_v17 = vld [vmem:[%s8828_s1 + $0x4] sm:$0xf0]  ;;  %v4105_v19 = vld [vmem:[%s8828_s1 + $0x80] sm:$0xf]  ;;  %v4178_v23 = vor.u32 %v4840_v13, %v4177_v11 }
  0x2f   : > { %1099 = vmatpush.bf16.msra.mxu1 %v4130_v57  ;;  %v4822_v20 = vld [vmem:[%s8828_s1 + $0x84] sm:$0xf0]  ;;  %v4169_v21 = vld [vmem:[%s8828_s1 + $0x100] sm:$0xf]  ;;  %s5784_s19 = scalar_select %p299_p12, %s5476_s25, 1  ;;  %v4242_v26 = vor.u32 %v4856_v15, %v4241_v14  ;;  %v4042_v31 = vor.u32 %v4806_v17, %v4041_v16  ;;  %vm1872_vm0 = vcmask 523264  }
  0x30   : > { %1133 = vmatpush.bf16.msra.mxu2 %v4194_v58  ;;  %v4838_v24 = vld [vmem:[%s8828_s1 + $0x104] sm:$0xf0]  ;;  %v4233_v25 = vld [vmem:[%s8828_s1 + $0x180] sm:$0xf]  ;;  %p301_p13 = scmp.lt.s32.totalorder %s298_s16, 39  ;;  %v4106_v35 = vor.u32 %v4822_v20, %v4105_v19  ;;  %s8870_s0 = sld [smem:[#allocation39_spill]] }
  0x31   : > { %1167 = vmatpush.bf16.msra.mxu3 %v4258_v62  ;;  %v4854_v27 = vld [vmem:[%s8828_s1 + $0x184] sm:$0xf0]  ;;  %s4975_s14 = smul.u32 240, %s5784_s19  ;;  %v4819_v28 = vld [vmem:[%s8828_s1 + $0x74] sm:$0xf]  ;;  %v4170_v36 = vor.u32 %v4838_v24, %v4169_v21 }
  0x32   : > { %1066 = vmatpush.bf16.msra.mxu0 %v4058_v4  ;;  %s9039_s16 = smov (!%p301_p13, %s298_s16), 39  ;;  %v4099_v29 = vld [vmem:[%s8828_s1 + $0x78] sm:$0xf0]  ;;  %v4353_v30 = vld [vmem:[%s8828_s1 + $0x270] sm:$0xf]  ;;  %v4234_v39 = vor.u32 %v4854_v27, %v4233_v25  ;;  %s4978_s13 = smul.u32 240, %s5476_s25 }
  0x33   : > { %1100 = vmatpush.bf16.msra.mxu1 %v4122_v7  ;;  %v4884_v32 = vld [vmem:[%s8828_s1 + $0x274] sm:$0xf0]  ;;  %v4835_v33 = vld [vmem:[%s8828_s1 + $0xf4] sm:$0xf]  ;;  %v4163_v34 = vld [vmem:[%s8828_s1 + $0xf8] sm:$0xf0]  ;;  %v4102_v40 = vor.u32 %v4819_v28, %v4099_v29 }
  0x34   : > { %1134 = vmatpush.bf16.msra.mxu2 %v4186_v8  ;;  %s4974_s8 = smul.u32 6, %s9039_s16  ;;  %v4417_v37 = vld [vmem:[%s8828_s1 + $0x2f0] sm:$0xf]  ;;  %v4900_v38 = vld [vmem:[%s8828_s1 + $0x2f4] sm:$0xf0]  ;;  %v4354_v41 = vor.u32 %v4884_v32, %v4353_v30  ;;  %v4166_v42 = vor.u32 %v4835_v33, %v4163_v34 }
  0x35   : > { %1168 = vmatpush.bf16.msra.mxu3 %v4250_v12  ;;  %v4817_v43 = vld [vmem:[%s8828_s1 + $0x64] sm:$0xf]  ;;  %v4091_v44 = vld [vmem:[%s8828_s1 + $0x68] sm:$0xf0]  ;;  %v4345_v45 = vld [vmem:[%s8828_s1 + $0x260] sm:$0xf]  ;;  %v4418_v46 = vor.u32 %v4900_v38, %v4417_v37 }
  0x36   : > { %1067 = vmatpush.bf16.msra.mxu0 %v4050_v18  ;;  %s305_s9 = sadd.s32 %s4975_s14, %s4974_s8  ;;  %v4882_v47 = vld [vmem:[%s8828_s1 + $0x264] sm:$0xf0]  ;;  %v4833_v48 = vld [vmem:[%s8828_s1 + $0xe4] sm:$0xf]  ;;  %v4155_v49 = vld [vmem:[%s8828_s1 + $0xe8] sm:$0xf0]  ;;  %v4094_v61 = vor.u32 %v4817_v43, %v4091_v44 }
  0x37   : > { %1101 = vmatpush.bf16.msra.mxu1 %v4114_v22  ;;  %s4038_s29 = sshll.u32 %s305_s9, 3  ;;  %v4409_v50 = vld [vmem:[%s8828_s1 + $0x2e0] sm:$0xf]  ;;  %v4898_v51 = vld [vmem:[%s8828_s1 + $0x2e4] sm:$0xf0]  ;;  %v4346_v2 = vor.u32 %v4882_v47, %v4345_v45  ;;  %v4158_v3 = vor.u32 %v4833_v48, %v4155_v49  ;;  %s4976_s9 = smul.u32 6, %s5784_s19 }
  0x38   : > { %1135 = vmatpush.bf16.msra.mxu2 %v4178_v23  ;;  %s5838_s17 = scalar_lea.vmem %s8870_s0, %s4038_s29  ;;  %v4815_v55 = vld [vmem:[%s8828_s1 + $0x54] sm:$0xf]  ;;  %v4083_v56 = vld [vmem:[%s8828_s1 + $0x58] sm:$0xf0]  ;;  %v4337_v4 = vld [vmem:[%s8828_s1 + $0x250] sm:$0xf]  ;;  %v4410_v6 = vor.u32 %v4898_v51, %v4409_v50 }
  0x39   : > { %1169 = vmatpush.bf16.msra.mxu3 %v4242_v26  ;;  %v316_v52 = vld [vmem:[%s5838_s17] sm:$0xff]  ;;  %v322_v53 = vld [vmem:[%s5838_s17 + $0x30] sm:$0xff]  ;;  %v317_v54 = vld [vmem:[%s5838_s17 + $0x8] sm:$0xff]  ;;  %v4086_v12 = vor.u32 %v4815_v55, %v4083_v56  ;;  %s6985_s7 = scalar_lea.vmem %s8831_s4, %s4976_s9  ;;  %s7202_s19 = sand.u32 1, %s5464_s22  }
  0x3a   : > { %1068 = vmatpush.bf16.msra.mxu0 %v4042_v31  ;;  %v5858_v57 = vpack.c.bf16 %v322_v53, %v316_v52  ;;  %v323_v58 = vld [vmem:[%s5838_s17 + $0x38] sm:$0xff]  ;;  %v318_v59 = vld [vmem:[%s5838_s17 + $0x10] sm:$0xff]  ;;  %v324_v60 = vld [vmem:[%s5838_s17 + $0x40] sm:$0xff]  ;;  %s4973_s14 = smul.u32 480, %s7202_s19 }
  0x3b   : > { %1102 = vmatpush.bf16.msra.mxu1 %v4106_v35  ;;  %v5863_v62 = vpack.c.bf16 %v323_v58, %v317_v54  ;;  %v5865_v63 = vpack.c.bf16 %v324_v60, %v318_v59  ;;  %v319_v0 = vld [vmem:[%s5838_s17 + $0x18] sm:$0xff]  ;;  %v325_v1 = vld [vmem:[%s5838_s17 + $0x48] sm:$0xff]  ;;  %v4831_v8 = vld [vmem:[%s8828_s1 + $0xd4] sm:$0xf] }
  0x3c   : > { %1136 = vmatpush.bf16.msra.mxu2 %v4170_v36  ;;  %v5873_v5 = vpack.c.bf16 %v325_v1, %v319_v0  ;;  %v4880_v7 = vld [vmem:[%s8828_s1 + $0x254] sm:$0xf0]  ;;  %v4147_v9 = vld [vmem:[%s8828_s1 + $0xd8] sm:$0xf0]  ;;  %v4401_v10 = vld [vmem:[%s8828_s1 + $0x2d0] sm:$0xf] }
  0x3d   : > { %1170 = vmatpush.bf16.msra.mxu3 %v4234_v39  ;;  %1069 = vmatmul.bf16.vlgmr.msra.gmra.mxu0 %v5858_v57  ;;  %v4896_v11 = vld [vmem:[%s8828_s1 + $0x2d4] sm:$0xf0]  ;;  %v4338_v13 = vor.u32 %v4880_v7, %v4337_v4  ;;  %v4150_v14 = vor.u32 %v4831_v8, %v4147_v9  ;;  %v4813_v15 = vld [vmem:[%s8828_s1 + $0x44] sm:$0xf]  ;;  %v4075_v16 = vld [vmem:[%s8828_s1 + $0x48] sm:$0xf0] }
  0x3e   : > { %1197 = vmatpush.bf16.msrb.mxu0 %v4354_v41  ;;  %1103 = vmatmul.bf16.vlgmr.msra.gmra.mxu1 %v5863_v62  ;;  %v4402_v17 = vor.u32 %v4896_v11, %v4401_v10  ;;  %v4329_v18 = vld [vmem:[%s8828_s1 + $0x240] sm:$0xf]  ;;  %v4078_v19 = vor.u32 %v4813_v15, %v4075_v16  ;;  %v4878_v20 = vld [vmem:[%s8828_s1 + $0x244] sm:$0xf0]  ;;  %v334_v22 = vld [vmem:[%s5838_s17 + $0x90] sm:$0xff]  ;;  %s7271_s8 = scalar_lea.vmem [#allocation4], %s4973_s14 }
  0x3f   : > { %1231 = vmatpush.bf16.msrb.mxu1 %v4418_v46  ;;  %1137 = vmatmul.bf16.vlgmr.msra.gmra.mxu2 %v5865_v63  ;;  %v328_v21 = vld [vmem:[%s5838_s17 + $0x60] sm:$0xff]  ;;  %v4330_v23 = vor.u32 %v4878_v20, %v4329_v18  ;;  %v4139_v25 = vld [vmem:[%s8828_s1 + $0xc8] sm:$0xf0]  ;;  %v335_v28 = vld [vmem:[%s5838_s17 + $0x98] sm:$0xff]  ;;  %s7309_s12 = scalar_lea.vmem [#allocation2], %s4973_s14  ;;  %s3897_s20 = sshll.u32 %s7271_s8, 4  ;;  %s8762_s20 = int_to_ptr.vmem [resolvable:$true] %s3897_s20 }
  0x40   : > { %1265 = vmatpush.bf16.msrb.mxu2 %v4102_v40  ;;  %1171 = vmatmul.bf16.vlgmr.msra.gmra.mxu3 %v5873_v5  ;;  %v4829_v24 = vld [vmem:[%s8828_s1 + $0xc4] sm:$0xf]  ;;  %v4393_v26 = vld [vmem:[%s8828_s1 + $0x2c0] sm:$0xf]  ;;  %v329_v27 = vld [vmem:[%s5838_s17 + $0x68] sm:$0xff]  ;;  %v5949_v47 = vpack.c.bf16 %v334_v22, %v328_v21 }
  0x41   : > { %1299 = vmatpush.bf16.msrb.mxu3 %v4166_v42  ;;  %v330_v29 = vld [vmem:[%s5838_s17 + $0x70] sm:$0xff]  ;;  %v336_v30 = vld [vmem:[%s5838_s17 + $0xa0] sm:$0xff]  ;;  %v4142_v31 = vor.u32 %v4829_v24, %v4139_v25  ;;  %v4894_v32 = vld [vmem:[%s8828_s1 + $0x2c4] sm:$0xf0]  ;;  %v5951_v49 = vpack.c.bf16 %v335_v28, %v329_v27 }
  0x42   : > { %1198 = vmatpush.bf16.msrb.mxu0 %v4346_v2  ;;  %v4811_v33 = vld [vmem:[%s8828_s1 + $0x34] sm:$0xf]  ;;  %v4067_v34 = vld [vmem:[%s8828_s1 + $0x38] sm:$0xf0]  ;;  %v4394_v35 = vor.u32 %v4894_v32, %v4393_v26  ;;  %v4321_v36 = vld [vmem:[%s8828_s1 + $0x230] sm:$0xf]  ;;  %v5953_v50 = vpack.c.bf16 %v336_v30, %v330_v29 }
  0x43   : > { %1232 = vmatpush.bf16.msrb.mxu1 %v4410_v6  ;;  %v4876_v37 = vld [vmem:[%s8828_s1 + $0x234] sm:$0xf0]  ;;  %v4827_v38 = vld [vmem:[%s8828_s1 + $0xb4] sm:$0xf]  ;;  %v4070_v39 = vor.u32 %v4811_v33, %v4067_v34  ;;  %v4131_v40 = vld [vmem:[%s8828_s1 + $0xb8] sm:$0xf0] }
  0x44   : > { %1266 = vmatpush.bf16.msrb.mxu2 %v4094_v61  ;;  %v4385_v41 = vld [vmem:[%s8828_s1 + $0x2b0] sm:$0xf]  ;;  %v4892_v42 = vld [vmem:[%s8828_s1 + $0x2b4] sm:$0xf0]  ;;  %v337_v44 = vld [vmem:[%s5838_s17 + $0xa8] sm:$0xff]  ;;  %v4322_v45 = vor.u32 %v4876_v37, %v4321_v36  ;;  %v4134_v46 = vor.u32 %v4827_v38, %v4131_v40 }
  0x45   : > { %1300 = vmatpush.bf16.msrb.mxu3 %v4158_v3  ;;  %v331_v43 = vld [vmem:[%s5838_s17 + $0x78] sm:$0xff]  ;;  %v4386_v48 = vor.u32 %v4892_v42, %v4385_v41  ;;  %v4809_v52 = vld [vmem:[%s8828_s1 + $0x24] sm:$0xf]  ;;  %v4059_v53 = vld [vmem:[%s8828_s1 + $0x28] sm:$0xf0] }
  0x46   : > { %1199 = vmatpush.bf16.msrb.mxu0 %v4338_v13  ;;  %v5955_v51 = vpack.c.bf16 %v337_v44, %v331_v43  ;;  %v4313_v54 = vld [vmem:[%s8828_s1 + $0x220] sm:$0xf]  ;;  %v4874_v55 = vld [vmem:[%s8828_s1 + $0x224] sm:$0xf0]  ;;  %v4062_v56 = vor.u32 %v4809_v52, %v4059_v53  ;;  %v4825_v59 = vld [vmem:[%s8828_s1 + $0xa4] sm:$0xf] }
  0x47   : > { %1233 = vmatpush.bf16.msrb.mxu1 %v4402_v17  ;;  %v4314_v58 = vor.u32 %v4874_v55, %v4313_v54  ;;  %v4123_v60 = vld [vmem:[%s8828_s1 + $0xa8] sm:$0xf0]  ;;  %v4377_v61 = vld [vmem:[%s8828_s1 + $0x2a0] sm:$0xf]  ;;  %v4890_v1 = vld [vmem:[%s8828_s1 + $0x2a4] sm:$0xf0] }
  0x48   : > { %1267 = vmatpush.bf16.msrb.mxu2 %v4086_v12  ;;  %v4126_v0 = vor.u32 %v4825_v59, %v4123_v60  ;;  %v4807_v2 = vld [vmem:[%s8828_s1 + $0x14] sm:$0xf]  ;;  %v4051_v3 = vld [vmem:[%s8828_s1 + $0x18] sm:$0xf0]  ;;  %v4378_v4 = vor.u32 %v4890_v1, %v4377_v61  ;;  %v4305_v7 = vld [vmem:[%s8828_s1 + $0x210] sm:$0xf] }
  0x49   : > { %1301 = vmatpush.bf16.msrb.mxu3 %v4150_v14  ;;  %v4054_v6 = vor.u32 %v4807_v2, %v4051_v3  ;;  %v4872_v8 = vld [vmem:[%s8828_s1 + $0x214] sm:$0xf0]  ;;  %v4823_v9 = vld [vmem:[%s8828_s1 + $0x94] sm:$0xf]  ;;  %v4115_v11 = vld [vmem:[%s8828_s1 + $0x98] sm:$0xf0] }
  0x4a   : > { %1200 = vmatpush.bf16.msrb.mxu0 %v4330_v23  ;;  %v4306_v10 = vor.u32 %v4872_v8, %v4305_v7  ;;  %v4118_v12 = vor.u32 %v4823_v9, %v4115_v11  ;;  %v340_v13 = vld [vmem:[%s5838_s17 + $0xc0] sm:$0xff]  ;;  %v346_v14 = vld [vmem:[%s5838_s17 + $0xf0] sm:$0xff]  ;;  %v341_v15 = vld [vmem:[%s5838_s17 + $0xc8] sm:$0xff] }
  0x4b   : > { %1234 = vmatpush.bf16.msrb.mxu1 %v4394_v35  ;;  %v347_v16 = vld [vmem:[%s5838_s17 + $0xf8] sm:$0xff]  ;;  %v342_v17 = vld [vmem:[%s5838_s17 + $0xd0] sm:$0xff]  ;;  %v348_v18 = vld [vmem:[%s5838_s17 + $0x100] sm:$0xff]  ;;  %v6011_v21 = vpack.c.bf16 %v346_v14, %v340_v13 }
  0x4c   : > { %1268 = vmatpush.bf16.msrb.mxu2 %v4078_v19  ;;  %v343_v19 = vld [vmem:[%s5838_s17 + $0xd8] sm:$0xff]  ;;  %v349_v20 = vld [vmem:[%s5838_s17 + $0x108] sm:$0xff]  ;;  %v6013_v22 = vpack.c.bf16 %v347_v16, %v341_v15  ;;  %v6015_v23 = vpack.c.bf16 %v348_v18, %v342_v17  ;;  %v4369_v25 = vld [vmem:[%s8828_s1 + $0x290] sm:$0xf] }
  0x4d   : > { %1302 = vmatpush.bf16.msrb.mxu3 %v4142_v31  ;;  %1074 = vmatmul.bf16.gmra.mxu0 %v5949_v47  ;;  %v6017_v24 = vpack.c.bf16 %v349_v20, %v343_v19  ;;  %v4888_v26 = vld [vmem:[%s8828_s1 + $0x294] sm:$0xf0]  ;;  %v4805_v27 = vld [vmem:[%s8828_s1 + $0x4] sm:$0xf]  ;;  %v4043_v28 = vld [vmem:[%s8828_s1 + $0x8] sm:$0xf0] }
  0x4e   : > { %1201 = vmatpush.bf16.msrb.mxu0 %v4322_v45  ;;  %1108 = vmatmul.bf16.gmra.mxu1 %v5951_v49  ;;  %v4370_v29 = vor.u32 %v4888_v26, %v4369_v25  ;;  %v4046_v30 = vor.u32 %v4805_v27, %v4043_v28  ;;  %v4297_v31 = vld [vmem:[%s8828_s1 + $0x200] sm:$0xf]  ;;  %v4870_v32 = vld [vmem:[%s8828_s1 + $0x204] sm:$0xf0]  ;;  %v4821_v33 = vld [vmem:[%s8828_s1 + $0x84] sm:$0xf] }
  0x4f   : > { %1235 = vmatpush.bf16.msrb.mxu1 %v4386_v48  ;;  %1142 = vmatmul.bf16.gmra.mxu2 %v5953_v50  ;;  %v4298_v34 = vor.u32 %v4870_v32, %v4297_v31  ;;  %v4107_v35 = vld [vmem:[%s8828_s1 + $0x88] sm:$0xf0]  ;;  %v4361_v36 = vld [vmem:[%s8828_s1 + $0x280] sm:$0xf]  ;;  %v4886_v37 = vld [vmem:[%s8828_s1 + $0x284] sm:$0xf0] }
  0x50   : > { %1269 = vmatpush.bf16.msrb.mxu2 %v4070_v39  ;;  %1176 = vmatmul.bf16.gmra.mxu3 %v5955_v51  ;;  %v4110_v38 = vor.u32 %v4821_v33, %v4107_v35  ;;  %v4362_v39 = vor.u32 %v4886_v37, %v4361_v36  ;;  %v352_v40 = vld [vmem:[%s5838_s17 + $0x120] sm:$0xff]  ;;  %v358_v41 = vld [vmem:[%s5838_s17 + $0x150] sm:$0xff]  ;;  %v353_v42 = vld [vmem:[%s5838_s17 + $0x128] sm:$0xff] }
  0x51   : > { %1303 = vmatpush.bf16.msrb.mxu3 %v4134_v46  ;;  %v359_v43 = vld [vmem:[%s5838_s17 + $0x158] sm:$0xff]  ;;  %v354_v44 = vld [vmem:[%s5838_s17 + $0x130] sm:$0xff]  ;;  %v360_v45 = vld [vmem:[%s5838_s17 + $0x160] sm:$0xff]  ;;  %v6061_v52 = vpack.c.bf16 %v358_v41, %v352_v40 }
  0x52   : > { %1202 = vmatpush.bf16.msrb.mxu0 %v4314_v58  ;;  %v355_v46 = vld [vmem:[%s5838_s17 + $0x138] sm:$0xff]  ;;  %v361_v48 = vld [vmem:[%s5838_s17 + $0x168] sm:$0xff]  ;;  %v6063_v53 = vpack.c.bf16 %v359_v43, %v353_v42  ;;  %v6065_v54 = vpack.c.bf16 %v360_v45, %v354_v44  ;;  %v4851_v59 = vld [vmem:[%s8828_s1 + $0x174] sm:$0xf] }
  0x53   : > { %1236 = vmatpush.bf16.msrb.mxu1 %v4378_v4  ;;  %v6067_v55 = vpack.c.bf16 %v361_v48, %v355_v46  ;;  %v4355_v58 = vld [vmem:[%s8828_s1 + $0x278] sm:$0xf0]  ;;  %v4867_v4 = vld [vmem:[%s8828_s1 + $0x1f4] sm:$0xf]  ;;  %v4881_v7 = vld [vmem:[%s8828_s1 + $0x264] sm:$0xf] }
  0x54   : > { %1270 = vmatpush.bf16.msrb.mxu2 %v4062_v56  ;;  %v4883_v56 = vld [vmem:[%s8828_s1 + $0x274] sm:$0xf]  ;;  %v4227_v61 = vld [vmem:[%s8828_s1 + $0x178] sm:$0xf0]  ;;  %v4347_v9 = vld [vmem:[%s8828_s1 + $0x268] sm:$0xf0] }
  0x55   : > { %1304 = vmatpush.bf16.msrb.mxu3 %v4126_v0  ;;  %v4358_v60 = vor.u32 %v4883_v56, %v4355_v58  ;;  %v4899_v0 = vld [vmem:[%s8828_s1 + $0x2f4] sm:$0xf]  ;;  %v4419_v1 = vld [vmem:[%s8828_s1 + $0x2f8] sm:$0xf0]  ;;  %v4230_v2 = vor.u32 %v4851_v59, %v4227_v61  ;;  %v4219_v11 = vld [vmem:[%s8828_s1 + $0x168] sm:$0xf0] }
  0x56   : > { %1203 = vmatpush.bf16.msrb.mxu0 %v4306_v10  ;;  %v4422_v3 = vor.u32 %v4899_v0, %v4419_v1  ;;  %v4849_v10 = vld [vmem:[%s8828_s1 + $0x164] sm:$0xf]  ;;  %v4411_v15 = vld [vmem:[%s8828_s1 + $0x2e8] sm:$0xf0]  ;;  %v370_v25 = vld [vmem:[%s5838_s17 + $0x1b0] sm:$0xff] }
  0x57   : > { %1237 = vmatpush.bf16.msrb.mxu1 %v4370_v29  ;;  %v4222_v13 = vor.u32 %v4849_v10, %v4219_v11  ;;  %v4897_v14 = vld [vmem:[%s8828_s1 + $0x2e4] sm:$0xf]  ;;  %v4283_v18 = vld [vmem:[%s8828_s1 + $0x1e8] sm:$0xf0]  ;;  %v371_v27 = vld [vmem:[%s5838_s17 + $0x1b8] sm:$0xff] }
  0x58   : > { %1271 = vmatpush.bf16.msrb.mxu2 %v4054_v6  ;;  %v4291_v6 = vld [vmem:[%s8828_s1 + $0x1f8] sm:$0xf0]  ;;  %v4865_v16 = vld [vmem:[%s8828_s1 + $0x1e4] sm:$0xf]  ;;  %v4414_v17 = vor.u32 %v4897_v14, %v4411_v15  ;;  %v365_v26 = vld [vmem:[%s5838_s17 + $0x188] sm:$0xff] }
  0x59   : > { %1305 = vmatpush.bf16.msrb.mxu3 %v4118_v12  ;;  %v4294_v8 = vor.u32 %v4867_v4, %v4291_v6  ;;  %v4350_v12 = vor.u32 %v4881_v7, %v4347_v9  ;;  %v4286_v19 = vor.u32 %v4865_v16, %v4283_v18  ;;  %v364_v20 = vld [vmem:[%s5838_s17 + $0x180] sm:$0xff]  ;;  %v366_v28 = vld [vmem:[%s5838_s17 + $0x190] sm:$0xff]  ;;  %v373_v31 = vld [vmem:[%s5838_s17 + $0x1c8] sm:$0xff]  ;;  %v6131_v33 = vpack.c.bf16 %v371_v27, %v365_v26 }
  0x5a   : > { %1204 = vmatpush.bf16.msrb.mxu0 %v4298_v34  ;;  %v372_v29 = vld [vmem:[%s5838_s17 + $0x1c0] sm:$0xff]  ;;  %v6129_v32 = vpack.c.bf16 %v370_v25, %v364_v20  ;;  %v4879_v36 = vld [vmem:[%s8828_s1 + $0x254] sm:$0xf]  ;;  %v4339_v37 = vld [vmem:[%s8828_s1 + $0x258] sm:$0xf0] }
  0x5b   : > { %1238 = vmatpush.bf16.msrb.mxu1 %v4362_v39  ;;  %v6133_v34 = vpack.c.bf16 %v372_v29, %v366_v28  ;;  %v4342_v39 = vor.u32 %v4879_v36, %v4339_v37  ;;  %v4211_v40 = vld [vmem:[%s8828_s1 + $0x158] sm:$0xf0]  ;;  %v4895_v41 = vld [vmem:[%s8828_s1 + $0x2d4] sm:$0xf]  ;;  %v4877_v48 = vld [vmem:[%s8828_s1 + $0x244] sm:$0xf] }
  0x5c   : > { %1272 = vmatpush.bf16.msrb.mxu2 %v4046_v30  ;;  %v367_v30 = vld [vmem:[%s5838_s17 + $0x198] sm:$0xff]  ;;  %v4863_v45 = vld [vmem:[%s8828_s1 + $0x1d4] sm:$0xf]  ;;  %v4331_v58 = vld [vmem:[%s8828_s1 + $0x248] sm:$0xf0] }
  0x5d   : > { %1079 = vmatmul.bf16.gmra.mxu0 %v6011_v21  ;;  %1306 = vmatpush.bf16.msrb.mxu3 %v4110_v38  ;;  %v6135_v35 = vpack.c.bf16 %v373_v31, %v367_v30  ;;  %v4847_v38 = vld [vmem:[%s8828_s1 + $0x154] sm:$0xf]  ;;  %v4403_v42 = vld [vmem:[%s8828_s1 + $0x2d8] sm:$0xf0]  ;;  %v4334_v59 = vor.u32 %v4877_v48, %v4331_v58  ;;  %v321_v0 = vld [vmem:[%s5838_s17 + $0x28] sm:$0xff] }
  0x5e   : > { %1113 = vmatmul.bf16.gmra.mxu1 %v6013_v22  ;;  %1333 = vmatpush.bf16.msra.mxu0 %v4230_v2  ;;  %v4214_v43 = vor.u32 %v4847_v38, %v4211_v40  ;;  %v4406_v44 = vor.u32 %v4895_v41, %v4403_v42  ;;  %v4275_v46 = vld [vmem:[%s8828_s1 + $0x1d8] sm:$0xf0]  ;;  %v326_v61 = vld [vmem:[%s5838_s17 + $0x50] sm:$0xff]  ;;  %v4845_v4 = vld [vmem:[%s8828_s1 + $0x144] sm:$0xf] }
  0x5f   : > { %1147 = vmatmul.bf16.gmra.mxu2 %v6015_v23  ;;  %1367 = vmatpush.bf16.msra.mxu1 %v4294_v8  ;;  %v4278_v56 = vor.u32 %v4863_v45, %v4275_v46  ;;  %v327_v1 = vld [vmem:[%s5838_s17 + $0x58] sm:$0xff]  ;;  %v4203_v6 = vld [vmem:[%s8828_s1 + $0x148] sm:$0xf0]  ;;  %v4893_v7 = vld [vmem:[%s8828_s1 + $0x2c4] sm:$0xf] }
  0x60   : > { %1181 = vmatmul.bf16.gmra.mxu3 %v6017_v24  ;;  %1401 = vmatpush.bf16.msra.mxu2 %v4358_v60  ;;  %v320_v60 = vld [vmem:[%s5838_s17 + $0x20] sm:$0xff]  ;;  %v4206_v8 = vor.u32 %v4845_v4, %v4203_v6  ;;  %v4395_v9 = vld [vmem:[%s8828_s1 + $0x2c8] sm:$0xf0]  ;;  %v4843_v14 = vld [vmem:[%s8828_s1 + $0x134] sm:$0xf] }
  0x61   : > { %1435 = vmatpush.bf16.msra.mxu3 %v4422_v3  ;;  %v6175_v2 = vpack.c.bf16 %v326_v61, %v320_v60  ;;  %v6177_v3 = vpack.c.bf16 %v327_v1, %v321_v0  ;;  %v4398_v10 = vor.u32 %v4893_v7, %v4395_v9  ;;  %v4195_v16 = vld [vmem:[%s8828_s1 + $0x138] sm:$0xf0]  ;;  %v4859_v25 = vld [vmem:[%s8828_s1 + $0x1b4] sm:$0xf]  ;;  %v332_v28 = vld [vmem:[%s5838_s17 + $0x80] sm:$0xff] }
  0x62   : > { %1334 = vmatpush.bf16.msra.mxu0 %v4222_v13  ;;  %v4323_v13 = vld [vmem:[%s8828_s1 + $0x238] sm:$0xf0]  ;;  %v338_v29 = vld [vmem:[%s5838_s17 + $0xb0] sm:$0xff]  ;;  %v333_v30 = vld [vmem:[%s5838_s17 + $0x88] sm:$0xff] }
  0x63   : > { %1368 = vmatpush.bf16.msra.mxu1 %v4286_v19  ;;  %v4387_v18 = vld [vmem:[%s8828_s1 + $0x2b8] sm:$0xf0]  ;;  %v4198_v19 = vor.u32 %v4843_v14, %v4195_v16  ;;  %v6229_v36 = vpack.c.bf16 %v338_v29, %v332_v28  ;;  %v4873_v38 = vld [vmem:[%s8828_s1 + $0x224] sm:$0xf]  ;;  %v4251_v45 = vld [vmem:[%s8828_s1 + $0x1a8] sm:$0xf0] }
  0x64   : > { %1402 = vmatpush.bf16.msra.mxu2 %v4350_v12  ;;  %v4875_v12 = vld [vmem:[%s8828_s1 + $0x234] sm:$0xf]  ;;  %v4259_v26 = vld [vmem:[%s8828_s1 + $0x1b8] sm:$0xf0]  ;;  %v4841_v41 = vld [vmem:[%s8828_s1 + $0x124] sm:$0xf] }
  0x65   : > { %1436 = vmatpush.bf16.msra.mxu3 %v4414_v17  ;;  %v4326_v15 = vor.u32 %v4875_v12, %v4323_v13  ;;  %v4891_v17 = vld [vmem:[%s8828_s1 + $0x2b4] sm:$0xf]  ;;  %v4262_v27 = vor.u32 %v4859_v25, %v4259_v26  ;;  %v339_v31 = vld [vmem:[%s5838_s17 + $0xb8] sm:$0xff]  ;;  %v344_v46 = vld [vmem:[%s5838_s17 + $0xe0] sm:$0xff] }
  0x66   : > { %1335 = vmatpush.bf16.msra.mxu0 %v4214_v43  ;;  %v4390_v20 = vor.u32 %v4891_v17, %v4387_v18  ;;  %v6231_v37 = vpack.c.bf16 %v339_v31, %v333_v30  ;;  %v4379_v43 = vld [vmem:[%s8828_s1 + $0x2a8] sm:$0xf0]  ;;  %v350_v48 = vld [vmem:[%s5838_s17 + $0x110] sm:$0xff]  ;;  %v351_v60 = vld [vmem:[%s5838_s17 + $0x118] sm:$0xff] }
  0x67   : > { %1369 = vmatpush.bf16.msra.mxu1 %v4278_v56  ;;  %v6265_v61 = vpack.c.bf16 %v350_v48, %v344_v46  ;;  %v4871_v1 = vld [vmem:[%s8828_s1 + $0x214] sm:$0xf]  ;;  %v4307_v4 = vld [vmem:[%s8828_s1 + $0x218] sm:$0xf0]  ;;  %v6300_v13 = vld [vmem:[%s8829_s2] sm:$0x3] }
  0x68   : > { %1403 = vmatpush.bf16.msra.mxu2 %v4342_v39  ;;  %v4315_v39 = vld [vmem:[%s8828_s1 + $0x228] sm:$0xf0]  ;;  %v4310_v6 = vor.u32 %v4871_v1, %v4307_v4  ;;  %v4839_v7 = vld [vmem:[%s8828_s1 + $0x114] sm:$0xf]  ;;  %v4243_v12 = vld [vmem:[%s8828_s1 + $0x198] sm:$0xf0] }
  0x69   : > { %1437 = vmatpush.bf16.msra.mxu3 %v4406_v44  ;;  %v4318_v40 = vor.u32 %v4873_v38, %v4315_v39  ;;  %v4857_v44 = vld [vmem:[%s8828_s1 + $0x1a4] sm:$0xf]  ;;  %v4887_v9 = vld [vmem:[%s8828_s1 + $0x294] sm:$0xf]  ;;  %v4299_v17 = vld [vmem:[%s8828_s1 + $0x208] sm:$0xf0] }
  0x6a   : > { %1336 = vmatpush.bf16.msra.mxu0 %v4206_v8  ;;  %v4254_v58 = vor.u32 %v4857_v44, %v4251_v45  ;;  %v4179_v8 = vld [vmem:[%s8828_s1 + $0x118] sm:$0xf0]  ;;  %v362_v14 = vld [vmem:[%s5838_s17 + $0x170] sm:$0xff]  ;;  %v4869_v16 = vld [vmem:[%s8828_s1 + $0x204] sm:$0xf] }
  0x6b   : > { %v4837_v18 = vld [vmem:[%s8828_s1 + $0x104] sm:$0xf]  ;;  %v4363_v26 = vld [vmem:[%s8828_s1 + $0x288] sm:$0xf0]  ;;  %v363_v28 = vld [vmem:[%s5838_s17 + $0x178] sm:$0xff] }
  0x6c   : > { %1404 = vmatpush.bf16.msra.mxu2 %v4334_v59  ;;  %v345_v59 = vld [vmem:[%s5838_s17 + $0xe8] sm:$0xff]  ;;  %v4885_v25 = vld [vmem:[%s8828_s1 + $0x284] sm:$0xf]  ;;  %v374_v4 = vld [vmem:[%s5838_s17 + $0x1d0] sm:$0xff] }
  0x6d   : > { %1084 = vmatmul.bf16.gmra.mxu0 %v6061_v52  ;;  %1438 = vmatpush.bf16.msra.mxu3 %v4398_v10  ;;  %v6267_v0 = vpack.c.bf16 %v351_v60, %v345_v59  ;;  %v4366_v30 = vor.u32 %v4885_v25, %v4363_v26  ;;  %v4853_v31 = vld [vmem:[%s8828_s1 + $0x184] sm:$0xf]  ;;  %v4235_v38 = vld [vmem:[%s8828_s1 + $0x188] sm:$0xf0] }
  0x6e   : > { %1118 = vmatmul.bf16.gmra.mxu1 %v6063_v53  ;;  %1337 = vmatpush.bf16.msra.mxu0 %v4198_v19  ;;  %v4302_v19 = vor.u32 %v4869_v16, %v4299_v17  ;;  %v4238_v39 = vor.u32 %v4853_v31, %v4235_v38  ;;  %v368_v1 = vld [vmem:[%s5838_s17 + $0x1a0] sm:$0xff] }
  0x6f   : > { %1152 = vmatmul.bf16.gmra.mxu2 %v6065_v54 }
  0x70   : > { %1186 = vmatmul.bf16.gmra.mxu3 %v6067_v55  ;;  %1405 = vmatpush.bf16.msra.mxu2 %v4326_v15  ;;  %v357_v15 = vld [vmem:[%s5838_s17 + $0x148] sm:$0xff] }
  0x71   : > { %1439 = vmatpush.bf16.msra.mxu3 %v4390_v20  ;;  %v4171_v20 = vld [vmem:[%s8828_s1 + $0x108] sm:$0xf0] }
  0x72   : > { %v4174_v29 = vor.u32 %v4837_v18, %v4171_v20 }
  0x74   : > { %1406 = vmatpush.bf16.msra.mxu2 %v4318_v40 }
  0x78   : > { %1407 = vmatpush.bf16.msra.mxu2 %v4310_v6  ;;  %v369_v6 = vld [vmem:[%s5838_s17 + $0x1a8] sm:$0xff] }
  0x7c   : > { %1408 = vmatpush.bf16.msra.mxu2 %v4302_v19 }
  0x7d   : > { %1089 = vmatmul.bf16.gmra.mxu0 %v6129_v32 }
  0x7e   : > { %1123 = vmatmul.bf16.gmra.mxu1 %v6131_v33 }
  0x7f   : > { %1157 = vmatmul.bf16.gmra.mxu2 %v6133_v34 }
  0x80   : > { %1191 = vmatmul.bf16.gmra.mxu3 %v6135_v35 }
  0x8d   : > { %1205 = vmatmul.bf16.vlgmr.msrb.gmra.mxu0 %v6175_v2 }
  0x8e   : > { %1239 = vmatmul.bf16.vlgmr.msrb.gmra.mxu1 %v6177_v3 }
  0x8f   : > { %1273 = vmatmul.bf16.vlgmr.msrb.gmra.mxu2 %v5858_v57  ;;  %v4861_v57 = vld [vmem:[%s8828_s1 + $0x1c4] sm:$0xf] }
  0x90   : > { %1307 = vmatmul.bf16.vlgmr.msrb.gmra.mxu3 %v5863_v62  ;;  %v4267_v62 = vld [vmem:[%s8828_s1 + $0x1c8] sm:$0xf0] }
  0x91   : > { %v4270_v11 = vor.u32 %v4861_v57, %v4267_v62  ;;  %v4182_v57 = vor.u32 %v4839_v7, %v4179_v8  ;;  %v4371_v62 = vld [vmem:[%s8828_s1 + $0x298] sm:$0xf0] }
  0x92   : > { %v4374_v10 = vor.u32 %v4887_v9, %v4371_v62  ;;  %v375_v7 = vld [vmem:[%s5838_s17 + $0x1d8] sm:$0xff]  ;;  %v6349_v9 = vpack.c.bf16 %v374_v4, %v368_v1  ;;  %v4946_v1 = vld [vmem:[%s8830_s3 + $0x164] sm:$0xf0]  ;;  %v4943_v4 = vld [vmem:[%s8830_s3 + $0x154] sm:$0xf] }
  0x93   : > { %1370 = vmatpush.bf16.msra.mxu1 %v4270_v11  ;;  %v4855_v11 = vld [vmem:[%s8828_s1 + $0x194] sm:$0xf]  ;;  %v6351_v62 = vpack.c.bf16 %v375_v7, %v369_v6 }
  0x97   : > { %1371 = vmatpush.bf16.msra.mxu1 %v4262_v27  ;;  %v6324_v27 = vperm.slane %v6300_v13, 0 }
  0x9b   : > { %1372 = vmatpush.bf16.msra.mxu1 %v4254_v58 }
  0x9d   : > { %1210 = vmatmul.bf16.gmra.mxu0 %v6229_v36 }
  0x9e   : > { %1244 = vmatmul.bf16.gmra.mxu1 %v6231_v37 }
  0x9f   : > { %1278 = vmatmul.bf16.gmra.mxu2 %v5949_v47  ;;  %v4187_v47 = vld [vmem:[%s8828_s1 + $0x128] sm:$0xf0] }
  0xa0   : > { %1312 = vmatmul.bf16.gmra.mxu3 %v5951_v49  ;;  %v4889_v49 = vld [vmem:[%s8828_s1 + $0x2a4] sm:$0xf]  ;;  %v4190_v42 = vor.u32 %v4841_v41, %v4187_v47  ;;  %v6335_v47 = vpack.c.bf16 %v363_v28, %v357_v15 }
  0xa1   : > { %v4382_v56 = vor.u32 %v4889_v49, %v4379_v43 }
  0xa2   : > { %1338 = vmatpush.bf16.msra.mxu0 %v4190_v42 }
  0xa3   : > { %1440 = vmatpush.bf16.msra.mxu3 %v4382_v56 }
  0xa6   : > { %1339 = vmatpush.bf16.msra.mxu0 %v4182_v57 }
  0xa7   : > { %1441 = vmatpush.bf16.msra.mxu3 %v4374_v10 }
  0xaa   : > { %1340 = vmatpush.bf16.msra.mxu0 %v4174_v29 }
  0xab   : > { %1442 = vmatpush.bf16.msra.mxu3 %v4366_v30 }
  0xad   : > { %1215 = vmatmul.bf16.gmra.mxu0 %v6265_v61 }
  0xae   : > { %1249 = vmatmul.bf16.gmra.mxu1 %v6267_v0 }
  0xaf   : > { %1283 = vmatmul.bf16.gmra.mxu2 %v6011_v21  ;;  %v4246_v21 = vor.u32 %v4855_v11, %v4243_v12 }
  0xb0   : > { %1317 = vmatmul.bf16.gmra.mxu3 %v6013_v22  ;;  %v356_v22 = vld [vmem:[%s5838_s17 + $0x140] sm:$0xff] }
  0xb1   : > { %1373 = vmatpush.bf16.msra.mxu1 %v4246_v21  ;;  %v6333_v40 = vpack.c.bf16 %v362_v14, %v356_v22 }
  0xb5   : > { %1374 = vmatpush.bf16.msra.mxu1 %v4238_v39 }
  0xba   : > { %v1070_v41 = vpop.f32.mrf.mxu0 }
  0xbb   : > { %v1071_v49 = vadd.f32 %v1070_v41, %v6324_v27  ;;  %v1104_v42 = vpop.f32.mrf.mxu1 }
  0xbd   : > { %v1105_v43 = vadd.f32 %v1104_v42, %v1071_v49  ;;  %1220 = vmatmul.bf16.gmra.mxu0 %v6333_v40 }
  0xbe   : > { %1254 = vmatmul.bf16.gmra.mxu1 %v6335_v47 }
  0xbf   : > { %1288 = vmatmul.bf16.gmra.mxu2 %v6061_v52 }
  0xc0   : > { %1322 = vmatmul.bf16.gmra.mxu3 %v6063_v53 }
  0xc2   : > { %v1138_v44 = vpop.f32.mrf.mxu2  ;;  %v1072_v48 = vpop.f32.mrf.mxu0 }
  0xc3   : > { %v1139_v45 = vadd.f32 %v1138_v44, %v1105_v43  ;;  %v1172_v46 = vpop.f32.mrf.mxu3  ;;  %v1073_v56 = vadd.f32 %v1072_v48, %v6324_v27  ;;  %v1106_v58 = vpop.f32.mrf.mxu1 }
  0xc5   : > { %v6343_v59 = vadd.f32 %v1172_v46, %v1139_v45  ;;  %v1107_v60 = vadd.f32 %v1106_v58, %v1073_v56 }
  0xca   : > { %v1140_v8 = vpop.f32.mrf.mxu2  ;;  %v1075_v53 = vpop.f32.mrf.mxu0 }
  0xcb   : > { %v1141_v52 = vadd.f32 %v1140_v8, %v1107_v60  ;;  %v1174_v57 = vpop.f32.mrf.mxu3  ;;  %v1076_v10 = vadd.f32 %v1075_v53, %v6324_v27  ;;  %v1109_v11 = vpop.f32.mrf.mxu1  ;;  %v4593_v60 = vld [vmem:[%s8830_s3 + $0x150] sm:$0xf] }
  0xcc   : > { %v4594_v6 = vor.u32 %v4946_v1, %v4593_v60  ;;  %v4473_v1 = vld [vmem:[%s8830_s3 + $0x60] sm:$0xf] }
  0xcd   : > { %v6354_v12 = vadd.f32 %v1174_v57, %v1141_v52  ;;  %v1110_v21 = vadd.f32 %v1109_v11, %v1076_v10  ;;  %1225 = vmatmul.bf16.gmra.mxu0 %v6349_v9  ;;  %v4569_v52 = vld [vmem:[%s8830_s3 + $0x120] sm:$0xf]  ;;  %v4571_v11 = vld [vmem:[%s8830_s3 + $0x138] sm:$0xf0] }
  0xce   : > { %1259 = vmatmul.bf16.gmra.mxu1 %v6351_v62  ;;  %1888 = vmatpush.bf16.msrb.mxu0 %v4594_v6 }
  0xcf   : > { %1293 = vmatmul.bf16.gmra.mxu2 %v6129_v32 }
  0xd0   : > { %1327 = vmatmul.bf16.gmra.mxu3 %v6131_v33 }
  0xd2   : > { %v1143_v22 = vpop.f32.mrf.mxu2  ;;  %v1077_v16 = vpop.f32.mrf.mxu0 }
  0xd3   : > { %v1144_v14 = vadd.f32 %v1143_v22, %v1110_v21  ;;  %v1177_v15 = vpop.f32.mrf.mxu3  ;;  %v1078_v17 = vadd.f32 %v1077_v16, %v6324_v27  ;;  %v1111_v18 = vpop.f32.mrf.mxu1  ;;  %v4545_v16 = vld [vmem:[%s8830_s3 + $0xf0] sm:$0xf] }
  0xd5   : > { %v6361_v19 = vadd.f32 %v1177_v15, %v1144_v14  ;;  %v1112_v20 = vadd.f32 %v1111_v18, %v1078_v17  ;;  %v4934_v17 = vld [vmem:[%s8830_s3 + $0x104] sm:$0xf0]  ;;  %v4931_v18 = vld [vmem:[%s8830_s3 + $0xf4] sm:$0xf] }
  0xda   : > { %v1145_v25 = vpop.f32.mrf.mxu2  ;;  %v1080_v29 = vpop.f32.mrf.mxu0 }
  0xdb   : > { %v1146_v26 = vadd.f32 %v1145_v25, %v1112_v20  ;;  %v1179_v28 = vpop.f32.mrf.mxu3  ;;  %v1081_v30 = vadd.f32 %v1080_v29, %v6324_v27  ;;  %v1114_v31 = vpop.f32.mrf.mxu1  ;;  %v4546_v20 = vor.u32 %v4934_v17, %v4545_v16  ;;  %v4547_v25 = vld [vmem:[%s8830_s3 + $0x108] sm:$0xf0] }
  0xdd   : > { %v6364_v32 = vadd.f32 %v1179_v28, %v1146_v26  ;;  %v1115_v33 = vadd.f32 %v1114_v31, %v1081_v30  ;;  %1341 = vmatmul.bf16.vlgmr.msra.gmra.mxu0 %v5865_v63  ;;  %v4550_v26 = vor.u32 %v4931_v18, %v4547_v25  ;;  %v4521_v30 = vld [vmem:[%s8830_s3 + $0xc0] sm:$0xf]  ;;  %v4928_v31 = vld [vmem:[%s8830_s3 + $0xd4] sm:$0xf0]  ;;  %v4689_v18 = vld [vmem:[%s8830_s3 + $0x210] sm:$0xf] }
  0xde   : > { %1375 = vmatmul.bf16.vlgmr.msra.gmra.mxu1 %v5873_v5  ;;  %v4425_v25 = vld [vmem:[%s8830_s3] sm:$0xf] }
  0xdf   : > { %1409 = vmatmul.bf16.vlgmr.msra.gmra.mxu2 %v6175_v2 }
  0xe0   : > { %1443 = vmatmul.bf16.vlgmr.msra.gmra.mxu3 %v6177_v3 }
  0xe2   : > { %v1148_v38 = vpop.f32.mrf.mxu2  ;;  %v1082_v49 = vpop.f32.mrf.mxu0 }
  0xe3   : > { %v1149_v39 = vadd.f32 %v1148_v38, %v1115_v33  ;;  %v1182_v41 = vpop.f32.mrf.mxu3  ;;  %v1083_v42 = vadd.f32 %v1082_v49, %v6324_v27  ;;  %v1116_v43 = vpop.f32.mrf.mxu1  ;;  %v4925_v33 = vld [vmem:[%s8830_s3 + $0xc4] sm:$0xf]  ;;  %v4522_v49 = vor.u32 %v4928_v31, %v4521_v30  ;;  %v4904_v31 = vld [vmem:[%s8830_s3 + $0x14] sm:$0xf0] }
  0xe5   : > { %v6371_v44 = vadd.f32 %v1182_v41, %v1149_v39  ;;  %v1117_v45 = vadd.f32 %v1116_v43, %v1083_v42  ;;  %v4523_v42 = vld [vmem:[%s8830_s3 + $0xd8] sm:$0xf0] }
  0xea   : > { %v1150_v46 = vpop.f32.mrf.mxu2  ;;  %v1085_v63 = vpop.f32.mrf.mxu0 }
  0xeb   : > { %v1151_v48 = vadd.f32 %v1150_v46, %v1117_v45  ;;  %v1184_v56 = vpop.f32.mrf.mxu3  ;;  %v1086_v5 = vadd.f32 %v1085_v63, %v6324_v27  ;;  %v1119_v58 = vpop.f32.mrf.mxu1  ;;  %v4526_v46 = vor.u32 %v4925_v33, %v4523_v42  ;;  %v4922_v63 = vld [vmem:[%s8830_s3 + $0xa4] sm:$0xf0]  ;;  %v4901_v33 = vld [vmem:[%s8830_s3 + $0x4] sm:$0xf]  ;;  %v4426_v42 = vor.u32 %v4904_v31, %v4425_v25 }
  0xed   : > { %v6374_v2 = vadd.f32 %v1184_v56, %v1151_v48  ;;  %v1120_v3 = vadd.f32 %v1119_v58, %v1086_v5  ;;  %1346 = vmatmul.bf16.gmra.mxu0 %v5953_v50  ;;  %v4595_v50 = vld [vmem:[%s8830_s3 + $0x168] sm:$0xf0]  ;;  %v4497_v56 = vld [vmem:[%s8830_s3 + $0x90] sm:$0xf]  ;;  %v4919_v5 = vld [vmem:[%s8830_s3 + $0x94] sm:$0xf] }
  0xee   : > { %1380 = vmatmul.bf16.gmra.mxu1 %v5955_v51  ;;  %v4598_v7 = vor.u32 %v4943_v4, %v4595_v50  ;;  %v4940_v51 = vld [vmem:[%s8830_s3 + $0x134] sm:$0xf0]  ;;  %v4498_v58 = vor.u32 %v4922_v63, %v4497_v56 }
  0xef   : > { %1414 = vmatmul.bf16.gmra.mxu2 %v6229_v36  ;;  %v4937_v36 = vld [vmem:[%s8830_s3 + $0x124] sm:$0xf] }
  0xf0   : > { %1448 = vmatmul.bf16.gmra.mxu3 %v6231_v37  ;;  %1956 = vmatpush.bf16.msrb.mxu2 %v4598_v7  ;;  %v4570_v37 = vor.u32 %v4940_v51, %v4569_v52  ;;  %v4574_v22 = vor.u32 %v4937_v36, %v4571_v11  ;;  %v4475_v7 = vld [vmem:[%s8830_s3 + $0x78] sm:$0xf0]  ;;  %v4907_v11 = vld [vmem:[%s8830_s3 + $0x34] sm:$0xf] }
  0xf2   : > { %v1153_v8 = vpop.f32.mrf.mxu2  ;;  %v1087_v10 = vpop.f32.mrf.mxu0  ;;  %1889 = vmatpush.bf16.msrb.mxu0 %v4570_v37  ;;  %v4449_v37 = vld [vmem:[%s8830_s3 + $0x30] sm:$0xf] }
  0xf3   : > { %v1154_v57 = vadd.f32 %v1153_v8, %v1120_v3  ;;  %v1187_v53 = vpop.f32.mrf.mxu3  ;;  %v1121_v21 = vpop.f32.mrf.mxu1  ;;  %v1088_v15 = vadd.f32 %v1087_v10, %v6324_v27 }
  0xf4   : > { %1957 = vmatpush.bf16.msrb.mxu2 %v4574_v22  ;;  %v4451_v22 = vld [vmem:[%s8830_s3 + $0x48] sm:$0xf0] }
  0xf5   : > { %v6404_v14 = vadd.f32 %v1187_v53, %v1154_v57  ;;  %v1122_v28 = vadd.f32 %v1121_v21, %v1088_v15  ;;  %v4967_v57 = vld [vmem:[%s8830_s3 + $0x214] sm:$0xf]  ;;  %v4691_v53 = vld [vmem:[%s8830_s3 + $0x228] sm:$0xf0]  ;;  %v4454_v15 = vor.u32 %v4907_v11, %v4451_v22 }
  0xf6   : > { %1890 = vmatpush.bf16.msrb.mxu0 %v4546_v20  ;;  %v4694_v10 = vor.u32 %v4967_v57, %v4691_v53  ;;  %v4970_v20 = vld [vmem:[%s8830_s3 + $0x224] sm:$0xf0] }
  0xf7   : > { %v4690_v30 = vor.u32 %v4970_v20, %v4689_v18  ;;  %v4641_v18 = vld [vmem:[%s8830_s3 + $0x1b0] sm:$0xf]  ;;  %v4958_v20 = vld [vmem:[%s8830_s3 + $0x1c4] sm:$0xf0] }
  0xf8   : > { %1958 = vmatpush.bf16.msrb.mxu2 %v4550_v26  ;;  %1994 = vmatpush.bf16.msrb.mxu3 %v4694_v10  ;;  %v4642_v25 = vor.u32 %v4958_v20, %v4641_v18 }
  0xf9   : > { %1926 = vmatpush.bf16.msrb.mxu1 %v4690_v30 }
  0xfa   : > { %v1155_v29 = vpop.f32.mrf.mxu2  ;;  %v1090_v41 = vpop.f32.mrf.mxu0  ;;  %1891 = vmatpush.bf16.msrb.mxu0 %v4522_v49 }
  0xfb   : > { %v6428_v38 = vadd.f32 %v1155_v29, %v1122_v28  ;;  %v6430_v39 = vpop.f32.mrf.mxu3  ;;  %v1091_v43 = vadd.f32 %v1090_v41, %v6324_v27  ;;  %v1124_v45 = vpop.f32.mrf.mxu1  ;;  %v4427_v41 = vld [vmem:[%s8830_s3 + $0x18] sm:$0xf0] }
  0xfc   : > { %1959 = vmatpush.bf16.msrb.mxu2 %v4526_v46 }
  0xfd   : > { %v1125_v48 = vadd.f32 %v1124_v45, %v1091_v43  ;;  %1351 = vmatmul.bf16.gmra.mxu0 %v6015_v23  ;;  %v4499_v23 = vld [vmem:[%s8830_s3 + $0xa8] sm:$0xf0]  ;;  %v4430_v43 = vor.u32 %v4901_v33, %v4427_v41  ;;  %v6511_v45 = vperm.slane %v6300_v13, 1 }
  0xfe   : > { %1385 = vmatmul.bf16.gmra.mxu1 %v6017_v24  ;;  %v4502_v3 = vor.u32 %v4919_v5, %v4499_v23  ;;  %1892 = vmatpush.bf16.msrb.mxu0 %v4498_v58  ;;  %v4916_v24 = vld [vmem:[%s8830_s3 + $0x74] sm:$0xf0] }
  0xff   : > { %1419 = vmatmul.bf16.gmra.mxu2 %v6265_v61  ;;  %v4913_v61 = vld [vmem:[%s8830_s3 + $0x64] sm:$0xf] }
 0x100   : > { %1453 = vmatmul.bf16.gmra.mxu3 %v6267_v0  ;;  %1960 = vmatpush.bf16.msrb.mxu2 %v4502_v3  ;;  %v4474_v0 = vor.u32 %v4916_v24, %v4473_v1  ;;  %v4478_v51 = vor.u32 %v4913_v61, %v4475_v7  ;;  %v4667_v1 = vld [vmem:[%s8830_s3 + $0x1f8] sm:$0xf0] }
 0x102   : > { %v1158_v60 = vpop.f32.mrf.mxu2  ;;  %v1092_v50 = vpop.f32.mrf.mxu0  ;;  %1893 = vmatpush.bf16.msrb.mxu0 %v4474_v0  ;;  %v4964_v0 = vld [vmem:[%s8830_s3 + $0x1f4] sm:$0xf0] }
 0x103   : > { %v1159_v4 = vadd.f32 %v1158_v60, %v1125_v48  ;;  %v1192_v6 = vpop.f32.mrf.mxu3  ;;  %v1093_v8 = vadd.f32 %v1092_v50, %v6324_v27  ;;  %v1126_v52 = vpop.f32.mrf.mxu1  ;;  %v4910_v27 = vld [vmem:[%s8830_s3 + $0x44] sm:$0xf0]  ;;  %v4665_v50 = vld [vmem:[%s8830_s3 + $0x1e0] sm:$0xf] }
 0x104   : > { %1961 = vmatpush.bf16.msrb.mxu2 %v4478_v51  ;;  %v4450_v21 = vor.u32 %v4910_v27, %v4449_v37  ;;  %v4666_v7 = vor.u32 %v4964_v0, %v4665_v50  ;;  %v4577_v0 = vld [vmem:[%s8830_s3 + $0x128] sm:$0xf] }
 0x105   : > { %v6465_v36 = vadd.f32 %v1192_v6, %v1159_v4  ;;  %v1127_v16 = vadd.f32 %v1126_v52, %v1093_v8 }
 0x106   : > { %1894 = vmatpush.bf16.msrb.mxu0 %v4450_v21  ;;  %1927 = vmatpush.bf16.msrb.mxu1 %v4666_v7  ;;  %v4941_v7 = vld [vmem:[%s8830_s3 + $0x13c] sm:$0xf0] }
 0x108   : > { %1962 = vmatpush.bf16.msrb.mxu2 %v4454_v15  ;;  %v4955_v15 = vld [vmem:[%s8830_s3 + $0x1b4] sm:$0xf] }
 0x10a   : > { %v1160_v17 = vpop.f32.mrf.mxu2  ;;  %v1206_v29 = vpop.f32.mrf.mxu0  ;;  %1895 = vmatpush.bf16.msrb.mxu0 %v4426_v42  ;;  %1928 = vmatpush.bf16.msrb.mxu1 %v4642_v25 }
 0x10b   : > { %v6494_v26 = vadd.f32 %v1160_v17, %v1127_v16  ;;  %v6496_v28 = vpop.f32.mrf.mxu3  ;;  %v1240_v49 = vpop.f32.mrf.mxu1  ;;  %v1207_v46 = vadd.f32 %v1206_v29, %v6343_v59 }
 0x10c   : > { %1963 = vmatpush.bf16.msrb.mxu2 %v4430_v43 }
 0x10d   : > { %1356 = vmatmul.bf16.gmra.mxu0 %v6065_v54  ;;  %v1241_v58 = vadd.f32 %v1240_v49, %v1207_v46 }
 0x10e   : > { %1390 = vmatmul.bf16.gmra.mxu1 %v6067_v55 }
 0x10f   : > { %1424 = vmatmul.bf16.gmra.mxu2 %v6333_v40  ;;  %v1469_v3 = vmax.f32 %v1241_v58, 0.0 }
 0x110   : > { %1458 = vmatmul.bf16.gmra.mxu3 %v6335_v47  ;;  %v4961_v47 = vld [vmem:[%s8830_s3 + $0x1e4] sm:$0xf] }
 0x111   : > { %v4670_v61 = vor.u32 %v4961_v47, %v4667_v1  ;;  %v4603_v1 = vld [vmem:[%s8830_s3 + $0x170] sm:$0xf0] }
 0x112   : > { %v1274_v48 = vpop.f32.mrf.mxu2  ;;  %v1208_v5 = vpop.f32.mrf.mxu0 }
 0x113   : > { %v1275_v56 = vadd.f32 %v1274_v48, %v6511_v45  ;;  %v1308_v63 = vpop.f32.mrf.mxu3  ;;  %v1209_v54 = vadd.f32 %v1208_v5, %v6354_v12  ;;  %v1242_v23 = vpop.f32.mrf.mxu1  ;;  %1995 = vmatpush.bf16.msrb.mxu3 %v4670_v61 }
 0x115   : > { %v6517_v55 = vadd.f32 %v1308_v63, %v1275_v56  ;;  %v1243_v40 = vadd.f32 %v1242_v23, %v1209_v54  ;;  %v4947_v23 = vld [vmem:[%s8830_s3 + $0x16c] sm:$0xf0] }
 0x117   : > { %v1471_v13 = vmax.f32 %v1243_v40, 0.0  ;;  %v4944_v40 = vld [vmem:[%s8830_s3 + $0x15c] sm:$0xf] }
 0x119   : > { %v6519_v60 = vpack.c.bf16 %v1471_v13, %v1469_v3  ;;  %v4949_v3 = vld [vmem:[%s8830_s3 + $0x184] sm:$0xf]  ;;  %v4619_v13 = vld [vmem:[%s8830_s3 + $0x198] sm:$0xf0] }
 0x11a   : > { %v6521_v59 = vpop.f32.mrf.mxu2  ;;  %v1211_v12 = vpop.f32.mrf.mxu0  ;;  %v4622_v61 = vor.u32 %v4949_v3, %v4619_v13  ;;  %v4507_v13 = vld [vmem:[%s8830_s3 + $0xb0] sm:$0xf0] }
 0x11b   : > { %v6529_v24 = vpop.f32.mrf.mxu3  ;;  %v1245_v4 = vpop.f32.mrf.mxu1  ;;  %v1212_v6 = vadd.f32 %v1211_v12, %v6361_v19 }
 0x11d   : > { %1361 = vmatmul.bf16.gmra.mxu0 %v6133_v34 }
 0x11e   : > { %1395 = vmatmul.bf16.gmra.mxu1 %v6135_v35 }
 0x11f   : > { %1429 = vmatmul.bf16.gmra.mxu2 %v6349_v9  ;;  %v1246_v9 = vadd.f32 %v1245_v4, %v1212_v6  ;;  %v4606_v4 = vor.u32 %v4944_v40, %v4603_v1  ;;  %v1190_v6 = vadd.f32 %v6430_v39, %v6428_v38  ;;  %v4578_v38 = vor.u32 %v4941_v7, %v4577_v0  ;;  %v4579_v39 = vld [vmem:[%s8830_s3 + $0x140] sm:$0xf0]  ;;  %v4920_v40 = vld [vmem:[%s8830_s3 + $0x9c] sm:$0xf] }
 0x120   : > { %1463 = vmatmul.bf16.gmra.mxu3 %v6351_v62  ;;  %v4510_v1 = vor.u32 %v4920_v40, %v4507_v13  ;;  %v1277_v40 = vadd.f32 %v6521_v59, %v6511_v45  ;;  %v4675_v59 = vld [vmem:[%s8830_s3 + $0x200] sm:$0xf0] }
 0x121   : > { %v1473_v53 = vmax.f32 %v1246_v9, 0.0  ;;  %2092 = vmatpush.bf16.msra.mxu2 %v4606_v4  ;;  %v4481_v4 = vld [vmem:[%s8830_s3 + $0x68] sm:$0xf] }
 0x122   : > { %v1279_v8 = vpop.f32.mrf.mxu2  ;;  %v1213_v35 = vpop.f32.mrf.mxu0 }
 0x123   : > { %v1280_v34 = vadd.f32 %v1279_v8, %v6511_v45  ;;  %v1313_v52 = vpop.f32.mrf.mxu3  ;;  %v1214_v19 = vadd.f32 %v1213_v35, %v6364_v32  ;;  %v1247_v51 = vpop.f32.mrf.mxu1  ;;  %v4643_v32 = vld [vmem:[%s8830_s3 + $0x1c8] sm:$0xf0] }
 0x124   : > { %v4646_v16 = vor.u32 %v4955_v15, %v4643_v32  ;;  %v4617_v15 = vld [vmem:[%s8830_s3 + $0x180] sm:$0xf]  ;;  %v4952_v32 = vld [vmem:[%s8830_s3 + $0x194] sm:$0xf0] }
 0x125   : > { %v6544_v62 = vadd.f32 %v1313_v52, %v1280_v34  ;;  %v1248_v57 = vadd.f32 %v1247_v51, %v1214_v19  ;;  %v4618_v25 = vor.u32 %v4952_v32, %v4617_v15 }
 0x126   : > { %1996 = vmatpush.bf16.msrb.mxu3 %v4646_v16 }
 0x127   : > { %v1475_v10 = vmax.f32 %v1248_v57, 0.0  ;;  %1929 = vmatpush.bf16.msrb.mxu1 %v4618_v25 }
 0x129   : > { %v6546_v37 = vpack.c.bf16 %v1475_v10, %v1473_v53  ;;  %v4553_v10 = vld [vmem:[%s8830_s3 + $0xf8] sm:$0xf] }
 0x12a   : > { %v6548_v27 = vpop.f32.mrf.mxu2  ;;  %v1216_v21 = vpop.f32.mrf.mxu0  ;;  %1997 = vmatpush.bf16.msrb.mxu3 %v4622_v61 }
 0x12b   : > { %v6550_v11 = vpop.f32.mrf.mxu3  ;;  %v1250_v22 = vpop.f32.mrf.mxu1  ;;  %v1217_v17 = vadd.f32 %v1216_v21, %v6371_v44  ;;  %v4935_v21 = vld [vmem:[%s8830_s3 + $0x10c] sm:$0xf0] }
 0x12c   : > { %v4554_v16 = vor.u32 %v4935_v21, %v4553_v10  ;;  %v4459_v21 = vld [vmem:[%s8830_s3 + $0x50] sm:$0xf0] }
 0x12d   : > { %1896 = vmatmul.bf16.vlgmr.msrb.gmra.mxu0 %v6519_v60  ;;  %v1251_v41 = vadd.f32 %v1250_v22, %v1217_v17  ;;  %v4932_v22 = vld [vmem:[%s8830_s3 + $0xfc] sm:$0xf]  ;;  %v4555_v17 = vld [vmem:[%s8830_s3 + $0x110] sm:$0xf0] }
 0x12f   : > { %1964 = vmatmul.bf16.vlgmr.msrb.gmra.mxu2 %v6519_v60  ;;  %v1477_v46 = vmax.f32 %v1251_v41, 0.0  ;;  %v4929_v41 = vld [vmem:[%s8830_s3 + $0xdc] sm:$0xf0] }
 0x132   : > { %v1284_v29 = vpop.f32.mrf.mxu2  ;;  %v1218_v33 = vpop.f32.mrf.mxu0 }
 0x133   : > { %v1285_v30 = vadd.f32 %v1284_v29, %v6511_v45  ;;  %v1318_v31 = vpop.f32.mrf.mxu3  ;;  %v1219_v49 = vadd.f32 %v1218_v33, %v6374_v2  ;;  %v1252_v44 = vpop.f32.mrf.mxu1  ;;  %v4601_v2 = vld [vmem:[%s8830_s3 + $0x158] sm:$0xf]  ;;  %v4558_v29 = vor.u32 %v4932_v22, %v4555_v17  ;;  %v4529_v33 = vld [vmem:[%s8830_s3 + $0xc8] sm:$0xf] }
 0x134   : > { %v4602_v47 = vor.u32 %v4947_v23, %v4601_v2  ;;  %v4505_v2 = vld [vmem:[%s8830_s3 + $0x98] sm:$0xf]  ;;  %v4923_v23 = vld [vmem:[%s8830_s3 + $0xac] sm:$0xf0] }
 0x135   : > { %v6569_v42 = vadd.f32 %v1318_v31, %v1285_v30  ;;  %v1253_v43 = vadd.f32 %v1252_v44, %v1219_v49  ;;  %v4926_v49 = vld [vmem:[%s8830_s3 + $0xcc] sm:$0xf]  ;;  %v4506_v3 = vor.u32 %v4923_v23, %v4505_v2  ;;  %v4697_v17 = vld [vmem:[%s8830_s3 + $0x218] sm:$0xf] }
 0x136   : > { %2024 = vmatpush.bf16.msra.mxu0 %v4602_v47 }
 0x137   : > { %v1479_v48 = vmax.f32 %v1253_v43, 0.0 }
 0x139   : > { %v6571_v56 = vpack.c.bf16 %v1479_v48, %v1477_v46  ;;  %v4530_v46 = vor.u32 %v4929_v41, %v4529_v33  ;;  %v4531_v48 = vld [vmem:[%s8830_s3 + $0xe0] sm:$0xf0]  ;;  %v4433_v33 = vld [vmem:[%s8830_s3 + $0x8] sm:$0xf]  ;;  %v4905_v41 = vld [vmem:[%s8830_s3 + $0x1c] sm:$0xf0] }
 0x13a   : > { %v6573_v63 = vpop.f32.mrf.mxu2  ;;  %v1221_v58 = vpop.f32.mrf.mxu0  ;;  %2025 = vmatpush.bf16.msra.mxu0 %v4578_v38 }
 0x13b   : > { %v6575_v5 = vpop.f32.mrf.mxu3  ;;  %v1255_v54 = vpop.f32.mrf.mxu1  ;;  %v1222_v12 = vadd.f32 %v1221_v58, %v6404_v14  ;;  %v4938_v14 = vld [vmem:[%s8830_s3 + $0x12c] sm:$0xf] }
 0x13c   : > { %v4582_v51 = vor.u32 %v4938_v14, %v4579_v39 }
 0x13d   : > { %1901 = vmatmul.bf16.gmra.mxu0 %v6546_v37  ;;  %v1256_v35 = vadd.f32 %v1255_v54, %v1222_v12  ;;  %v4534_v54 = vor.u32 %v4926_v49, %v4531_v48  ;;  %v1195_v12 = vadd.f32 %v6496_v28, %v6494_v26  ;;  %v4483_v26 = vld [vmem:[%s8830_s3 + $0x80] sm:$0xf0]  ;;  %v4902_v49 = vld [vmem:[%s8830_s3 + $0xc] sm:$0xf] }
 0x13e   : > { %2093 = vmatpush.bf16.msra.mxu2 %v4582_v51  ;;  %2026 = vmatpush.bf16.msra.mxu0 %v4554_v16  ;;  %v4968_v51 = vld [vmem:[%s8830_s3 + $0x21c] sm:$0xf] }
 0x13f   : > { %1969 = vmatmul.bf16.gmra.mxu2 %v6546_v37  ;;  %v1481_v18 = vmax.f32 %v1256_v35, 0.0  ;;  %v4457_v35 = vld [vmem:[%s8830_s3 + $0x38] sm:$0xf] }
 0x142   : > { %v1289_v50 = vpop.f32.mrf.mxu2  ;;  %v1223_v52 = vpop.f32.mrf.mxu0  ;;  %2094 = vmatpush.bf16.msra.mxu2 %v4558_v29  ;;  %2027 = vmatpush.bf16.msra.mxu0 %v4530_v46 }
 0x143   : > { %v1290_v8 = vadd.f32 %v1289_v50, %v6511_v45  ;;  %v1323_v34 = vpop.f32.mrf.mxu3  ;;  %v1224_v9 = vadd.f32 %v1223_v52, %v1190_v6  ;;  %v1257_v19 = vpop.f32.mrf.mxu1  ;;  %v4917_v6 = vld [vmem:[%s8830_s3 + $0x7c] sm:$0xf0]  ;;  %v4914_v50 = vld [vmem:[%s8830_s3 + $0x6c] sm:$0xf] }
 0x144   : > { %v4482_v14 = vor.u32 %v4917_v6, %v4481_v4  ;;  %v4486_v52 = vor.u32 %v4914_v50, %v4483_v26 }
 0x145   : > { %v6613_v57 = vadd.f32 %v1323_v34, %v1290_v8  ;;  %v1258_v53 = vadd.f32 %v1257_v19, %v1224_v9  ;;  %v4911_v9 = vld [vmem:[%s8830_s3 + $0x4c] sm:$0xf0]  ;;  %v4908_v19 = vld [vmem:[%s8830_s3 + $0x3c] sm:$0xf] }
 0x146   : > { %2095 = vmatpush.bf16.msra.mxu2 %v4534_v54  ;;  %2028 = vmatpush.bf16.msra.mxu0 %v4506_v3  ;;  %v4458_v10 = vor.u32 %v4911_v9, %v4457_v35  ;;  %v4462_v16 = vor.u32 %v4908_v19, %v4459_v21  ;;  %v4435_v54 = vld [vmem:[%s8830_s3 + $0x20] sm:$0xf0] }
 0x147   : > { %v1483_v20 = vmax.f32 %v1258_v53, 0.0  ;;  %v4699_v53 = vld [vmem:[%s8830_s3 + $0x230] sm:$0xf0]  ;;  %v4438_v23 = vor.u32 %v4902_v49, %v4435_v54 }
 0x148   : > { %v4702_v32 = vor.u32 %v4968_v51, %v4699_v53  ;;  %v4673_v51 = vld [vmem:[%s8830_s3 + $0x1e8] sm:$0xf]  ;;  %v4965_v53 = vld [vmem:[%s8830_s3 + $0x1fc] sm:$0xf0] }
 0x149   : > { %v6633_v30 = vpack.c.bf16 %v1483_v20, %v1481_v18  ;;  %v4971_v18 = vld [vmem:[%s8830_s3 + $0x22c] sm:$0xf0]  ;;  %v4674_v21 = vor.u32 %v4965_v53, %v4673_v51 }
 0x14a   : > { %v6635_v31 = vpop.f32.mrf.mxu2  ;;  %v1226_v43 = vpop.f32.mrf.mxu0  ;;  %2096 = vmatpush.bf16.msra.mxu2 %v4510_v1  ;;  %2029 = vmatpush.bf16.msra.mxu0 %v4482_v14  ;;  %v4698_v20 = vor.u32 %v4971_v18, %v4697_v17 }
 0x14b   : > { %v6646_v44 = vpop.f32.mrf.mxu3  ;;  %v1260_v58 = vpop.f32.mrf.mxu1  ;;  %v1227_v47 = vadd.f32 %v1226_v43, %v6465_v36  ;;  %2130 = vmatpush.bf16.msra.mxu3 %v4702_v32 }
 0x14c   : > { %2062 = vmatpush.bf16.msra.mxu1 %v4698_v20 }
 0x14d   : > { %1906 = vmatmul.bf16.gmra.mxu0 %v6571_v56  ;;  %v1261_v28 = vadd.f32 %v1260_v58, %v1227_v47  ;;  %v4434_v58 = vor.u32 %v4905_v41, %v4433_v33  ;;  %v1311_v47 = vadd.f32 %v6529_v24, %v1277_v40 }
 0x14e   : > { %2097 = vmatpush.bf16.msra.mxu2 %v4486_v52  ;;  %2030 = vmatpush.bf16.msra.mxu0 %v4458_v10  ;;  %v1282_v52 = vadd.f32 %v6548_v27, %v6511_v45 }
 0x14f   : > { %1974 = vmatmul.bf16.gmra.mxu2 %v6571_v56  ;;  %v1485_v22 = vmax.f32 %v1261_v28, 0.0 }
 0x150   : > { %v1316_v27 = vadd.f32 %v6550_v11, %v1282_v52  ;;  %2063 = vmatpush.bf16.msra.mxu1 %v4674_v21  ;;  %v4948_v52 = vld [vmem:[%s8830_s3 + $0x174] sm:$0xf0] }
 0x152   : > { %v1294_v61 = vpop.f32.mrf.mxu2  ;;  %v1228_v7 = vpop.f32.mrf.mxu0  ;;  %2098 = vmatpush.bf16.msra.mxu2 %v4462_v16  ;;  %2031 = vmatpush.bf16.msra.mxu0 %v4434_v58  ;;  %v1287_v58 = vadd.f32 %v6573_v63, %v6511_v45  ;;  %v4649_v63 = vld [vmem:[%s8830_s3 + $0x1b8] sm:$0xf] }
 0x153   : > { %v1295_v36 = vadd.f32 %v1294_v61, %v6511_v45  ;;  %v1328_v0 = vpop.f32.mrf.mxu3  ;;  %v1229_v8 = vadd.f32 %v1228_v7, %v1195_v12  ;;  %v1262_v34 = vpop.f32.mrf.mxu1 }
 0x155   : > { %v6681_v38 = vadd.f32 %v1328_v0, %v1295_v36  ;;  %v1263_v39 = vadd.f32 %v1262_v34, %v1229_v8  ;;  %v4962_v36 = vld [vmem:[%s8830_s3 + $0x1ec] sm:$0xf] }
 0x156   : > { %2099 = vmatpush.bf16.msra.mxu2 %v4438_v23  ;;  %v4678_v0 = vor.u32 %v4962_v36, %v4675_v59 }
 0x157   : > { %v1487_v15 = vmax.f32 %v1263_v39, 0.0 }
 0x158   : > { %2131 = vmatpush.bf16.msra.mxu3 %v4678_v0 }
 0x159   : > { %v6707_v25 = vpack.c.bf16 %v1487_v15, %v1485_v22 }
 0x15a   : > { %v1296_v29 = vpop.f32.mrf.mxu2  ;;  %v1342_v48 = vpop.f32.mrf.mxu0 }
 0x15b   : > { %v6719_v43 = vadd.f32 %v1296_v29, %v6511_v45  ;;  %v6721_v46 = vpop.f32.mrf.mxu3  ;;  %v1376_v2 = vpop.f32.mrf.mxu1  ;;  %v1343_v3 = vadd.f32 %v1342_v48, %v6517_v55 }
 0x15d   : > { %1911 = vmatmul.bf16.gmra.mxu0 %v6633_v30  ;;  %v1377_v4 = vadd.f32 %v1376_v2, %v1343_v3  ;;  %v4956_v3 = vld [vmem:[%s8830_s3 + $0x1bc] sm:$0xf] }
 0x15f   : > { %1979 = vmatmul.bf16.gmra.mxu2 %v6633_v30 }
 0x162   : > { %v1410_v13 = vpop.f32.mrf.mxu2  ;;  %v1344_v12 = vpop.f32.mrf.mxu0 }
 0x163   : > { %v1444_v1 = vpop.f32.mrf.mxu3  ;;  %v1378_v61 = vpop.f32.mrf.mxu1  ;;  %v1345_v6 = vadd.f32 %v1344_v12, %v1311_v47  ;;  %v1411_v50 = vadd.f32 %v1410_v13, %v1377_v4  ;;  %v4651_v13 = vld [vmem:[%s8830_s3 + $0x1d0] sm:$0xf0]  ;;  %v4959_v12 = vld [vmem:[%s8830_s3 + $0x1cc] sm:$0xf0] }
 0x165   : > { %v1379_v7 = vadd.f32 %v1378_v61, %v1345_v6  ;;  %v1445_v14 = vadd.f32 %v1444_v1, %v1411_v50  ;;  %v4654_v1 = vor.u32 %v4956_v3, %v4651_v13  ;;  %v4650_v6 = vor.u32 %v4959_v12, %v4649_v63  ;;  %v4933_v3 = vld [vmem:[%s8830_s3 + $0x104] sm:$0xf]  ;;  %v4563_v13 = vld [vmem:[%s8830_s3 + $0x118] sm:$0xf0] }
 0x167   : > { %v1470_v39 = vmax.f32 %v1445_v14, 0.0  ;;  %2132 = vmatpush.bf16.msra.mxu3 %v4654_v1  ;;  %2064 = vmatpush.bf16.msra.mxu1 %v4650_v6  ;;  %v4927_v6 = vld [vmem:[%s8830_s3 + $0xd4] sm:$0xf] }
 0x16a   : > { %v1412_v55 = vpop.f32.mrf.mxu2  ;;  %v1347_v28 = vpop.f32.mrf.mxu0 }
 0x16b   : > { %v1413_v24 = vadd.f32 %v1412_v55, %v1379_v7  ;;  %v1446_v26 = vpop.f32.mrf.mxu3  ;;  %v1381_v8 = vpop.f32.mrf.mxu1  ;;  %v1348_v19 = vadd.f32 %v1347_v28, %v6544_v62 }
 0x16d   : > { %v1447_v34 = vadd.f32 %v1446_v26, %v1413_v24  ;;  %1916 = vmatmul.bf16.gmra.mxu0 %v6707_v25  ;;  %v1382_v32 = vadd.f32 %v1381_v8, %v1348_v19 }
 0x16f   : > { %v1472_v35 = vmax.f32 %v1447_v34, 0.0  ;;  %1984 = vmatmul.bf16.gmra.mxu2 %v6707_v25  ;;  %v4609_v34 = vld [vmem:[%s8830_s3 + $0x160] sm:$0xf] }
 0x170   : > { %v4610_v53 = vor.u32 %v4948_v52, %v4609_v34 }
 0x171   : > { %v6742_v9 = vpack.c.bf16 %v1472_v35, %v1470_v39  ;;  %v4945_v39 = vld [vmem:[%s8830_s3 + $0x164] sm:$0xf]  ;;  %v1292_v35 = vadd.f32 %v6635_v31, %v6511_v45 }
 0x172   : > { %v1415_v10 = vpop.f32.mrf.mxu2  ;;  %v1349_v62 = vpop.f32.mrf.mxu0  ;;  %v4627_v45 = vld [vmem:[%s8830_s3 + $0x1a0] sm:$0xf0]  ;;  %2160 = vmatpush.bf16.msrb.mxu0 %v4610_v53 }
 0x173   : > { %v1449_v22 = vpop.f32.mrf.mxu3  ;;  %4711 = vmatmul.msk.bf16.vlgmr.msrb.gmra.mxu1 %vm1872_vm0, %v6742_v9  ;;  %4716 = vmatmul.msk.bf16.vlgmr.msrb.gmra.mxu3 %vm1872_vm0, %v6742_v9  ;;  %v1383_v15 = vpop.f32.mrf.mxu1  ;;  %v1350_v16 = vadd.f32 %v1349_v62, %v1316_v27  ;;  %v1416_v17 = vadd.f32 %v1415_v10, %v1382_v32  ;;  %v4611_v10 = vld [vmem:[%s8830_s3 + $0x178] sm:$0xf0]  ;;  %v4950_v62 = vld [vmem:[%s8830_s3 + $0x18c] sm:$0xf]  ;;  %v4585_v32 = vld [vmem:[%s8830_s3 + $0x130] sm:$0xf] }
 0x174   : > { %v4614_v21 = vor.u32 %v4945_v39, %v4611_v10 }
 0x175   : > { %v1384_v18 = vadd.f32 %v1383_v15, %v1350_v16  ;;  %v1450_v29 = vadd.f32 %v1449_v22, %v1416_v17  ;;  %v4630_v15 = vor.u32 %v4950_v62, %v4627_v45  ;;  %v4939_v16 = vld [vmem:[%s8830_s3 + $0x134] sm:$0xf]  ;;  %v1326_v17 = vadd.f32 %v6646_v44, %v1292_v35  ;;  %v4625_v44 = vld [vmem:[%s8830_s3 + $0x188] sm:$0xf]  ;;  %v4515_v35 = vld [vmem:[%s8830_s3 + $0xb8] sm:$0xf0] }
 0x176   : > { %2228 = vmatpush.bf16.msrb.mxu2 %v4614_v21  ;;  %v4489_v21 = vld [vmem:[%s8830_s3 + $0x70] sm:$0xf]  ;;  %v4915_v62 = vld [vmem:[%s8830_s3 + $0x74] sm:$0xf]  ;;  %v1331_v45 = vadd.f32 %v6721_v46, %v6719_v43  ;;  %v4491_v43 = vld [vmem:[%s8830_s3 + $0x88] sm:$0xf0] }
 0x177   : > { %v1474_v54 = vmax.f32 %v1450_v29, 0.0  ;;  %2133 = vmatpush.bf16.msra.mxu3 %v4630_v15  ;;  %v4969_v15 = vld [vmem:[%s8830_s3 + $0x224] sm:$0xf] }
 0x17a   : > { %v1417_v20 = vpop.f32.mrf.mxu2  ;;  %v1352_v49 = vpop.f32.mrf.mxu0 }
 0x17b   : > { %v1418_v33 = vadd.f32 %v1417_v20, %v1384_v18  ;;  %v1451_v41 = vpop.f32.mrf.mxu3  ;;  %v1386_v11 = vpop.f32.mrf.mxu1  ;;  %v1353_v40 = vadd.f32 %v1352_v49, %v6569_v42  ;;  %v1321_v42 = vadd.f32 %v6575_v5, %v1287_v58 }
 0x17d   : > { %v1452_v48 = vadd.f32 %v1451_v41, %v1418_v33  ;;  %2032 = vmatmul.bf16.vlgmr.msra.gmra.mxu0 %v6519_v60  ;;  %v1387_v36 = vadd.f32 %v1386_v11, %v1353_v40  ;;  %v4587_v33 = vld [vmem:[%s8830_s3 + $0x148] sm:$0xf0]  ;;  %v4953_v11 = vld [vmem:[%s8830_s3 + $0x19c] sm:$0xf0]  ;;  %v4936_v40 = vld [vmem:[%s8830_s3 + $0x114] sm:$0xf0] }
 0x17e   : > { %v4590_v49 = vor.u32 %v4939_v16, %v4587_v33  ;;  %v4494_v16 = vor.u32 %v4915_v62, %v4491_v43  ;;  %v4635_v43 = vld [vmem:[%s8830_s3 + $0x1a8] sm:$0xf0] }
 0x17f   : > { %v1476_v2 = vmax.f32 %v1452_v48, 0.0  ;;  %2100 = vmatmul.bf16.vlgmr.msra.gmra.mxu2 %v6519_v60  ;;  %v4561_v48 = vld [vmem:[%s8830_s3 + $0x100] sm:$0xf] }
 0x180   : > { %2229 = vmatpush.bf16.msrb.mxu2 %v4590_v49  ;;  %v4562_v63 = vor.u32 %v4936_v40, %v4561_v48  ;;  %v4467_v49 = vld [vmem:[%s8830_s3 + $0x58] sm:$0xf0] }
 0x181   : > { %v6760_v23 = vpack.c.bf16 %v1476_v2, %v1474_v54  ;;  %v4626_v2 = vor.u32 %v4953_v11, %v4625_v44  ;;  %v4705_v44 = vld [vmem:[%s8830_s3 + $0x220] sm:$0xf]  ;;  %v4972_v11 = vld [vmem:[%s8830_s3 + $0x234] sm:$0xf0] }
 0x182   : > { %v1420_v47 = vpop.f32.mrf.mxu2  ;;  %v1354_v4 = vpop.f32.mrf.mxu0 }
 0x183   : > { %v1454_v61 = vpop.f32.mrf.mxu3  ;;  %4712 = vmatmul.msk.bf16.gmra.mxu1 %vm1872_vm0, %v6760_v23  ;;  %4717 = vmatmul.msk.bf16.gmra.mxu3 %vm1872_vm0, %v6760_v23  ;;  %v1388_v50 = vpop.f32.mrf.mxu1  ;;  %v1355_v59 = vadd.f32 %v1354_v4, %v1321_v42  ;;  %v1421_v0 = vadd.f32 %v1420_v47, %v1387_v36  ;;  %v4566_v47 = vor.u32 %v4933_v3, %v4563_v13  ;;  %v4930_v4 = vld [vmem:[%s8830_s3 + $0xe4] sm:$0xf0]  ;;  %v4441_v13 = vld [vmem:[%s8830_s3 + $0x10] sm:$0xf] }
 0x184   : > { %2065 = vmatpush.bf16.msra.mxu1 %v4626_v2 }
 0x185   : > { %v1389_v7 = vadd.f32 %v1388_v50, %v1355_v59  ;;  %v1455_v14 = vadd.f32 %v1454_v61, %v1421_v0  ;;  %2230 = vmatpush.bf16.msrb.mxu2 %v4566_v47  ;;  %v4537_v61 = vld [vmem:[%s8830_s3 + $0xd0] sm:$0xf]  ;;  %v4903_v47 = vld [vmem:[%s8830_s3 + $0x14] sm:$0xf] }
 0x187   : > { %v1478_v19 = vmax.f32 %v1455_v14, 0.0 }
 0x18a   : > { %v1422_v55 = vpop.f32.mrf.mxu2  ;;  %v1357_v26 = vpop.f32.mrf.mxu0 }
 0x18b   : > { %v1423_v24 = vadd.f32 %v1422_v55, %v1389_v7  ;;  %v1456_v5 = vpop.f32.mrf.mxu3  ;;  %v1391_v28 = vpop.f32.mrf.mxu1  ;;  %v1358_v22 = vadd.f32 %v1357_v26, %v6613_v57  ;;  %v4942_v57 = vld [vmem:[%s8830_s3 + $0x144] sm:$0xf0]  ;;  %v4538_v7 = vor.u32 %v4930_v4, %v4537_v61  ;;  %v4539_v55 = vld [vmem:[%s8830_s3 + $0xe8] sm:$0xf0]  ;;  %v4513_v26 = vld [vmem:[%s8830_s3 + $0xa0] sm:$0xf] }
 0x18c   : > { %v4586_v29 = vor.u32 %v4942_v57, %v4585_v32  ;;  %v4542_v14 = vor.u32 %v4927_v6, %v4539_v55  ;;  %v4707_v32 = vld [vmem:[%s8830_s3 + $0x238] sm:$0xf0]  ;;  %v4443_v61 = vld [vmem:[%s8830_s3 + $0x28] sm:$0xf0] }
 0x18d   : > { %v1457_v8 = vadd.f32 %v1456_v5, %v1423_v24  ;;  %2037 = vmatmul.bf16.gmra.mxu0 %v6546_v37  ;;  %v1392_v58 = vadd.f32 %v1391_v28, %v1358_v22  ;;  %v4924_v28 = vld [vmem:[%s8830_s3 + $0xb4] sm:$0xf0]  ;;  %v4918_v22 = vld [vmem:[%s8830_s3 + $0x84] sm:$0xf0]  ;;  %v4710_v46 = vor.u32 %v4969_v15, %v4707_v32  ;;  %v4446_v6 = vor.u32 %v4903_v47, %v4443_v61  ;;  %v4683_v55 = vld [vmem:[%s8830_s3 + $0x208] sm:$0xf0] }
 0x18e   : > { %2161 = vmatpush.bf16.msrb.mxu0 %v4586_v29  ;;  %2231 = vmatpush.bf16.msrb.mxu2 %v4542_v14  ;;  %v4514_v39 = vor.u32 %v4924_v28, %v4513_v26  ;;  %v4490_v57 = vor.u32 %v4918_v22, %v4489_v21  ;;  %v5306_v47 = vld [vmem:[%s5838_s17 + $0x40] sm:$0xff] }
 0x18f   : > { %v1480_v51 = vmax.f32 %v1457_v8, 0.0  ;;  %2105 = vmatmul.bf16.gmra.mxu2 %v6546_v37  ;;  %v4921_v8 = vld [vmem:[%s8830_s3 + $0xa4] sm:$0xf]  ;;  %2266 = vmatpush.bf16.msrb.mxu3 %v4710_v46 }
 0x191   : > { %v6796_v27 = vpack.c.bf16 %v1480_v51, %v1478_v19  ;;  %v4518_v19 = vor.u32 %v4921_v8, %v4515_v35  ;;  %v4659_v35 = vld [vmem:[%s8830_s3 + $0x1d8] sm:$0xf0] }
 0x192   : > { %v1425_v31 = vpop.f32.mrf.mxu2  ;;  %v1359_v20 = vpop.f32.mrf.mxu0  ;;  %2162 = vmatpush.bf16.msrb.mxu0 %v4562_v63  ;;  %v4906_v63 = vld [vmem:[%s8830_s3 + $0x24] sm:$0xf0] }
 0x193   : > { %v1459_v18 = vpop.f32.mrf.mxu3  ;;  %4713 = vmatmul.msk.bf16.gmra.mxu1 %vm1872_vm0, %v6796_v27  ;;  %4718 = vmatmul.msk.bf16.gmra.mxu3 %vm1872_vm0, %v6796_v27  ;;  %v1393_v41 = vpop.f32.mrf.mxu1  ;;  %v1360_v54 = vadd.f32 %v1359_v20, %v1326_v17  ;;  %v1426_v1 = vadd.f32 %v1425_v31, %v1392_v58  ;;  %v4465_v17 = vld [vmem:[%s8830_s3 + $0x40] sm:$0xf]  ;;  %v4909_v20 = vld [vmem:[%s8830_s3 + $0x44] sm:$0xf]  ;;  %v4706_v58 = vor.u32 %v4972_v11, %v4705_v44 }
 0x194   : > { %2232 = vmatpush.bf16.msrb.mxu2 %v4518_v19  ;;  %v4470_v48 = vor.u32 %v4909_v20, %v4467_v49  ;;  %v4954_v20 = vld [vmem:[%s8830_s3 + $0x1a4] sm:$0xf0] }
 0x195   : > { %v1394_v12 = vadd.f32 %v1393_v41, %v1360_v54  ;;  %v1460_v50 = vadd.f32 %v1459_v18, %v1426_v1  ;;  %v4912_v18 = vld [vmem:[%s8830_s3 + $0x54] sm:$0xf0]  ;;  %2198 = vmatpush.bf16.msrb.mxu1 %v4706_v58 }
 0x196   : > { %2163 = vmatpush.bf16.msrb.mxu0 %v4538_v7  ;;  %v4466_v41 = vor.u32 %v4912_v18, %v4465_v17  ;;  %v4963_v7 = vld [vmem:[%s8830_s3 + $0x1f4] sm:$0xf] }
 0x197   : > { %v1482_v34 = vmax.f32 %v1460_v50, 0.0  ;;  %v4686_v14 = vor.u32 %v4963_v7, %v4683_v55  ;;  %v5311_v55 = vld [vmem:[%s5838_s17 + $0x68] sm:$0xff] }
 0x198   : > { %2233 = vmatpush.bf16.msrb.mxu2 %v4494_v16 }
 0x199   : > { %2267 = vmatpush.bf16.msrb.mxu3 %v4686_v14  ;;  %v7062_v14 = vmul.f32 2.0, %v5311_v55  ;;  %v5325_v55 = vld [vmem:[%s5838_s17 + $0x120] sm:$0xff] }
 0x19a   : > { %v1427_v42 = vpop.f32.mrf.mxu2  ;;  %v1362_v0 = vpop.f32.mrf.mxu0  ;;  %2164 = vmatpush.bf16.msrb.mxu0 %v4514_v39  ;;  %v4957_v39 = vld [vmem:[%s8830_s3 + $0x1c4] sm:$0xf] }
 0x19b   : > { %v1428_v36 = vadd.f32 %v1427_v42, %v1394_v12  ;;  %v1461_v59 = vpop.f32.mrf.mxu3  ;;  %v1396_v5 = vpop.f32.mrf.mxu1  ;;  %v1363_v53 = vadd.f32 %v1362_v0, %v6681_v38  ;;  %v4442_v42 = vor.u32 %v4906_v63, %v4441_v13  ;;  %v4662_v19 = vor.u32 %v4957_v39, %v4659_v35  ;;  %v5305_v13 = vld [vmem:[%s5838_s17 + $0x10] sm:$0xff] }
 0x19c   : > { %2234 = vmatpush.bf16.msrb.mxu2 %v4470_v48  ;;  %v5302_v48 = vld [vmem:[%s5838_s17 + $0x30] sm:$0xff]  ;;  %v7042_v63 = vmul.f32 2.0, %v5305_v13  ;;  %v5322_v13 = vld [vmem:[%s5838_s17 + $0x100] sm:$0xff] }
 0x19d   : > { %v1462_v24 = vadd.f32 %v1461_v59, %v1428_v36  ;;  %2042 = vmatmul.bf16.gmra.mxu0 %v6571_v56  ;;  %v1397_v29 = vadd.f32 %v1396_v5, %v1363_v53  ;;  %v4966_v5 = vld [vmem:[%s8830_s3 + $0x204] sm:$0xf0]  ;;  %2268 = vmatpush.bf16.msrb.mxu3 %v4662_v19  ;;  %v7033_v58 = vmul.f32 2.0, %v5302_v48  ;;  %v5314_v19 = vld [vmem:[%s5838_s17 + $0xa0] sm:$0xff] }
 0x19e   : > { %2165 = vmatpush.bf16.msrb.mxu0 %v4490_v57  ;;  %v4951_v57 = vld [vmem:[%s8830_s3 + $0x194] sm:$0xf]  ;;  %8871 = vst [vmem:[#allocation10_spill] sm:$0xff] %v7042_v63 }
 0x19f   : > { %v1484_v52 = vmax.f32 %v1462_v24, 0.0  ;;  %2110 = vmatmul.bf16.gmra.mxu2 %v6571_v56  ;;  %v4681_v24 = vld [vmem:[%s8830_s3 + $0x1f0] sm:$0xf]  ;;  %v4638_v16 = vor.u32 %v4951_v57, %v4635_v43  ;;  %v5317_v43 = vld [vmem:[%s5838_s17 + $0xc0] sm:$0xff] }
 0x1a0   : > { %2235 = vmatpush.bf16.msrb.mxu2 %v4446_v6  ;;  %v4682_v26 = vor.u32 %v4966_v5, %v4681_v24  ;;  %v5312_v5 = vld [vmem:[%s5838_s17 + $0x98] sm:$0xff] }
 0x1a1   : > { %v6866_v51 = vpack.c.bf16 %v1484_v52, %v1482_v34  ;;  %2269 = vmatpush.bf16.msrb.mxu3 %v4638_v16 }
 0x1a2   : > { %v1430_v10 = vpop.f32.mrf.mxu2  ;;  %v1364_v38 = vpop.f32.mrf.mxu0  ;;  %2166 = vmatpush.bf16.msrb.mxu0 %v4466_v41  ;;  %2199 = vmatpush.bf16.msrb.mxu1 %v4682_v26  ;;  %v5301_v41 = vld [vmem:[%s5838_s17] sm:$0xff]  ;;  %v7065_v26 = vmul.f32 2.0, %v5312_v5 }
 0x1a3   : > { %v1464_v31 = vpop.f32.mrf.mxu3  ;;  %4714 = vmatmul.msk.bf16.gmra.mxu1 %vm1872_vm0, %v6866_v51  ;;  %4719 = vmatmul.msk.bf16.gmra.mxu3 %vm1872_vm0, %v6866_v51  ;;  %v1365_v33 = vadd.f32 %v1364_v38, %v1331_v45  ;;  %v1431_v54 = vadd.f32 %v1430_v10, %v1397_v29  ;;  %v1398_v2 = vpop.f32.mrf.mxu1  ;;  %v7024_v49 = vmul.f32 2.0, %v5301_v41 }
 0x1a5   : > { %v1399_v40 = vadd.f32 %v1398_v2, %v1365_v33  ;;  %v1465_v1 = vadd.f32 %v1464_v31, %v1431_v54  ;;  %v4960_v31 = vld [vmem:[%s8830_s3 + $0x1d4] sm:$0xf0]  ;;  %v5303_v54 = vld [vmem:[%s5838_s17 + $0x8] sm:$0xff] }
 0x1a6   : > { %2167 = vmatpush.bf16.msrb.mxu0 %v4442_v42  ;;  %v7036_v2 = vmul.f32 2.0, %v5303_v54  ;;  %v5321_v54 = vld [vmem:[%s5838_s17 + $0xd0] sm:$0xff] }
 0x1a7   : > { %v1486_v36 = vmax.f32 %v1465_v1, 0.0  ;;  %v7045_v1 = vmul.f32 2.0, %v5306_v47  ;;  %v7097_v47 = vmul.f32 2.0, %v5322_v13  ;;  %v5331_v13 = vld [vmem:[%s5838_s17 + $0x138] sm:$0xff] }
 0x1a9   : > { %8872 = vst [vmem:[#allocation11_spill] sm:$0xff] %v7045_v1 }
 0x1aa   : > { %v1432_v3 = vpop.f32.mrf.mxu2  ;;  %v1897_v28 = vpop.f32.mrf.mxu0  ;;  %8880 = vst [vmem:[#allocation19_spill] sm:$0xff] %v7097_v47 }
 0x1ab   : > { %v1433_v12 = vadd.f32 %v1432_v3, %v1399_v40  ;;  %v1466_v4 = vpop.f32.mrf.mxu3  ;;  %v5304_v40 = vld [vmem:[%s5838_s17 + $0x38] sm:$0xff] }
 0x1ac   : > { %v7039_v3 = vmul.f32 2.0, %v5304_v40  ;;  %v7094_v40 = vmul.f32 2.0, %v5321_v54 }
 0x1ad   : > { %v1467_v50 = vadd.f32 %v1466_v4, %v1433_v12  ;;  %2047 = vmatmul.bf16.gmra.mxu0 %v6633_v30  ;;  %v5307_v12 = vld [vmem:[%s5838_s17 + $0x18] sm:$0xff]  ;;  %v5308_v4 = vld [vmem:[%s5838_s17 + $0x48] sm:$0xff] }
 0x1ae   : > { %v7048_v42 = vmul.f32 2.0, %v5307_v12  ;;  %v7053_v6 = vmul.f32 2.0, %v5308_v4  ;;  %8879 = vst [vmem:[#allocation18_spill] sm:$0xff] %v7094_v40  ;;  %v5323_v12 = vld [vmem:[%s5838_s17 + $0xd8] sm:$0xff] }
 0x1af   : > { %v1488_v59 = vmax.f32 %v1467_v50, 0.0  ;;  %2115 = vmatmul.bf16.gmra.mxu2 %v6633_v30  ;;  %v5309_v50 = vld [vmem:[%s5838_s17 + $0x60] sm:$0xff] }
 0x1b0   : > { %8873 = vst [vmem:[#allocation12_spill] sm:$0xff] %v7048_v42 }
 0x1b1   : > { %v6925_v0 = vpack.c.bf16 %v1488_v59, %v1486_v36  ;;  %8874 = vst [vmem:[#allocation13_spill] sm:$0xff] %v7053_v6  ;;  %v7056_v36 = vmul.f32 2.0, %v5309_v50  ;;  %v5310_v59 = vld [vmem:[%s5838_s17 + $0x90] sm:$0xff]  ;;  %v5324_v50 = vld [vmem:[%s5838_s17 + $0x108] sm:$0xff] }
 0x1b2   : > { %v6945_v8 = vpop.f32.mrf.mxu2  ;;  %v6951_v34 = vpop.f32.mrf.mxu0  ;;  %v7059_v7 = vmul.f32 2.0, %v5310_v59  ;;  %v7103_v59 = vmul.f32 2.0, %v5324_v50 }
 0x1b3   : > { %4715 = vmatmul.msk.bf16.gmra.mxu1 %vm1872_vm0, %v6925_v0  ;;  %4720 = vmatmul.msk.bf16.gmra.mxu3 %vm1872_vm0, %v6925_v0 }
 0x1b4   : > { %8882 = vst [vmem:[#allocation21_spill] sm:$0xff] %v7103_v59 }
 0x1ba   : > { %v6953_v52 = vpop.f32.mrf.mxu2  ;;  %v6967_v53 = vpop.f32.mrf.mxu0 }
 0x1bd   : > { %2052 = vmatmul.bf16.gmra.mxu0 %v6707_v25 }
 0x1bf   : > { %2120 = vmatmul.bf16.gmra.mxu2 %v6707_v25 }
 0x1c2   : > { %v6969_v10 = vpop.f32.mrf.mxu2  ;;  %v6971_v21 = vpop.f32.mrf.mxu0 }
 0x1c3   : > { %4721 = vmatmul.msk.bf16.vlgmr.msra.gmra.mxu1 %vm1872_vm0, %v6742_v9  ;;  %4726 = vmatmul.msk.bf16.vlgmr.msra.gmra.mxu3 %vm1872_vm0, %v6742_v9 }
 0x1ca   : > { %v6974_v22 = vpop.f32.mrf.mxu2  ;;  %v6990_v62 = vpop.f32.mrf.mxu0 }
 0x1cd   : > { %2168 = vmatmul.bf16.vlgmr.msrb.gmra.mxu0 %v6519_v60 }
 0x1cf   : > { %2236 = vmatmul.bf16.vlgmr.msrb.gmra.mxu2 %v6519_v60  ;;  %v6988_v60 = vld [vmem:[%s6985_s7] sm:$0x3f] }
 0x1d0   : > { %v7001_v38 = vperm.slane %v6988_v60, 0  ;;  %v7013_v17 = vperm.slane %v6988_v60, 1 }
 0x1d2   : > { %v6992_v45 = vpop.f32.mrf.mxu2  ;;  %v1898_v32 = vadd.f32 %v1897_v28, %v7001_v38  ;;  %v7021_v29 = vpop.f32.mrf.mxu0  ;;  %v1966_v61 = vadd.f32 %v6945_v8, %v7013_v17  ;;  %v5313_v28 = vld [vmem:[%s5838_s17 + $0x70] sm:$0xff]  ;;  %v1900_v39 = vadd.f32 %v6951_v34, %v7001_v38 }
 0x1d3   : > { %4722 = vmatmul.msk.bf16.gmra.mxu1 %vm1872_vm0, %v6760_v23  ;;  %4727 = vmatmul.msk.bf16.gmra.mxu3 %vm1872_vm0, %v6760_v23  ;;  %v7068_v8 = vmul.f32 2.0, %v5313_v28  ;;  %v5318_v34 = vld [vmem:[%s5838_s17 + $0xf0] sm:$0xff] }
 0x1d4   : > { %v5326_v28 = vld [vmem:[%s5838_s17 + $0x150] sm:$0xff] }
 0x1d5   : > { %8875 = vst [vmem:[#allocation14_spill] sm:$0xff] %v7068_v8 }
 0x1da   : > { %v7026_v44 = vpop.f32.mrf.mxu2 }
 0x1dd   : > { %2173 = vmatmul.bf16.gmra.mxu0 %v6546_v37 }
 0x1df   : > { %2241 = vmatmul.bf16.gmra.mxu2 %v6546_v37  ;;  %v4657_v37 = vld [vmem:[%s8830_s3 + $0x1c0] sm:$0xf] }
 0x1e0   : > { %v4658_v15 = vor.u32 %v4960_v31, %v4657_v37  ;;  %v7073_v37 = vmul.f32 2.0, %v5314_v19  ;;  %v5315_v31 = vld [vmem:[%s5838_s17 + $0x78] sm:$0xff] }
 0x1e2   : > { %2200 = vmatpush.bf16.msrb.mxu1 %v4658_v15  ;;  %8876 = vst [vmem:[#allocation15_spill] sm:$0xff] %v7073_v37  ;;  %v7076_v15 = vmul.f32 2.0, %v5315_v31  ;;  %v5328_v31 = vld [vmem:[%s5838_s17 + $0x158] sm:$0xff]  ;;  %v7129_v54 = vpop.f32.mrf.mxu2 }
 0x1e3   : > { %4723 = vmatmul.msk.bf16.gmra.mxu1 %vm1872_vm0, %v6796_v27  ;;  %4728 = vmatmul.msk.bf16.gmra.mxu3 %vm1872_vm0, %v6796_v27 }
 0x1e4   : > { %8877 = vst [vmem:[#allocation16_spill] sm:$0xff] %v7076_v15 }
 0x1ed   : > { %2178 = vmatmul.bf16.gmra.mxu0 %v6571_v56 }
 0x1ef   : > { %2246 = vmatmul.bf16.gmra.mxu2 %v6571_v56  ;;  %v4633_v56 = vld [vmem:[%s8830_s3 + $0x190] sm:$0xf] }
 0x1f0   : > { %v1931_v46 = vpop.f32.mrf.mxu1  ;;  %v4634_v33 = vor.u32 %v4954_v20, %v4633_v56  ;;  %v5319_v56 = vld [vmem:[%s5838_s17 + $0xc8] sm:$0xff] }
 0x1f1   : > { %v1932_v18 = vadd.f32 %v1931_v46, %v1898_v32  ;;  %v5316_v32 = vld [vmem:[%s5838_s17 + $0xa8] sm:$0xff]  ;;  %v7082_v46 = vmul.f32 2.0, %v5317_v43  ;;  %v7088_v20 = vmul.f32 2.0, %v5319_v56  ;;  %v7117_v43 = vpop.f32.mrf.mxu0 }
 0x1f2   : > { %2201 = vmatpush.bf16.msrb.mxu1 %v4634_v33  ;;  %v7079_v57 = vmul.f32 2.0, %v5316_v32  ;;  %v7115_v32 = vmul.f32 2.0, %v5328_v31  ;;  %v5335_v31 = vld [vmem:[%s5838_s17 + $0x188] sm:$0xff] }
 0x1f3   : > { %v4741_v11 = vmul.f32 -1.442695, %v1932_v18  ;;  %4724 = vmatmul.msk.bf16.gmra.mxu1 %vm1872_vm0, %v6866_v51  ;;  %4729 = vmatmul.msk.bf16.gmra.mxu3 %vm1872_vm0, %v6866_v51  ;;  %v7085_v18 = vmul.f32 2.0, %v5318_v34  ;;  %v5329_v34 = vld [vmem:[%s5838_s17 + $0x130] sm:$0xff] }
 0x1f4   : > { %8878 = vst [vmem:[#allocation17_spill] sm:$0xff] %v7079_v57  ;;  %v7122_v56 = vmul.f32 2.0, %v5329_v34  ;;  %v7146_v34 = vmul.f32 2.0, %v5335_v31  ;;  %v5339_v31 = vld [vmem:[%s5838_s17 + $0x198] sm:$0xff] }
 0x1f5   : > { %5061 = vpow2.f32 %v4741_v11  ;;  %v5320_v11 = vld [vmem:[%s5838_s17 + $0xf8] sm:$0xff] }
 0x1f6   : > { %v1999_v24 = vpop.f32.mrf.mxu3  ;;  %v7091_v48 = vmul.f32 2.0, %v5320_v11  ;;  %8883 = vst [vmem:[#allocation22_spill] sm:$0xff] %v7122_v56  ;;  %v1968_v11 = vadd.f32 %v6953_v52, %v7013_v17  ;;  %v5334_v52 = vld [vmem:[%s5838_s17 + $0x1b0] sm:$0xff]  ;;  %v7161_v56 = vmul.f32 2.0, %v5339_v31  ;;  %v5344_v31 = vld [vmem:[%s5838_s17 + $0x58] sm:$0xff] }
 0x1f7   : > { %v2000_v35 = vadd.f32 %v1999_v24, %v1966_v61  ;;  %v7100_v61 = vmul.f32 2.0, %v5323_v12  ;;  %v7106_v24 = vmul.f32 2.0, %v5325_v55  ;;  %v7132_v12 = vmul.f32 2.0, %v5331_v13  ;;  %v5333_v55 = vld [vmem:[%s5838_s17 + $0x180] sm:$0xff] }
 0x1f8   : > { %v1933_v16 = vpop.f32.mrf.mxu1  ;;  %8890 = vst [vmem:[#allocation29_spill] sm:$0xff] %v7161_v56  ;;  %v7176_v56 = vmul.f32 2.0, %v5344_v31  ;;  %v5348_v31 = vld [vmem:[%s5838_s17 + $0xb8] sm:$0xff] }
 0x1f9   : > { %v4742_v33 = vmul.f32 -1.442695, %v2000_v35  ;;  %v1934_v41 = vadd.f32 %v1933_v16, %v1900_v39  ;;  %8881 = vst [vmem:[#allocation20_spill] sm:$0xff] %v7100_v61  ;;  %v7109_v39 = vmul.f32 2.0, %v5326_v28  ;;  %v5327_v35 = vld [vmem:[%s5838_s17 + $0x128] sm:$0xff]  ;;  %v7138_v28 = vmul.f32 2.0, %v5333_v55 }
 0x1fa   : > { %v7112_v19 = vmul.f32 2.0, %v5327_v35  ;;  %8885 = vst [vmem:[#allocation24_spill] sm:$0xff] %v7132_v12 }
 0x1fb   : > { %v5062_v4 = vpop.eup %5061  ;;  %5063 = vpow2.f32 %v4742_v33  ;;  %v4747_v5 = vmul.f32 -1.442695, %v1934_v41  ;;  %v5330_v33 = vld [vmem:[%s5838_s17 + $0x160] sm:$0xff]  ;;  %8895 = vst [vmem:[#allocation34_spill] sm:$0xff] %v7176_v56  ;;  %v7194_v56 = vmul.f32 2.0, %v5348_v31  ;;  %v7217_v31 = vadd.f32 %v6992_v45, %v7013_v17 }
 0x1fc   : > { %v7119_v16 = vadd.f32 1.0, %v5062_v4  ;;  %v7125_v41 = vmul.f32 2.0, %v5330_v33  ;;  %v5332_v4 = vld [vmem:[%s5838_s17 + $0x168] sm:$0xff]  ;;  %v1903_v33 = vadd.f32 %v6967_v53, %v7001_v38  ;;  %v7236_v45 = vadd.f32 %v7117_v43, %v7001_v38 }
 0x1fd   : > { %5065 = vpow2.f32 %v4747_v5  ;;  %v7135_v50 = vmul.f32 2.0, %v5332_v4  ;;  %2183 = vmatmul.bf16.gmra.mxu0 %v6633_v30  ;;  %v7143_v5 = vmul.f32 2.0, %v5334_v52  ;;  %v5336_v4 = vld [vmem:[%s5838_s17 + $0x1b8] sm:$0xff]  ;;  %v5338_v52 = vld [vmem:[%s5838_s17 + $0x1c0] sm:$0xff]  ;;  %8899 = vst [vmem:[#allocation38_spill] sm:$0xff] %v7194_v56 }
 0x1fe   : > { %8884 = vst [vmem:[#allocation23_spill] sm:$0xff] %v7125_v41  ;;  %5067 = vrcp.f32 %v7119_v16  ;;  %v2001_v35 = vpop.f32.mrf.mxu3  ;;  %v7152_v55 = vmul.f32 2.0, %v5336_v4  ;;  %v7158_v12 = vmul.f32 2.0, %v5338_v52  ;;  %v5343_v52 = vld [vmem:[%s5838_s17 + $0x28] sm:$0xff]  ;;  %v2545_v56 = vand.u32 2147483647, %v7119_v16 }
 0x1ff   : > { %8886 = vst [vmem:[#allocation25_spill] sm:$0xff] %v7135_v50  ;;  %v2002_v13 = vadd.f32 %v2001_v35, %v1968_v11  ;;  %2251 = vmatmul.bf16.gmra.mxu2 %v6633_v30  ;;  %v5337_v50 = vld [vmem:[%s5838_s17 + $0x190] sm:$0xff]  ;;  %v5340_v11 = vld [vmem:[%s5838_s17 + $0x1c8] sm:$0xff]  ;;  %v5341_v35 = vld [vmem:[%s5838_s17 + $0x20] sm:$0xff]  ;;  %vm2541_vm2 = vweird.f32 %v7119_v16 }
 0x200   : > { %8887 = vst [vmem:[#allocation26_spill] sm:$0xff] %v7152_v55  ;;  %v7155_v41 = vmul.f32 2.0, %v5337_v50  ;;  %v1936_v59 = vpop.f32.mrf.mxu1  ;;  %v7164_v30 = vmul.f32 2.0, %v5340_v11  ;;  %v7167_v4 = vmul.f32 2.0, %v5341_v35  ;;  %vm7244_vm3 = vcmp.eq.f32.partialorder %v2545_v56, 8.507059e+37 }
 0x201   : > { %8889 = vst [vmem:[#allocation28_spill] sm:$0xff] %v7158_v12  ;;  %v5064_v53 = vpop.eup %5063  ;;  %v4748_v47 = vmul.f32 -1.442695, %v2002_v13  ;;  %v1937_v50 = vadd.f32 %v1936_v59, %v1903_v33  ;;  %v7173_v12 = vmul.f32 2.0, %v5343_v52  ;;  %v5346_v13 = vld [vmem:[%s5838_s17 + $0xb0] sm:$0xff]  ;;  %v5347_v52 = vld [vmem:[%s5838_s17 + $0x88] sm:$0xff] }
 0x202   : > { %8888 = vst [vmem:[#allocation27_spill] sm:$0xff] %v7155_v41  ;;  %v5342_v41 = vld [vmem:[%s5838_s17 + $0x50] sm:$0xff]  ;;  %v7178_v40 = vadd.f32 1.0, %v5064_v53  ;;  %v7184_v59 = vmul.f32 2.0, %v5346_v13  ;;  %v7191_v53 = vmul.f32 2.0, %v5347_v52  ;;  %v7209_v52 = vadd.f32 %v6974_v22, %v7013_v17 }
 0x203   : > { %8891 = vst [vmem:[#allocation30_spill] sm:$0xff] %v7164_v30  ;;  %v7170_v61 = vmul.f32 2.0, %v5342_v41  ;;  %v5066_v11 = vpop.eup %5065  ;;  %v5345_v30 = vld [vmem:[%s5838_s17 + $0x80] sm:$0xff]  ;;  %5069 = vpow2.f32 %v4748_v47  ;;  %v4753_v41 = vmul.f32 -1.442695, %v1937_v50  ;;  %4725 = vmatmul.msk.bf16.gmra.mxu1 %vm1872_vm0, %v6925_v0  ;;  %4730 = vmatmul.msk.bf16.gmra.mxu3 %vm1872_vm0, %v6925_v0  ;;  %v1905_v47 = vadd.f32 %v6971_v21, %v7001_v38  ;;  %v7219_v21 = vpop.f32.mrf.mxu0 }
 0x204   : > { %8892 = vst [vmem:[#allocation31_spill] sm:$0xff] %v7167_v4  ;;  %v7181_v35 = vmul.f32 2.0, %v5345_v30  ;;  %v5068_v33 = vpop.eup %5067  ;;  %v1971_v30 = vadd.f32 %v6969_v10, %v7013_v17  ;;  %5071 = vrcp.f32 %v7178_v40  ;;  %v7205_v13 = vadd.f32 1.0, %v5066_v11 }
 0x205   : > { %8893 = vst [vmem:[#allocation32_spill] sm:$0xff] %v7170_v61  ;;  %v2537_v50 = vmul.f32 %v5068_v33, %v7119_v16  ;;  %5073 = vpow2.f32 %v4753_v41  ;;  %v7213_v10 = vadd.f32 %v6990_v62, %v7001_v38  ;;  %v7224_v11 = vadd.f32 %v7021_v29, %v7001_v38  ;;  %v7226_v41 = vpop.f32.mrf.mxu2 }
 0x206   : > { %8894 = vst [vmem:[#allocation33_spill] sm:$0xff] %v7173_v12  ;;  %5075 = vrcp.f32 %v7205_v13  ;;  %v7232_v62 = vadd.f32 %v7026_v44, %v7013_v17  ;;  %vm2542_vm1 = vweird.f32 %v5068_v33  ;;  %v2562_v6 = vand.u32 2147483648, %v7178_v40 }
 0x207   : > { %8896 = vst [vmem:[#allocation35_spill] sm:$0xff] %v7181_v35  ;;  %v2538_v22 = vsub.f32 1.0, %v2537_v50  ;;  %v2560_v35 = vand.u32 2147483647, %v7178_v40  ;;  %v7241_v50 = vperm.slane %v6988_v60, 2  ;;  %vm2543_vm4 = vmor %vm2541_vm2, %vm2542_vm1  ;;  %vm2556_vm5 = vweird.f32 %v7178_v40 }
 0x208   : > { %8897 = vst [vmem:[#allocation36_spill] sm:$0xff] %v7184_v59  ;;  %v2004_v59 = vpop.f32.mrf.mxu3  ;;  %v1938_v61 = vpop.f32.mrf.mxu1  ;;  %v2637_v1 = vand.u32 2147483648, %v7205_v13  ;;  %vm2631_vm8 = vweird.f32 %v7205_v13 }
 0x209   : > { %8898 = vst [vmem:[#allocation37_spill] sm:$0xff] %v7191_v53  ;;  %v2547_v53 = vand.u32 2147483648, %v7119_v16  ;;  %v2005_v29 = vadd.f32 %v2004_v59, %v1971_v30  ;;  %v5070_v12 = vpop.eup %5069  ;;  %v2539_v4 = vmul.f32 %v5068_v33, %v2538_v22  ;;  %v1939_v57 = vadd.f32 %v1938_v61, %v1905_v47 }
 0x20a   : > { %v5072_v37 = vpop.eup %5071  ;;  %v7248_v43 = vadd.f32 1.0, %v5070_v12  ;;  %vm7253_vm6 = vcmp.eq.f32.partialorder %v2560_v35, 8.507059e+37  ;;  %v2635_v35 = vand.u32 2147483647, %v7205_v13 }
 0x20b   : > { %v4754_v15 = vmul.f32 -1.442695, %v2005_v29  ;;  %v5074_v8 = vpop.eup %5073  ;;  %v2540_v59 = vadd.f32 %v5068_v33, %v2539_v4  ;;  %v2548_v30 = vor.u32 1.1754944e-38, %v2547_v53  ;;  %v2552_v22 = vmul.f32 %v5072_v37, %v7178_v40 }
 0x20c   : > { %5077 = vrcp.f32 %v7248_v43  ;;  %v4759_v16 = vmul.f32 -1.442695, %v1939_v57  ;;  %v7258_v56 = vpop.eup %5075  ;;  %v7260_v53 = vadd.f32 1.0, %v5074_v8  ;;  %vm2557_vm7 = vweird.f32 %v5072_v37 }
 0x20d   : > { %v2544_v12 = vsel %vm2543_vm4, %v5068_v33, %v2540_v59  ;;  %v2553_v4 = vsub.f32 1.0, %v2552_v22  ;;  %5079 = vpow2.f32 %v4754_v15  ;;  %v2627_v29 = vmul.f32 %v7258_v56, %v7205_v13  ;;  %2188 = vmatmul.bf16.gmra.mxu0 %v6707_v25  ;;  %v7275_v33 = vpop.f32.mrf.mxu0  ;;  %vm2558_vm9 = vmor %vm2556_vm5, %vm2557_vm7 }
 0x20e   : > { %v2549_v47 = vsel %vm7244_vm3, %v2548_v30, %v2544_v12  ;;  %v2563_v15 = vor.u32 1.1754944e-38, %v2562_v6  ;;  %v2650_v59 = vand.u32 2147483647, %v7248_v43  ;;  %5081 = vrcp.f32 %v7260_v53 }
 0x20f   : > { %v3556_v57 = vsub.f32 1.0, %v2549_v47  ;;  %3796 = vst [vmem:[%s7271_s8] sm:$0xff] %v2549_v47  ;;  %v2554_v8 = vmul.f32 %v5072_v37, %v2553_v4  ;;  %2256 = vmatmul.bf16.gmra.mxu2 %v6707_v25  ;;  %v2628_v44 = vsub.f32 1.0, %v2627_v29  ;;  %v3496_v22 = vmul.f32 %v7024_v49, %v2549_v47  ;;  %v7284_v4 = vpop.f32.mrf.mxu2 }
 0x210   : > { %v2006_v42 = vpop.f32.mrf.mxu3  ;;  %v7280_v30 = vpop.f32.mrf.mxu1  ;;  %5083 = vpow2.f32 %v4759_v16  ;;  %vm2632_vm10 = vweird.f32 %v7258_v56  ;;  %vm7291_vm11 = vcmp.eq.f32.partialorder %v2635_v35, 8.507059e+37  ;;  %v2638_v47 = vor.u32 1.1754944e-38, %v2637_v1 }
 0x211   : > { %v3616_v12 = vmul.f32 %v3556_v57, %v7024_v49  ;;  %v2555_v6 = vadd.f32 %v5072_v37, %v2554_v8  ;;  %v2629_v29 = vmul.f32 %v7258_v56, %v2628_v44  ;;  %vm2646_vm12 = vweird.f32 %v7248_v43  ;;  %vm2633_vm13 = vmor %vm2631_vm8, %vm2632_vm10 }
 0x212   : > { %v5078_v25 = vpop.eup %5077  ;;  %v2652_v1 = vand.u32 2147483648, %v7248_v43  ;;  %vm7316_vm15 = vcmp.eq.f32.partialorder %v2650_v59, 8.507059e+37  ;;  %vm2721_vm3 = vweird.f32 %v7260_v53 }
 0x213   : > { %v5080_v49 = vpop.eup %5079  ;;  %v3676_v57 = vadd.f32 %v3616_v12, %v3496_v22  ;;  %v2559_v55 = vsel %vm2558_vm9, %v5072_v37, %v2555_v6  ;;  %v2642_v16 = vmul.f32 %v5078_v25, %v7248_v43  ;;  %4731 = vmatmul.msk.bf16.vlgmr.msrb.gmra.mxu1 %vm1872_vm0, %v6742_v9  ;;  %4736 = vmatmul.msk.bf16.vlgmr.msrb.gmra.mxu3 %vm1872_vm0, %v6742_v9  ;;  %vm2647_vm14 = vweird.f32 %v5078_v25 }
 0x214   : > { %v2564_v40 = vsel %vm7253_vm6, %v2563_v15, %v2559_v55  ;;  %v2630_v35 = vadd.f32 %v7258_v56, %v2629_v29  ;;  %v7305_v8 = vadd.f32 1.0, %v5080_v49  ;;  %v5082_v61 = vpop.eup %5081  ;;  %v2007_v22 = vadd.f32 %v2006_v42, %v7209_v52  ;;  %vm2648_vm1 = vmor %vm2646_vm12, %vm2647_vm14 }
 0x215   : > { %3736 = vst [vmem:[%s7309_s12] sm:$0xff] %v3676_v57  ;;  %v3557_v37 = vsub.f32 1.0, %v2564_v40  ;;  %v2643_v9 = vsub.f32 1.0, %v2642_v16  ;;  %v3497_v15 = vmul.f32 %v7036_v2, %v2564_v40  ;;  %v2717_v29 = vmul.f32 %v5082_v61, %v7260_v53  ;;  %v7333_v63 = vpop.f32.mrf.mxu0 }
 0x216   : > { %3797 = vst [vmem:[%s7271_s8 + $0x8] sm:$0xff] %v2564_v40  ;;  %v2634_v44 = vsel %vm2633_vm13, %v7258_v56, %v2630_v35  ;;  %5085 = vrcp.f32 %v7305_v8  ;;  %v5084_v12 = vpop.eup %5083  ;;  %v2653_v16 = vor.u32 1.1754944e-38, %v2652_v1  ;;  %v2725_v56 = vand.u32 2147483647, %v7260_v53 }
 0x217   : > { %v3617_v13 = vmul.f32 %v3557_v37, %v7036_v2  ;;  %v2639_v6 = vsel %vm7291_vm11, %v2638_v47, %v2634_v44  ;;  %v2644_v59 = vmul.f32 %v5078_v25, %v2643_v9  ;;  %v2727_v40 = vand.u32 2147483648, %v7260_v53 }
 0x218   : > { %v2009_v49 = vpop.f32.mrf.mxu3  ;;  %v3562_v57 = vsub.f32 1.0, %v2639_v6  ;;  %3802 = vst [vmem:[%s7271_s8 + $0x30] sm:$0xff] %v2639_v6  ;;  %v2718_v52 = vsub.f32 1.0, %v2717_v29  ;;  %v2740_v2 = vand.u32 2147483647, %v7305_v8  ;;  %v1943_v37 = vpop.f32.mrf.mxu1  ;;  %v3502_v47 = vmul.f32 %v7033_v58, %v2639_v6 }
 0x219   : > { %v3677_v35 = vadd.f32 %v3617_v13, %v3497_v15  ;;  %v2645_v42 = vadd.f32 %v5078_v25, %v2644_v59  ;;  %v7340_v1 = vadd.f32 1.0, %v5084_v12  ;;  %v4760_v44 = vmul.f32 -1.442695, %v2007_v22  ;;  %v7343_v15 = vpop.f32.mrf.mxu2 }
 0x21a   : > { %v3622_v9 = vmul.f32 %v3562_v57, %v7033_v58  ;;  %v2719_v59 = vmul.f32 %v5082_v61, %v2718_v52  ;;  %vm2722_vm2 = vweird.f32 %v5082_v61  ;;  %v1942_v6 = vadd.f32 %v7280_v30, %v7213_v10 }
 0x21b   : > { %3737 = vst [vmem:[%s7309_s12 + $0x8] sm:$0xff] %v3677_v35  ;;  %v2649_v13 = vsel %vm2648_vm1, %v5078_v25, %v2645_v42  ;;  %v2742_v57 = vand.u32 2147483648, %v7305_v8  ;;  %5087 = vrcp.f32 %v7340_v1  ;;  %vm2723_vm4 = vmor %vm2721_vm3, %vm2722_vm2  ;;  %vm2726_vm5 = vcmp.eq.f32.partialorder %v2725_v56, 8.507059e+37 }
 0x21c   : > { %v5086_v29 = vpop.eup %5085  ;;  %v3682_v58 = vadd.f32 %v3622_v9, %v3502_v47  ;;  %v2654_v43 = vsel %vm7316_vm15, %v2653_v16, %v2649_v13  ;;  %v2720_v12 = vadd.f32 %v5082_v61, %v2719_v59  ;;  %v2728_v30 = vor.u32 1.1754944e-38, %v2727_v40 }
 0x21d   : > { %v3563_v22 = vsub.f32 1.0, %v2654_v43  ;;  %3803 = vst [vmem:[%s7271_s8 + $0x38] sm:$0xff] %v2654_v43  ;;  %v2732_v25 = vmul.f32 %v5086_v29, %v7305_v8  ;;  %v3503_v10 = vmul.f32 %v7039_v3, %v2654_v43  ;;  %5089 = vpow2.f32 %v4760_v44 }
 0x21e   : > { %3742 = vst [vmem:[%s7309_s12 + $0x30] sm:$0xff] %v3682_v58  ;;  %v2724_v16 = vsel %vm2723_vm4, %v5082_v61, %v2720_v12  ;;  %v4765_v42 = vmul.f32 -1.442695, %v1942_v6  ;;  %vm2736_vm6 = vweird.f32 %v7305_v8  ;;  %vm7358_vm7 = vcmp.eq.f32.partialorder %v2740_v2, 8.507059e+37  ;;  %v7372_v12 = vpop.f32.mrf.mxu0 }
 0x21f   : > { %v3623_v55 = vmul.f32 %v3563_v22, %v7039_v3  ;;  %v2733_v35 = vsub.f32 1.0, %v2732_v25  ;;  %v2729_v52 = vsel %vm2726_vm5, %v2728_v30, %v2724_v16  ;;  %v2743_v47 = vor.u32 1.1754944e-38, %v2742_v57 }
 0x220   : > { %v3568_v13 = vsub.f32 1.0, %v2729_v52  ;;  %3808 = vst [vmem:[%s7271_s8 + $0x60] sm:$0xff] %v2729_v52  ;;  %vm2737_vm8 = vweird.f32 %v5086_v29  ;;  %v2011_v40 = vpop.f32.mrf.mxu3  ;;  %v3508_v3 = vmul.f32 %v7056_v36, %v2729_v52  ;;  %5091 = vpow2.f32 %v4765_v42  ;;  %v1946_v57 = vpop.f32.mrf.mxu1 }
 0x221   : > { %v3683_v9 = vadd.f32 %v3623_v55, %v3503_v10  ;;  %v2734_v56 = vmul.f32 %v5086_v29, %v2733_v35  ;;  %v5088_v44 = vpop.eup %5087  ;;  %v2010_v61 = vadd.f32 %v2009_v49, %v7217_v31  ;;  %v1944_v59 = vadd.f32 %v1943_v37, %v7224_v11  ;;  %vm2738_vm9 = vmor %vm2736_vm6, %vm2737_vm8  ;;  %v7381_v25 = vpop.f32.mrf.mxu2 }
 0x222   : > { %v3628_v2 = vmul.f32 %v3568_v13, %v7056_v36  ;;  %v2807_v58 = vmul.f32 %v5088_v44, %v7340_v1  ;;  %v2815_v43 = vand.u32 2147483647, %v7340_v1  ;;  %v2817_v31 = vand.u32 2147483648, %v7340_v1 }
 0x223   : > { %3743 = vst [vmem:[%s7309_s12 + $0x38] sm:$0xff] %v3683_v9  ;;  %v2735_v6 = vadd.f32 %v5086_v29, %v2734_v56  ;;  %4732 = vmatmul.msk.bf16.gmra.mxu1 %vm1872_vm0, %v6760_v23  ;;  %v5090_v22 = vpop.eup %5089  ;;  %v4766_v36 = vmul.f32 -1.442695, %v2010_v61  ;;  %v4771_v11 = vmul.f32 -1.442695, %v1944_v59  ;;  %v2012_v49 = vadd.f32 %v2011_v40, %v7232_v62  ;;  %4737 = vmatmul.msk.bf16.gmra.mxu3 %vm1872_vm0, %v6760_v23 }
 0x224   : > { %v3688_v37 = vadd.f32 %v3628_v2, %v3508_v3  ;;  %v2808_v30 = vsub.f32 1.0, %v2807_v58  ;;  %v7383_v55 = vadd.f32 1.0, %v5090_v22  ;;  %v1947_v35 = vadd.f32 %v1946_v57, %v7236_v45 }
 0x225   : > { %v2739_v10 = vsel %vm2738_vm9, %v5086_v29, %v2735_v6  ;;  %5093 = vpow2.f32 %v4766_v36  ;;  %v4772_v16 = vmul.f32 -1.442695, %v2012_v49  ;;  %vm2812_vm10 = vweird.f32 %v5088_v44 }
 0x226   : > { %v2744_v8 = vsel %vm7358_vm7, %v2743_v47, %v2739_v10  ;;  %3748 = vst [vmem:[%s7309_s12 + $0x60] sm:$0xff] %v3688_v37  ;;  %v2809_v42 = vmul.f32 %v5088_v44, %v2808_v30  ;;  %5095 = vrcp.f32 %v7383_v55  ;;  %v5092_v23 = vpop.eup %5091  ;;  %v7392_v29 = vadd.f32 %v7129_v54, %v7013_v17 }
 0x227   : > { %v3569_v62 = vsub.f32 1.0, %v2744_v8  ;;  %v3509_v52 = vmul.f32 %v7062_v14, %v2744_v8  ;;  %3809 = vst [vmem:[%s7271_s8 + $0x68] sm:$0xff] %v2744_v8  ;;  %vm2811_vm11 = vweird.f32 %v7340_v1  ;;  %5097 = vpow2.f32 %v4771_v11 }
 0x228   : > { %v2810_v45 = vadd.f32 %v5088_v44, %v2809_v42  ;;  %v7398_v47 = vadd.f32 1.0, %v5092_v23  ;;  %5099 = vpow2.f32 %v4772_v16  ;;  %v7402_v9 = vadd.f32 %v7219_v21, %v7001_v38  ;;  %vm2813_vm12 = vmor %vm2811_vm11, %vm2812_vm10  ;;  %v2014_v22 = vpop.f32.mrf.mxu3 }
 0x229   : > { %v3629_v53 = vmul.f32 %v3569_v62, %v7062_v14  ;;  %v7405_v54 = vperm.slane %v6988_v60, 3  ;;  %v2818_v13 = vor.u32 1.1754944e-38, %v2817_v31  ;;  %v4777_v56 = vmul.f32 -1.442695, %v1947_v35  ;;  %v7436_v49 = vpop.f32.mrf.mxu2  ;;  %v1948_v62 = vpop.f32.mrf.mxu1 }
 0x22a   : > { %v2814_v1 = vsel %vm2813_vm12, %v5088_v44, %v2810_v45  ;;  %vm2816_vm13 = vcmp.eq.f32.partialorder %v2815_v43, 8.507059e+37  ;;  %5101 = vrcp.f32 %v7398_v47  ;;  %v7410_v3 = vadd.f32 %v7226_v41, %v7013_v17 }
 0x22b   : > { %v3689_v40 = vadd.f32 %v3629_v53, %v3509_v52  ;;  %v5094_v14 = vpop.eup %5093  ;;  %v7414_v21 = vadd.f32 %v7275_v33, %v7001_v38  ;;  %v7418_v60 = vadd.f32 %v7284_v4, %v7013_v17  ;;  %v2819_v61 = vsel %vm2816_vm13, %v2818_v13, %v2814_v1  ;;  %v7429_v33 = vpop.f32.mrf.mxu0 }
 0x22c   : > { %v5096_v59 = vpop.eup %5095  ;;  %v3574_v44 = vsub.f32 1.0, %v2819_v61  ;;  %v2830_v2 = vand.u32 2147483647, %v7383_v55  ;;  %v2832_v6 = vand.u32 2147483648, %v7383_v55  ;;  %v7423_v58 = vadd.f32 1.0, %v5094_v14  ;;  %3814 = vst [vmem:[%s7271_s8 + $0x90] sm:$0xff] %v2819_v61 }
 0x22d   : > { %3749 = vst [vmem:[%s7309_s12 + $0x68] sm:$0xff] %v3689_v40  ;;  %v5098_v41 = vpop.eup %5097  ;;  %v7427_v43 = vadd.f32 %v7333_v63, %v7001_v38  ;;  %v2822_v4 = vmul.f32 %v5096_v59, %v7383_v55  ;;  %v2905_v57 = vand.u32 2147483647, %v7398_v47  ;;  %5103 = vpow2.f32 %v4777_v56 }
 0x22e   : > { %v5100_v31 = vpop.eup %5099  ;;  %v3514_v36 = vmul.f32 %v7059_v7, %v2819_v61  ;;  %v3634_v11 = vmul.f32 %v3574_v44, %v7059_v7  ;;  %v2907_v37 = vand.u32 2147483648, %v7398_v47  ;;  %5105 = vrcp.f32 %v7423_v58 }
 0x22f   : > { %v2823_v38 = vsub.f32 1.0, %v2822_v4  ;;  %vm2826_vm14 = vweird.f32 %v7383_v55  ;;  %v7441_v63 = vadd.f32 1.0, %v5098_v41  ;;  %v7443_v10 = vadd.f32 1.0, %v5100_v31 }
 0x230   : > { %v5102_v30 = vpop.eup %5101  ;;  %v3694_v8 = vadd.f32 %v3634_v11, %v3514_v36  ;;  %vm7445_vm15 = vcmp.eq.f32.partialorder %v2830_v2, 8.507059e+37  ;;  %v2833_v7 = vor.u32 1.1754944e-38, %v2832_v6  ;;  %v2922_v35 = vand.u32 2147483648, %v7423_v58 }
 0x231   : > { %v2824_v42 = vmul.f32 %v5096_v59, %v2823_v38  ;;  %vm2827_vm1 = vweird.f32 %v5096_v59  ;;  %v2897_v23 = vmul.f32 %v5102_v30, %v7398_v47  ;;  %v2920_v52 = vand.u32 2147483647, %v7423_v58  ;;  %v7495_v16 = vpop.f32.mrf.mxu2 }
 0x232   : > { %3754 = vst [vmem:[%s7309_s12 + $0x90] sm:$0xff] %v3694_v8  ;;  %vm2901_vm2 = vweird.f32 %v7398_v47  ;;  %vm7454_vm3 = vcmp.eq.f32.partialorder %v2905_v57, 8.507059e+37  ;;  %v2908_v45 = vor.u32 1.1754944e-38, %v2907_v37  ;;  %5107 = vrcp.f32 %v7441_v63  ;;  %vm2828_vm5 = vmor %vm2826_vm14, %vm2827_vm1  ;;  %v7487_v37 = vpop.f32.mrf.mxu3 }
 0x233   : > { %4733 = vmatmul.msk.bf16.gmra.mxu1 %vm1872_vm0, %v6796_v27  ;;  %v5104_v13 = vpop.eup %5103  ;;  %v2825_v56 = vadd.f32 %v5096_v59, %v2824_v42  ;;  %v2898_v40 = vsub.f32 1.0, %v2897_v23  ;;  %vm2916_vm4 = vweird.f32 %v7423_v58  ;;  %5109 = vrcp.f32 %v7443_v10  ;;  %4738 = vmatmul.msk.bf16.gmra.mxu3 %vm1872_vm0, %v6796_v27 }
 0x234   : > { %v2015_v1 = vadd.f32 %v2014_v22, %v7392_v29  ;;  %v5106_v14 = vpop.eup %5105  ;;  %vm2902_vm6 = vweird.f32 %v5102_v30  ;;  %v2923_v61 = vor.u32 1.1754944e-38, %v2922_v35  ;;  %v2997_v44 = vand.u32 2147483648, %v7441_v63 }
 0x235   : > { %v1949_v2 = vadd.f32 %v1948_v62, %v7402_v9  ;;  %v2829_v6 = vsel %vm2828_vm5, %v5096_v59, %v2825_v56  ;;  %v2899_v41 = vmul.f32 %v5102_v30, %v2898_v40  ;;  %v2912_v4 = vmul.f32 %v5106_v14, %v7423_v58  ;;  %v7483_v9 = vpop.f32.mrf.mxu0  ;;  %vm2903_vm9 = vmor %vm2901_vm2, %vm2902_vm6 }
 0x236   : > { %vm7472_vm7 = vcmp.eq.f32.partialorder %v2920_v52, 8.507059e+37  ;;  %v2995_v27 = vand.u32 2147483647, %v7441_v63  ;;  %v2834_v55 = vsel %vm7445_vm15, %v2833_v7, %v2829_v6  ;;  %v3010_v57 = vand.u32 2147483647, %v7443_v10 }
 0x237   : > { %v3012_v22 = vand.u32 2147483648, %v7443_v10  ;;  %v7481_v31 = vadd.f32 1.0, %v5104_v13  ;;  %v3575_v59 = vsub.f32 1.0, %v2834_v55  ;;  %3815 = vst [vmem:[%s7271_s8 + $0x98] sm:$0xff] %v2834_v55  ;;  %v2900_v36 = vadd.f32 %v5102_v30, %v2899_v41 }
 0x238   : > { %v2913_v11 = vsub.f32 1.0, %v2912_v4  ;;  %vm2991_vm8 = vweird.f32 %v7441_v63  ;;  %v7489_v38 = vpop.eup %5107  ;;  %v3515_v8 = vmul.f32 %v7065_v26, %v2834_v55  ;;  %vm2917_vm10 = vweird.f32 %v5106_v14 }
 0x239   : > { %v2998_v7 = vor.u32 1.1754944e-38, %v2997_v44  ;;  %vm3006_vm11 = vweird.f32 %v7443_v10  ;;  %5111 = vrcp.f32 %v7481_v31  ;;  %v5110_v35 = vpop.eup %5109  ;;  %v3635_v62 = vmul.f32 %v3575_v59, %v7065_v26  ;;  %vm2918_vm14 = vmor %vm2916_vm4, %vm2917_vm10 }
 0x23a   : > { %v2904_v42 = vsel %vm2903_vm9, %v5102_v30, %v2900_v36  ;;  %v2914_v23 = vmul.f32 %v5106_v14, %v2913_v11  ;;  %v2987_v52 = vmul.f32 %v7489_v38, %v7441_v63  ;;  %vm7504_vm12 = vcmp.eq.f32.partialorder %v2995_v27, 8.507059e+37  ;;  %v1951_v30 = vpop.f32.mrf.mxu1 }
 0x23b   : > { %v2909_v47 = vsel %vm7454_vm3, %v2908_v45, %v2904_v42  ;;  %v3002_v56 = vmul.f32 %v5110_v35, %v7443_v10  ;;  %vm7509_vm13 = vcmp.eq.f32.partialorder %v3010_v57, 8.507059e+37  ;;  %v3013_v26 = vor.u32 1.1754944e-38, %v3012_v22 }
 0x23c   : > { %v3695_v44 = vadd.f32 %v3635_v62, %v3515_v8  ;;  %v3580_v6 = vsub.f32 1.0, %v2909_v47  ;;  %3820 = vst [vmem:[%s7271_s8 + $0xc0] sm:$0xff] %v2909_v47  ;;  %v2915_v41 = vadd.f32 %v5106_v14, %v2914_v23  ;;  %v3085_v53 = vand.u32 2147483647, %v7481_v31 }
 0x23d   : > { %v3520_v45 = vmul.f32 %v7082_v46, %v2909_v47  ;;  %v2988_v4 = vsub.f32 1.0, %v2987_v52  ;;  %vm2992_vm15 = vweird.f32 %v7489_v38  ;;  %v3003_v27 = vsub.f32 1.0, %v3002_v56  ;;  %v7540_v29 = vpop.f32.mrf.mxu0  ;;  %v2019_v56 = vpop.f32.mrf.mxu3 }
 0x23e   : > { %3755 = vst [vmem:[%s7309_s12 + $0x98] sm:$0xff] %v3695_v44  ;;  %v3640_v55 = vmul.f32 %v3580_v6, %v7082_v46  ;;  %v2919_v57 = vsel %vm2918_vm14, %v5106_v14, %v2915_v41  ;;  %vm3081_vm1 = vweird.f32 %v7481_v31  ;;  %v4778_v22 = vmul.f32 -1.442695, %v2015_v1  ;;  %vm7535_vm3 = vmor %vm2991_vm8, %vm2992_vm15  ;;  %v7548_v44 = vpop.f32.mrf.mxu2 }
 0x23f   : > { %v4783_v59 = vmul.f32 -1.442695, %v1949_v2  ;;  %v5112_v36 = vpop.eup %5111  ;;  %v2924_v11 = vsel %vm7472_vm7, %v2923_v61, %v2919_v57  ;;  %v2989_v58 = vmul.f32 %v7489_v38, %v2988_v4  ;;  %v3004_v8 = vmul.f32 %v5110_v35, %v3003_v27  ;;  %v5353_v61 = vld [vmem:[%s5838_s17 + $0x140] sm:$0xff] }
 0x240   : > { %vm3007_vm2 = vweird.f32 %v5110_v35  ;;  %v3700_v62 = vadd.f32 %v3640_v55, %v3520_v45  ;;  %v3581_v42 = vsub.f32 1.0, %v2924_v11  ;;  %3821 = vst [vmem:[%s7271_s8 + $0xc8] sm:$0xff] %v2924_v11  ;;  %v3077_v23 = vmul.f32 %v5112_v36, %v7481_v31 }
 0x241   : > { %v3087_v46 = vand.u32 2147483648, %v7481_v31  ;;  %v3521_v14 = vmul.f32 %v7088_v20, %v2924_v11  ;;  %v2990_v1 = vadd.f32 %v7489_v38, %v2989_v58  ;;  %v3005_v2 = vadd.f32 %v5110_v35, %v3004_v8  ;;  %vm3008_vm4 = vmor %vm3006_vm11, %vm3007_vm2 }
 0x242   : > { %5113 = vpow2.f32 %v4778_v22  ;;  %3760 = vst [vmem:[%s7309_s12 + $0xc0] sm:$0xff] %v3700_v62  ;;  %v3641_v52 = vmul.f32 %v3581_v42, %v7088_v20  ;;  %v3078_v47 = vsub.f32 1.0, %v3077_v23  ;;  %vm3082_vm5 = vweird.f32 %v5112_v36  ;;  %v5349_v62 = vld [vmem:[%s5838_s17 + $0xe0] sm:$0xff] }
 0x243   : > { %5115 = vpow2.f32 %v4783_v59  ;;  %v2994_v63 = vsel %vm7535_vm3, %v7489_v38, %v2990_v1  ;;  %v3009_v6 = vsel %vm3008_vm4, %v5110_v35, %v3005_v2  ;;  %v2017_v41 = vadd.f32 %v7487_v37, %v7410_v3  ;;  %4734 = vmatmul.msk.bf16.gmra.mxu1 %vm1872_vm0, %v6866_v51  ;;  %4739 = vmatmul.msk.bf16.gmra.mxu3 %vm1872_vm0, %v6866_v51  ;;  %vm3083_vm7 = vmor %vm3081_vm1, %vm3082_vm5 }
 0x244   : > { %v1952_v20 = vadd.f32 %v1951_v30, %v7414_v21  ;;  %v3701_v10 = vadd.f32 %v3641_v52, %v3521_v14  ;;  %v2999_v45 = vsel %vm7504_vm12, %v2998_v7, %v2994_v63  ;;  %v3014_v4 = vsel %vm7509_vm13, %v3013_v26, %v3009_v6  ;;  %v1953_v30 = vpop.f32.mrf.mxu1  ;;  %v5352_v14 = vld [vmem:[%s5838_s17 + $0x118] sm:$0xff] }
 0x245   : > { %v3079_v38 = vmul.f32 %v5112_v36, %v3078_v47  ;;  %v3586_v35 = vsub.f32 1.0, %v2999_v45  ;;  %3826 = vst [vmem:[%s7271_s8 + $0xf0] sm:$0xff] %v2999_v45  ;;  %v3587_v3 = vsub.f32 1.0, %v3014_v4  ;;  %vm7562_vm6 = vcmp.eq.f32.partialorder %v3085_v53, 8.507059e+37  ;;  %v7604_v47 = vpop.f32.mrf.mxu0  ;;  %v2021_v6 = vpop.f32.mrf.mxu3 }
 0x246   : > { %v3088_v37 = vor.u32 1.1754944e-38, %v3087_v46  ;;  %3761 = vst [vmem:[%s7309_s12 + $0xc8] sm:$0xff] %v3701_v10  ;;  %v3526_v7 = vmul.f32 %v7085_v18, %v2999_v45  ;;  %v3527_v13 = vmul.f32 %v7091_v48, %v3014_v4  ;;  %v4784_v26 = vmul.f32 -1.442695, %v2017_v41  ;;  %v7615_v10 = vpop.f32.mrf.mxu2 }
 0x247   : > { %v3080_v40 = vadd.f32 %v5112_v36, %v3079_v38  ;;  %v3646_v51 = vmul.f32 %v3586_v35, %v7085_v18  ;;  %v3647_v55 = vmul.f32 %v3587_v3, %v7091_v48  ;;  %3827 = vst [vmem:[%s7271_s8 + $0xf8] sm:$0xff] %v3014_v4  ;;  %v4789_v53 = vmul.f32 -1.442695, %v1952_v20 }
 0x248   : > { %v5114_v27 = vpop.eup %5113  ;;  %v2020_v57 = vadd.f32 %v2019_v56, %v7418_v60  ;;  %5117 = vpow2.f32 %v4784_v26  ;;  %v1954_v18 = vadd.f32 %v1953_v30, %v7427_v43  ;;  %v7584_v60 = vmul.f32 2.0, %v5349_v62  ;;  %v5351_v43 = vld [vmem:[%s5838_s17 + $0xe8] sm:$0xff] }
 0x249   : > { %v5116_v22 = vpop.eup %5115  ;;  %v3084_v59 = vsel %vm3083_vm7, %v5112_v36, %v3080_v40  ;;  %v7576_v11 = vadd.f32 1.0, %v5114_v27  ;;  %v3706_v48 = vadd.f32 %v3646_v51, %v3526_v7  ;;  %v3707_v58 = vadd.f32 %v3647_v55, %v3527_v13  ;;  %v5350_v36 = vld [vmem:[%s5838_s17 + $0x110] sm:$0xff] }
 0x24a   : > { %v3089_v31 = vsel %vm7562_vm6, %v3088_v37, %v3084_v59  ;;  %v7581_v8 = vadd.f32 1.0, %v5116_v22  ;;  %v7587_v42 = vmul.f32 2.0, %v5350_v36  ;;  %v7592_v46 = vmul.f32 2.0, %v5351_v43 }
 0x24b   : > { %v3592_v23 = vsub.f32 1.0, %v3089_v31  ;;  %3832 = vst [vmem:[%s7271_s8 + $0x120] sm:$0xff] %v3089_v31  ;;  %5119 = vrcp.f32 %v7576_v11  ;;  %v7595_v1 = vmul.f32 2.0, %v5352_v14  ;;  %v7598_v2 = vmul.f32 2.0, %v5353_v61 }
 0x24c   : > { %3766 = vst [vmem:[%s7309_s12 + $0xf0] sm:$0xff] %v3706_v48  ;;  %5121 = vrcp.f32 %v7581_v8  ;;  %v1988_v52 = vadd.f32 %v7343_v15, %v7013_v17  ;;  %v3532_v56 = vmul.f32 %v7106_v24, %v3089_v31  ;;  %v2034_v41 = vadd.f32 %v7372_v12, %v7241_v50  ;;  %v2067_v37 = vpop.f32.mrf.mxu1 }
 0x24d   : > { %3767 = vst [vmem:[%s7309_s12 + $0xf8] sm:$0xff] %v3707_v58  ;;  %v3652_v63 = vmul.f32 %v3592_v23, %v7106_v24  ;;  %5123 = vpow2.f32 %v4789_v53  ;;  %v7613_v20 = vadd.f32 %v7381_v25, %v7405_v54  ;;  %v4790_v17 = vmul.f32 -1.442695, %v2020_v57  ;;  %v7666_v62 = vpop.f32.mrf.mxu0 }
 0x24e   : > { %v4795_v15 = vmul.f32 -1.442695, %v1954_v18  ;;  %v5118_v45 = vpop.eup %5117  ;;  %v7619_v4 = vadd.f32 %v7429_v33, %v7241_v50  ;;  %v7623_v24 = vadd.f32 %v7436_v49, %v7405_v54  ;;  %v7627_v12 = vadd.f32 %v7483_v9, %v7241_v50 }
 0x24f   : > { %v3712_v38 = vadd.f32 %v3652_v63, %v3532_v56  ;;  %v7631_v25 = vadd.f32 %v7495_v16, %v7405_v54  ;;  %v7633_v35 = vadd.f32 1.0, %v5118_v45  ;;  %5125 = vpow2.f32 %v4790_v17  ;;  %v2135_v63 = vpop.f32.mrf.mxu3 }
 0x250   : > { %v2022_v3 = vadd.f32 %v2021_v6, %v1988_v52  ;;  %v7637_v33 = vadd.f32 %v7540_v29, %v7241_v50  ;;  %v3100_v49 = vand.u32 2147483647, %v7576_v11  ;;  %v3102_v9 = vand.u32 2147483648, %v7576_v11  ;;  %v7674_v52 = vpop.f32.mrf.mxu2 }
 0x251   : > { %v5120_v21 = vpop.eup %5119  ;;  %3772 = vst [vmem:[%s7309_s12 + $0x120] sm:$0xff] %v3712_v38  ;;  %5127 = vpow2.f32 %v4795_v15  ;;  %v7644_v16 = vadd.f32 %v7548_v44, %v7405_v54  ;;  %vm3096_vm8 = vweird.f32 %v7576_v11  ;;  %vm3171_vm9 = vweird.f32 %v7581_v8 }
 0x252   : > { %v5122_v30 = vpop.eup %5121  ;;  %v3092_v7 = vmul.f32 %v5120_v21, %v7576_v11  ;;  %5129 = vrcp.f32 %v7633_v35  ;;  %v3175_v40 = vand.u32 2147483647, %v7581_v8  ;;  %v3177_v26 = vand.u32 2147483648, %v7581_v8 }
 0x253   : > { %v5124_v29 = vpop.eup %5123  ;;  %v3167_v13 = vmul.f32 %v5122_v30, %v7581_v8  ;;  %v4796_v44 = vmul.f32 -1.442695, %v2022_v3  ;;  %v2068_v55 = vadd.f32 %v2067_v37, %v2034_v41  ;;  %4735 = vmatmul.msk.bf16.gmra.mxu1 %vm1872_vm0, %v6925_v0  ;;  %vm7657_vm10 = vcmp.eq.f32.partialorder %v3100_v49, 8.507059e+37  ;;  %4740 = vmatmul.msk.bf16.gmra.mxu3 %vm1872_vm0, %v6925_v0 }
 0x254   : > { %v3093_v27 = vsub.f32 1.0, %v3092_v7  ;;  %v7653_v51 = vadd.f32 1.0, %v5124_v29  ;;  %v3103_v57 = vor.u32 1.1754944e-38, %v3102_v9  ;;  %v3190_v59 = vand.u32 2147483647, %v7633_v35 }
 0x255   : > { %v3168_v22 = vsub.f32 1.0, %v3167_v13  ;;  %v5126_v18 = vpop.eup %5125  ;;  %vm3097_vm11 = vweird.f32 %v5120_v21  ;;  %v3192_v58 = vand.u32 2147483648, %v7633_v35  ;;  %vm3172_vm12 = vweird.f32 %v5122_v30 }
 0x256   : > { %v3094_v48 = vmul.f32 %v5120_v21, %v3093_v27  ;;  %5131 = vrcp.f32 %v7653_v51  ;;  %v7668_v23 = vadd.f32 1.0, %v5126_v18  ;;  %vm7670_vm13 = vcmp.eq.f32.partialorder %v3175_v40, 8.507059e+37  ;;  %vm3098_vm0 = vmor %vm3096_vm8, %vm3097_vm11 }
 0x257   : > { %v5128_v31 = vpop.eup %5127  ;;  %v3169_v36 = vmul.f32 %v5122_v30, %v3168_v22  ;;  %5133 = vpow2.f32 %v4796_v44  ;;  %v3178_v0 = vor.u32 1.1754944e-38, %v3177_v26  ;;  %v4743_v56 = vmul.f32 -1.442695, %v2068_v55  ;;  %vm3173_vm1 = vmor %vm3171_vm9, %vm3172_vm12 }
 0x258   : > { %v5130_v43 = vpop.eup %5129  ;;  %v3095_v14 = vadd.f32 %v5120_v21, %v3094_v48  ;;  %vm3186_vm14 = vweird.f32 %v7633_v35  ;;  %vm7681_vm15 = vcmp.eq.f32.partialorder %v3190_v59, 8.507059e+37  ;;  %v3193_v45 = vor.u32 1.1754944e-38, %v3192_v58  ;;  %v7713_v48 = vpop.f32.mrf.mxu0 }
 0x259   : > { %v3170_v6 = vadd.f32 %v5122_v30, %v3169_v36  ;;  %v3182_v41 = vmul.f32 %v5130_v43, %v7633_v35  ;;  %5135 = vrcp.f32 %v7668_v23  ;;  %v7689_v11 = vadd.f32 1.0, %v5128_v31  ;;  %v2069_v36 = vpop.f32.mrf.mxu1 }
 0x25a   : > { %v3099_v15 = vsel %vm3098_vm0, %v5120_v21, %v3095_v14  ;;  %v7694_v9 = vadd.f32 %v2135_v63, %v7613_v20  ;;  %v3265_v7 = vand.u32 2147483647, %v7653_v51  ;;  %5137 = vpow2.f32 %v4743_v56 }
 0x25b   : > { %v3104_v38 = vsel %vm7657_vm10, %v3103_v57, %v3099_v15  ;;  %v3174_v3 = vsel %vm3173_vm1, %v5122_v30, %v3170_v6  ;;  %v3183_v49 = vsub.f32 1.0, %v3182_v41  ;;  %vm3187_vm2 = vweird.f32 %v5130_v43 }
 0x25c   : > { %v5132_v37 = vpop.eup %5131  ;;  %v3593_v21 = vsub.f32 1.0, %v3104_v38  ;;  %3833 = vst [vmem:[%s7271_s8 + $0x128] sm:$0xff] %v3104_v38  ;;  %v3179_v8 = vsel %vm7670_vm13, %v3178_v0, %v3174_v3  ;;  %v3533_v26 = vmul.f32 %v7112_v19, %v3104_v38  ;;  %v3267_v27 = vand.u32 2147483648, %v7653_v51  ;;  %vm3188_vm3 = vmor %vm3186_vm14, %vm3187_vm2  ;;  %v7723_v0 = vpop.f32.mrf.mxu2 }
 0x25d   : > { %v5134_v29 = vpop.eup %5133  ;;  %v3598_v13 = vsub.f32 1.0, %v3179_v8  ;;  %3838 = vst [vmem:[%s7271_s8 + $0x150] sm:$0xff] %v3179_v8  ;;  %v3184_v40 = vmul.f32 %v5130_v43, %v3183_v49  ;;  %v3257_v30 = vmul.f32 %v5132_v37, %v7653_v51  ;;  %5139 = vrcp.f32 %v7689_v11 }
 0x25e   : > { %v3653_v20 = vmul.f32 %v3593_v21, %v7112_v19  ;;  %v3538_v44 = vmul.f32 %v7109_v39, %v3179_v8  ;;  %vm3261_vm4 = vweird.f32 %v7653_v51  ;;  %vm3262_vm5 = vweird.f32 %v5132_v37  ;;  %v2137_v8 = vpop.f32.mrf.mxu3 }
 0x25f   : > { %v3658_v55 = vmul.f32 %v3598_v13, %v7109_v39  ;;  %v3185_v53 = vadd.f32 %v5130_v43, %v3184_v40  ;;  %v3258_v57 = vsub.f32 1.0, %v3257_v30  ;;  %v5136_v22 = vpop.eup %5135  ;;  %v7711_v19 = vadd.f32 1.0, %v5134_v29  ;;  %vm3263_vm7 = vmor %vm3261_vm4, %vm3262_vm5 }
 0x260   : > { %v3713_v59 = vadd.f32 %v3653_v20, %v3533_v26  ;;  %v3272_v39 = vmul.f32 %v5136_v22, %v7668_v23  ;;  %v5138_v14 = vpop.eup %5137  ;;  %vm7719_vm6 = vcmp.eq.f32.partialorder %v3265_v7, 8.507059e+37  ;;  %v3280_v56 = vand.u32 2147483647, %v7668_v23 }
 0x261   : > { %v3718_v18 = vadd.f32 %v3658_v55, %v3538_v44  ;;  %v3189_v58 = vsel %vm3188_vm3, %v5130_v43, %v3185_v53  ;;  %v3259_v31 = vmul.f32 %v5132_v37, %v3258_v57  ;;  %v3282_v43 = vand.u32 2147483648, %v7668_v23 }
 0x262   : > { %3773 = vst [vmem:[%s7309_s12 + $0x128] sm:$0xff] %v3713_v59  ;;  %v3194_v35 = vsel %vm7681_vm15, %v3193_v45, %v3189_v58  ;;  %v3268_v41 = vor.u32 1.1754944e-38, %v3267_v27  ;;  %v3273_v15 = vsub.f32 1.0, %v3272_v39  ;;  %vm3276_vm8 = vweird.f32 %v7668_v23 }
 0x263   : > { %3778 = vst [vmem:[%s7309_s12 + $0x150] sm:$0xff] %v3718_v18  ;;  %v3599_v63 = vsub.f32 1.0, %v3194_v35  ;;  %v3260_v6 = vadd.f32 %v5132_v37, %v3259_v31  ;;  %v5140_v38 = vpop.eup %5139  ;;  %v3539_v3 = vmul.f32 %v7115_v32, %v3194_v35  ;;  %vm3277_vm9 = vweird.f32 %v5136_v22  ;;  %v7760_v31 = vpop.f32.mrf.mxu0 }
 0x264   : > { %3839 = vst [vmem:[%s7271_s8 + $0x158] sm:$0xff] %v3194_v35  ;;  %5141 = vrcp.f32 %v7711_v19  ;;  %v3274_v49 = vmul.f32 %v5136_v22, %v3273_v15  ;;  %v3347_v21 = vmul.f32 %v5140_v38, %v7689_v11  ;;  %vm7739_vm10 = vcmp.eq.f32.partialorder %v3280_v56, 8.507059e+37  ;;  %vm3278_vm12 = vmor %vm3276_vm8, %vm3277_vm9 }
 0x265   : > { %v3659_v17 = vmul.f32 %v3599_v63, %v7115_v32  ;;  %v3264_v45 = vsel %vm3263_vm7, %v5132_v37, %v3260_v6  ;;  %v3283_v29 = vor.u32 1.1754944e-38, %v3282_v43  ;;  %vm3351_vm11 = vweird.f32 %v7689_v11 }
 0x266   : > { %v3269_v7 = vsel %vm7719_vm6, %v3268_v41, %v3264_v45  ;;  %v3275_v32 = vadd.f32 %v5136_v22, %v3274_v49  ;;  %v3357_v37 = vand.u32 2147483648, %v7689_v11  ;;  %v3348_v26 = vsub.f32 1.0, %v3347_v21 }
 0x267   : > { %v3719_v13 = vadd.f32 %v3659_v17, %v3539_v3  ;;  %v3604_v40 = vsub.f32 1.0, %v3269_v7  ;;  %3844 = vst [vmem:[%s7271_s8 + $0x180] sm:$0xff] %v3269_v7  ;;  %v3544_v30 = vmul.f32 %v7138_v28, %v3269_v7  ;;  %v3355_v20 = vand.u32 2147483647, %v7689_v11  ;;  %v2140_v17 = vpop.f32.mrf.mxu3  ;;  %v8937_v11 = vld [vmem:[#allocation10_spill] sm:$0xff] }
 0x268   : > { %v7751_v27 = vadd.f32 1.0, %v5138_v14  ;;  %v3279_v55 = vsel %vm3278_vm12, %v5136_v22, %v3275_v32  ;;  %v4744_v53 = vmul.f32 -1.442695, %v7694_v9  ;;  %v2070_v57 = vadd.f32 %v2069_v36, %v7619_v4  ;;  %v2072_v9 = vpop.f32.mrf.mxu1  ;;  %v7765_v14 = vpop.f32.mrf.mxu2 }
 0x269   : > { %3779 = vst [vmem:[%s7309_s12 + $0x158] sm:$0xff] %v3719_v13  ;;  %v3664_v44 = vmul.f32 %v3604_v40, %v7138_v28  ;;  %v3284_v18 = vsel %vm7739_vm10, %v3283_v29, %v3279_v55  ;;  %v3349_v23 = vmul.f32 %v5140_v38, %v3348_v26  ;;  %vm3352_vm13 = vweird.f32 %v5140_v38 }
 0x26a   : > { %v5142_v59 = vpop.eup %5141  ;;  %5143 = vrcp.f32 %v7751_v27  ;;  %v3605_v39 = vsub.f32 1.0, %v3284_v18  ;;  %3845 = vst [vmem:[%s7271_s8 + $0x188] sm:$0xff] %v3284_v18  ;;  %v3358_v28 = vor.u32 1.1754944e-38, %v3357_v37  ;;  %v3545_v4 = vmul.f32 %v7146_v34, %v3284_v18  ;;  %vm3353_vm0 = vmor %vm3351_vm11, %vm3352_vm13 }
 0x26b   : > { %v3724_v58 = vadd.f32 %v3664_v44, %v3544_v30  ;;  %v3362_v22 = vmul.f32 %v5142_v59, %v7711_v19  ;;  %v3350_v36 = vadd.f32 %v5140_v38, %v3349_v23  ;;  %v3370_v35 = vand.u32 2147483647, %v7711_v19  ;;  %v7796_v55 = vpop.f32.mrf.mxu0 }
 0x26c   : > { %v3372_v61 = vand.u32 2147483648, %v7711_v19  ;;  %v3665_v56 = vmul.f32 %v3605_v39, %v7146_v34  ;;  %5145 = vpow2.f32 %v4744_v53  ;;  %v4749_v63 = vmul.f32 -1.442695, %v2070_v57 }
 0x26d   : > { %3784 = vst [vmem:[%s7309_s12 + $0x180] sm:$0xff] %v3724_v58  ;;  %v3363_v43 = vsub.f32 1.0, %v3362_v22  ;;  %v3354_v6 = vsel %vm3353_vm0, %v5140_v38, %v3350_v36  ;;  %vm3356_vm14 = vcmp.eq.f32.partialorder %v3355_v20, 8.507059e+37  ;;  %vm3366_vm15 = vweird.f32 %v7711_v19 }
 0x26e   : > { %vm3367_vm1 = vweird.f32 %v5142_v59  ;;  %v3725_v41 = vadd.f32 %v3665_v56, %v3545_v4  ;;  %v3359_v15 = vsel %vm3356_vm14, %v3358_v28, %v3354_v6  ;;  %5147 = vpow2.f32 %v4749_v63 }
 0x26f   : > { %v3364_v3 = vmul.f32 %v5142_v59, %v3363_v43  ;;  %v3610_v45 = vsub.f32 1.0, %v3359_v15  ;;  %3850 = vst [vmem:[%s7271_s8 + $0x1b0] sm:$0xff] %v3359_v15  ;;  %vm7776_vm2 = vcmp.eq.f32.partialorder %v3370_v35, 8.507059e+37  ;;  %v2138_v49 = vadd.f32 %v2137_v8, %v7623_v24  ;;  %vm3368_vm3 = vmor %vm3366_vm15, %vm3367_vm1 }
 0x270   : > { %v5144_v34 = vpop.eup %5143  ;;  %v2073_v38 = vadd.f32 %v2072_v9, %v7627_v12  ;;  %3785 = vst [vmem:[%s7309_s12 + $0x188] sm:$0xff] %v3725_v41  ;;  %v3373_v7 = vor.u32 1.1754944e-38, %v3372_v61  ;;  %v2575_v29 = vand.u32 2147483647, %v7751_v27  ;;  %v3550_v13 = vmul.f32 %v7143_v5, %v3359_v15  ;;  %v7806_v58 = vpop.f32.mrf.mxu2 }
 0x271   : > { %v3365_v21 = vadd.f32 %v5142_v59, %v3364_v3  ;;  %v2567_v51 = vmul.f32 %v5144_v34, %v7751_v27  ;;  %v3670_v40 = vmul.f32 %v3610_v45, %v7143_v5  ;;  %v4750_v32 = vmul.f32 -1.442695, %v2138_v49 }
 0x272   : > { %v4755_v24 = vmul.f32 -1.442695, %v2073_v38  ;;  %v5146_v8 = vpop.eup %5145  ;;  %v2577_v30 = vand.u32 2147483648, %v7751_v27  ;;  %v2141_v26 = vadd.f32 %v2140_v17, %v7631_v25  ;;  %vm2572_vm4 = vweird.f32 %v5144_v34  ;;  %v8936_v25 = vld [vmem:[#allocation26_spill] sm:$0xff] }
 0x273   : > { %v3369_v12 = vsel %vm3368_vm3, %v5142_v59, %v3365_v21  ;;  %v2568_v37 = vsub.f32 1.0, %v2567_v51  ;;  %v3730_v20 = vadd.f32 %v3670_v40, %v3550_v13  ;;  %v7794_v5 = vadd.f32 1.0, %v5146_v8  ;;  %v2074_v59 = vpop.f32.mrf.mxu1 }
 0x274   : > { %v3374_v44 = vsel %vm7776_vm2, %v3373_v7, %v3369_v12  ;;  %5149 = vpow2.f32 %v4750_v32  ;;  %v5148_v19 = vpop.eup %5147  ;;  %v7801_v18 = vadd.f32 %v7604_v47, %v7241_v50  ;;  %vm2571_vm5 = vweird.f32 %v7751_v27 }
 0x275   : > { %v3611_v53 = vsub.f32 1.0, %v3374_v44  ;;  %3851 = vst [vmem:[%s7271_s8 + $0x1b8] sm:$0xff] %v3374_v44  ;;  %v2569_v57 = vmul.f32 %v5144_v34, %v2568_v37  ;;  %5151 = vpow2.f32 %v4755_v24  ;;  %v3551_v23 = vmul.f32 %v8936_v25, %v3374_v44  ;;  %vm2573_vm6 = vmor %vm2571_vm5, %vm2572_vm4 }
 0x276   : > { %3790 = vst [vmem:[%s7309_s12 + $0x1b0] sm:$0xff] %v3730_v20  ;;  %5153 = vrcp.f32 %v7794_v5  ;;  %v7810_v22 = vadd.f32 1.0, %v5148_v19  ;;  %v4756_v9 = vmul.f32 -1.442695, %v2141_v26  ;;  %v7814_v4 = vadd.f32 %v7615_v10, %v7405_v54  ;;  %v7826_v10 = vpop.f32.mrf.mxu3 }
 0x277   : > { %v3671_v39 = vmul.f32 %v3611_v53, %v8936_v25  ;;  %v2570_v28 = vadd.f32 %v5144_v34, %v2569_v57  ;;  %v7818_v47 = vadd.f32 %v7666_v62, %v7241_v50  ;;  %v7822_v27 = vadd.f32 %v7674_v52, %v7405_v54 }
 0x278   : > { %v2578_v36 = vor.u32 1.1754944e-38, %v2577_v30  ;;  %vm2576_vm7 = vcmp.eq.f32.partialorder %v2575_v29, 8.507059e+37  ;;  %5155 = vrcp.f32 %v7810_v22  ;;  %v7830_v62 = vadd.f32 %v7713_v48, %v7241_v50  ;;  %v7857_v29 = vpop.f32.mrf.mxu0  ;;  %v7869_v30 = vpop.f32.mrf.mxu2 }
 0x279   : > { %v3731_v35 = vadd.f32 %v3671_v39, %v3551_v23  ;;  %v2574_v61 = vsel %vm2573_vm6, %v5144_v34, %v2570_v28  ;;  %5157 = vpow2.f32 %v4756_v9  ;;  %v2075_v52 = vadd.f32 %v2074_v59, %v7637_v33 }
 0x27a   : > { %v5150_v56 = vpop.eup %5149  ;;  %v2579_v43 = vsel %vm2576_vm7, %v2578_v36, %v2574_v61  ;;  %v2590_v41 = vand.u32 2147483647, %v7794_v5  ;;  %v2592_v15 = vand.u32 2147483648, %v7794_v5  ;;  %v7840_v34 = vadd.f32 %v7723_v0, %v7405_v54 }
 0x27b   : > { %v5152_v63 = vpop.eup %5151  ;;  %3791 = vst [vmem:[%s7309_s12 + $0x1b8] sm:$0xff] %v3731_v35  ;;  %v3558_v6 = vsub.f32 1.0, %v2579_v43  ;;  %v7836_v3 = vadd.f32 1.0, %v5150_v56  ;;  %v7844_v48 = vadd.f32 %v7760_v31, %v7241_v50  ;;  %v2665_v33 = vand.u32 2147483647, %v7810_v22  ;;  %v2077_v24 = vpop.f32.mrf.mxu1 }
 0x27c   : > { %v5154_v17 = vpop.eup %5153  ;;  %3798 = vst [vmem:[%s7271_s8 + $0x10] sm:$0xff] %v2579_v43  ;;  %v7848_v45 = vadd.f32 1.0, %v5152_v63  ;;  %v3498_v49 = vmul.f32 %v8937_v11, %v2579_v43  ;;  %vm2586_vm8 = vweird.f32 %v7794_v5  ;;  %v2667_v0 = vand.u32 2147483648, %v7810_v22 }
 0x27d   : > { %v3618_v38 = vmul.f32 %v3558_v6, %v8937_v11  ;;  %v2582_v21 = vmul.f32 %v5154_v17, %v7794_v5  ;;  %5159 = vrcp.f32 %v7836_v3  ;;  %v4761_v31 = vmul.f32 -1.442695, %v2075_v52 }
 0x27e   : > { %5161 = vrcp.f32 %v7848_v45  ;;  %v5156_v7 = vpop.eup %5155  ;;  %vm7859_vm9 = vcmp.eq.f32.partialorder %v2590_v41, 8.507059e+37  ;;  %v2593_v32 = vor.u32 1.1754944e-38, %v2592_v15  ;;  %vm2661_vm10 = vweird.f32 %v7810_v22  ;;  %v7880_v39 = vpop.f32.mrf.mxu3 }
 0x27f   : > { %v3678_v51 = vadd.f32 %v3618_v38, %v3498_v49  ;;  %v2583_v13 = vsub.f32 1.0, %v2582_v21  ;;  %v5158_v8 = vpop.eup %5157  ;;  %v2657_v12 = vmul.f32 %v5156_v7, %v7810_v22  ;;  %vm7865_vm11 = vcmp.eq.f32.partialorder %v2665_v33, 8.507059e+37  ;;  %v8944_v49 = vld [vmem:[#allocation12_spill] sm:$0xff] }
 0x280   : > { %v2680_v26 = vand.u32 2147483647, %v7836_v3  ;;  %vm2587_vm12 = vweird.f32 %v5154_v17  ;;  %v2682_v44 = vand.u32 2147483648, %v7836_v3  ;;  %v7874_v19 = vadd.f32 1.0, %v5158_v8  ;;  %v7905_v22 = vpop.f32.mrf.mxu0 }
 0x281   : > { %3738 = vst [vmem:[%s7309_s12 + $0x10] sm:$0xff] %v3678_v51  ;;  %v2584_v20 = vmul.f32 %v5154_v17, %v2583_v13  ;;  %v2658_v53 = vsub.f32 1.0, %v2657_v12  ;;  %v2668_v57 = vor.u32 1.1754944e-38, %v2667_v0  ;;  %vm2676_vm13 = vweird.f32 %v7836_v3  ;;  %vm2588_vm14 = vmor %vm2586_vm8, %vm2587_vm12 }
 0x282   : > { %5163 = vpow2.f32 %v4761_v31  ;;  %vm2751_vm0 = vweird.f32 %v7848_v45  ;;  %v2755_v23 = vand.u32 2147483647, %v7848_v45  ;;  %vm2662_vm15 = vweird.f32 %v5156_v7 }
 0x283   : > { %v5160_v59 = vpop.eup %5159  ;;  %v2585_v25 = vadd.f32 %v5154_v17, %v2584_v20  ;;  %5165 = vrcp.f32 %v7874_v19  ;;  %v2659_v9 = vmul.f32 %v5156_v7, %v2658_v53  ;;  %vm7885_vm1 = vcmp.eq.f32.partialorder %v2680_v26, 8.507059e+37  ;;  %vm2663_vm2 = vmor %vm2661_vm10, %vm2662_vm15  ;;  %v2079_v40 = vpop.f32.mrf.mxu1  ;;  %v8945_v20 = vld [vmem:[#allocation11_spill] sm:$0xff] }
 0x284   : > { %v5162_v28 = vpop.eup %5161  ;;  %v2672_v36 = vmul.f32 %v5160_v59, %v7836_v3  ;;  %v2683_v56 = vor.u32 1.1754944e-38, %v2682_v44  ;;  %v2757_v52 = vand.u32 2147483648, %v7848_v45  ;;  %v2143_v41 = vadd.f32 %v7826_v10, %v7644_v16 }
 0x285   : > { %v2589_v61 = vsel %vm2588_vm14, %v5154_v17, %v2585_v25  ;;  %v2747_v43 = vmul.f32 %v5162_v28, %v7848_v45  ;;  %v2660_v6 = vadd.f32 %v5156_v7, %v2659_v9  ;;  %vm2677_vm3 = vweird.f32 %v5160_v59 }
 0x286   : > { %v2594_v63 = vsel %vm7859_vm9, %v2593_v32, %v2589_v61  ;;  %v2673_v5 = vsub.f32 1.0, %v2672_v36  ;;  %v2078_v33 = vadd.f32 %v2077_v24, %v7801_v18  ;;  %vm2752_vm4 = vweird.f32 %v5162_v28  ;;  %v7910_v24 = vpop.f32.mrf.mxu2  ;;  %vm2678_vm5 = vmor %vm2676_vm13, %vm2677_vm3  ;;  %v2147_v61 = vpop.f32.mrf.mxu3 }
 0x287   : > { %v3559_v15 = vsub.f32 1.0, %v2594_v63  ;;  %3799 = vst [vmem:[%s7271_s8 + $0x18] sm:$0xff] %v2594_v63  ;;  %v2748_v17 = vsub.f32 1.0, %v2747_v43  ;;  %v3499_v38 = vmul.f32 %v8944_v49, %v2594_v63  ;;  %v2664_v21 = vsel %vm2663_vm2, %v5156_v7, %v2660_v6  ;;  %vm2753_vm6 = vmor %vm2751_vm0, %vm2752_vm4 }
 0x288   : > { %v5164_v11 = vpop.eup %5163  ;;  %v2674_v0 = vmul.f32 %v5160_v59, %v2673_v5  ;;  %v2669_v10 = vsel %vm7865_vm11, %v2668_v57, %v2664_v21  ;;  %v2758_v7 = vor.u32 1.1754944e-38, %v2757_v52  ;;  %v4762_v26 = vmul.f32 -1.442695, %v2143_v41  ;;  %v8947_v41 = vld [vmem:[#allocation14_spill] sm:$0xff] }
 0x289   : > { %v7900_v31 = vpop.eup %5165  ;;  %v3619_v16 = vmul.f32 %v3559_v15, %v8944_v49  ;;  %v2749_v51 = vmul.f32 %v5162_v28, %v2748_v17  ;;  %v7907_v13 = vadd.f32 1.0, %v5164_v11  ;;  %v3564_v18 = vsub.f32 1.0, %v2669_v10  ;;  %3804 = vst [vmem:[%s7271_s8 + $0x40] sm:$0xff] %v2669_v10 }
 0x28a   : > { %v2675_v32 = vadd.f32 %v5160_v59, %v2674_v0  ;;  %v2762_v8 = vmul.f32 %v7900_v31, %v7874_v19  ;;  %v3504_v44 = vmul.f32 %v8945_v20, %v2669_v10  ;;  %vm2756_vm7 = vcmp.eq.f32.partialorder %v2755_v23, 8.507059e+37  ;;  %v7942_v0 = vpop.f32.mrf.mxu0 }
 0x28b   : > { %v3679_v12 = vadd.f32 %v3619_v16, %v3499_v38  ;;  %v2750_v37 = vadd.f32 %v5162_v28, %v2749_v51  ;;  %5167 = vrcp.f32 %v7907_v13  ;;  %v3624_v53 = vmul.f32 %v3564_v18, %v8945_v20  ;;  %v2082_v51 = vpop.f32.mrf.mxu1 }
 0x28c   : > { %v2679_v57 = vsel %vm2678_vm5, %v5160_v59, %v2675_v32  ;;  %v2763_v25 = vsub.f32 1.0, %v2762_v8  ;;  %v4767_v36 = vmul.f32 -1.442695, %v2078_v33  ;;  %v2772_v59 = vand.u32 2147483648, %v7874_v19 }
 0x28d   : > { %3739 = vst [vmem:[%s7309_s12 + $0x18] sm:$0xff] %v3679_v12  ;;  %v2684_v3 = vsel %vm7885_vm1, %v2683_v56, %v2679_v57  ;;  %v2754_v9 = vsel %vm2753_vm6, %v5162_v28, %v2750_v37  ;;  %v3684_v43 = vadd.f32 %v3624_v53, %v3504_v44  ;;  %vm2767_vm8 = vweird.f32 %v7900_v31  ;;  %v8946_v56 = vld [vmem:[#allocation13_spill] sm:$0xff]  ;;  %v8948_v44 = vld [vmem:[#allocation16_spill] sm:$0xff] }
 0x28e   : > { %v3565_v52 = vsub.f32 1.0, %v2684_v3  ;;  %3805 = vst [vmem:[%s7271_s8 + $0x48] sm:$0xff] %v2684_v3  ;;  %v2759_v63 = vsel %vm2756_vm7, %v2758_v7, %v2754_v9  ;;  %v2764_v45 = vmul.f32 %v7900_v31, %v2763_v25  ;;  %v2770_v35 = vand.u32 2147483647, %v7874_v19  ;;  %v7948_v8 = vpop.f32.mrf.mxu2 }
 0x28f   : > { %v3570_v6 = vsub.f32 1.0, %v2759_v63  ;;  %3810 = vst [vmem:[%s7271_s8 + $0x70] sm:$0xff] %v2759_v63  ;;  %v3505_v28 = vmul.f32 %v8946_v56, %v2684_v3  ;;  %vm2766_vm9 = vweird.f32 %v7874_v19  ;;  %5169 = vpow2.f32 %v4762_v26  ;;  %v2150_v3 = vpop.f32.mrf.mxu3 }
 0x290   : > { %3744 = vst [vmem:[%s7309_s12 + $0x40] sm:$0xff] %v3684_v43  ;;  %v3625_v23 = vmul.f32 %v3565_v52, %v8946_v56  ;;  %v3510_v15 = vmul.f32 %v8947_v41, %v2759_v63  ;;  %v2765_v33 = vadd.f32 %v7900_v31, %v2764_v45  ;;  %5171 = vpow2.f32 %v4767_v36  ;;  %vm2768_vm10 = vmor %vm2766_vm9, %vm2767_vm8 }
 0x291   : > { %v5168_v5 = vpop.eup %5167  ;;  %v3630_v17 = vmul.f32 %v3570_v6, %v8947_v41  ;;  %v2773_v49 = vor.u32 1.1754944e-38, %v2772_v59  ;;  %v2146_v21 = vadd.f32 %v7880_v39, %v7814_v4  ;;  %vm2771_vm11 = vcmp.eq.f32.partialorder %v2770_v35, 8.507059e+37 }
 0x292   : > { %v3685_v11 = vadd.f32 %v3625_v23, %v3505_v28  ;;  %v2837_v38 = vmul.f32 %v5168_v5, %v7907_v13  ;;  %v2769_v16 = vsel %vm2768_vm10, %v7900_v31, %v2765_v33  ;;  %v2080_v10 = vadd.f32 %v2079_v40, %v7818_v47  ;;  %v7984_v23 = vpop.f32.mrf.mxu0 }
 0x293   : > { %v3690_v19 = vadd.f32 %v3630_v17, %v3510_v15  ;;  %v2774_v18 = vsel %vm2771_vm11, %v2773_v49, %v2769_v16  ;;  %v2845_v7 = vand.u32 2147483647, %v7907_v13  ;;  %v4768_v12 = vmul.f32 -1.442695, %v2146_v21  ;;  %v8949_v15 = vld [vmem:[#allocation15_spill] sm:$0xff] }
 0x294   : > { %3745 = vst [vmem:[%s7309_s12 + $0x48] sm:$0xff] %v3685_v11  ;;  %v2838_v32 = vsub.f32 1.0, %v2837_v38  ;;  %v3571_v4 = vsub.f32 1.0, %v2774_v18  ;;  %v2847_v39 = vand.u32 2147483648, %v7907_v13  ;;  %v4773_v37 = vmul.f32 -1.442695, %v2080_v10  ;;  %v2084_v38 = vpop.f32.mrf.mxu1 }
 0x295   : > { %3750 = vst [vmem:[%s7309_s12 + $0x70] sm:$0xff] %v3690_v19  ;;  %v2148_v31 = vadd.f32 %v2147_v61, %v7822_v27  ;;  %v5170_v26 = vpop.eup %5169  ;;  %vm2842_vm12 = vweird.f32 %v5168_v5  ;;  %5173 = vpow2.f32 %v4768_v12  ;;  %v2083_v47 = vadd.f32 %v2082_v51, %v7830_v62 }
 0x296   : > { %3811 = vst [vmem:[%s7271_s8 + $0x78] sm:$0xff] %v2774_v18  ;;  %v2839_v20 = vmul.f32 %v5168_v5, %v2838_v32  ;;  %v5172_v40 = vpop.eup %5171  ;;  %v3511_v53 = vmul.f32 %v8948_v44, %v2774_v18  ;;  %v3631_v57 = vmul.f32 %v3571_v4, %v8948_v44  ;;  %v7957_v25 = vadd.f32 1.0, %v5170_v26  ;;  %v7995_v11 = vpop.f32.mrf.mxu2 }
 0x297   : > { %5175 = vpow2.f32 %v4773_v37  ;;  %vm2841_vm13 = vweird.f32 %v7907_v13  ;;  %v7960_v27 = vadd.f32 1.0, %v5172_v40  ;;  %v4774_v36 = vmul.f32 -1.442695, %v2148_v31  ;;  %v8016_v37 = vpop.f32.mrf.mxu3 }
 0x298   : > { %v2840_v9 = vadd.f32 %v5168_v5, %v2839_v20  ;;  %v3691_v61 = vadd.f32 %v3631_v57, %v3511_v53  ;;  %vm2843_vm0 = vmor %vm2841_vm13, %vm2842_vm12  ;;  %v2848_v62 = vor.u32 1.1754944e-38, %v2847_v39  ;;  %5177 = vrcp.f32 %v7957_v25 }
 0x299   : > { %v4779_v43 = vmul.f32 -1.442695, %v2083_v47  ;;  %v7965_v52 = vadd.f32 %v7765_v14, %v7405_v54  ;;  %vm2846_vm14 = vcmp.eq.f32.partialorder %v2845_v7, 8.507059e+37  ;;  %5179 = vrcp.f32 %v7960_v27 }
 0x29a   : > { %v2844_v63 = vsel %vm2843_vm0, %v5168_v5, %v2840_v9  ;;  %v7970_v13 = vadd.f32 %v7796_v55, %v7241_v50  ;;  %v7974_v59 = vadd.f32 %v7806_v58, %v7405_v54  ;;  %v7978_v6 = vadd.f32 %v7857_v29, %v7241_v50  ;;  %3751 = vst [vmem:[%s7309_s12 + $0x78] sm:$0xff] %v3691_v61  ;;  %v5354_v50 = vld [vmem:[%s6985_s7] sm:$0x3f]  ;;  %s4992_s7 = smul.u32 60, %s5472_s24 }
 0x29b   : > { %v2849_v14 = vsel %vm2846_vm14, %v2848_v62, %v2844_v63  ;;  %v5174_v45 = vpop.eup %5173  ;;  %v2860_v56 = vand.u32 2147483647, %v7957_v25  ;;  %v2862_v28 = vand.u32 2147483648, %v7957_v25  ;;  %5181 = vpow2.f32 %v4774_v36 }
 0x29c   : > { %v3576_v35 = vsub.f32 1.0, %v2849_v14  ;;  %3816 = vst [vmem:[%s7271_s8 + $0xa0] sm:$0xff] %v2849_v14  ;;  %v2935_v58 = vand.u32 2147483647, %v7960_v27  ;;  %v2937_v5 = vand.u32 2147483648, %v7960_v27  ;;  %v7988_v41 = vadd.f32 1.0, %v5174_v45  ;;  %s8719_s24 = sadd.s32 %s4992_s7, %s4978_s13 }
 0x29d   : > { %v5176_v55 = vpop.eup %5175  ;;  %5183 = vpow2.f32 %v4779_v43  ;;  %v7991_v29 = vperm.slane %v5354_v50, 4  ;;  %v3516_v17 = vmul.f32 %v8949_v15, %v2849_v14  ;;  %v7999_v19 = vperm.slane %v5354_v50, 5  ;;  %s4801_s25 = sshll.u32 %s8719_s24, 3  ;;  %s3862_s24 = scalar_lea.sflag [#allocation5], %s7202_s19 }
 0x29e   : > { %v3636_v33 = vmul.f32 %v3576_v35, %v8949_v15  ;;  %v7997_v49 = vadd.f32 1.0, %v5176_v55  ;;  %v5178_v21 = vpop.eup %5177  ;;  %vm2856_vm15 = vweird.f32 %v7957_v25  ;;  %vm2931_vm1 = vweird.f32 %v7960_v27  ;;  %v8041_v55 = vpop.f32.mrf.mxu0  ;;  %s8742_s9 = scalar_lea.hbm %s8833_s6, %s4801_s25  ;;  %s8759_s7 = scalar_lea.hbm %s8832_s5, %s4801_s25 }
 0x29f   : > { %5185 = vrcp.f32 %v7988_v41  ;;  %v5180_v16 = vpop.eup %5179  ;;  %v2852_v51 = vmul.f32 %v5178_v21, %v7957_v25  ;;  %vm8005_vm2 = vcmp.eq.f32.partialorder %v2860_v56, 8.507059e+37  ;;  %v2952_v32 = vand.u32 2147483648, %v7988_v41  ;;  %v8052_v25 = vpop.f32.mrf.mxu2  ;;  %s3899_s30 = sshll.u32 %s8742_s9, 4  ;;  %s3879_s13 = sshll.u32 %s8759_s7, 4  ;;  %s8764_s30 = int_to_ptr.hbm [resolvable:$true] %s3899_s30  ;;  %s3880_s13 = int_to_ptr.hbm [resolvable:$true] %s3879_s13 }
 0x2a0   : > { %v3696_v10 = vadd.f32 %v3636_v33, %v3516_v17  ;;  %5187 = vrcp.f32 %v7997_v49  ;;  %v2863_v7 = vor.u32 1.1754944e-38, %v2862_v28  ;;  %v2927_v12 = vmul.f32 %v5180_v16, %v7960_v27  ;;  %v8065_v18 = vpop.f32.mrf.mxu3  ;;  %s5376_s25 = sshra.s32 %s8764_s30, 4  ;;  %s5377_s25 = int_to_ptr.hbm [resolvable:$true] %s5376_s25 }
 0x2a1   : > { %vm8012_vm3 = vcmp.eq.f32.partialorder %v2935_v58, 8.507059e+37  ;;  %v2938_v39 = vor.u32 1.1754944e-38, %v2937_v5  ;;  %v5182_v31 = vpop.eup %5181  ;;  %v2853_v26 = vsub.f32 1.0, %v2852_v51  ;;  %v2950_v20 = vand.u32 2147483647, %v7988_v41  ;;  %s5378_s16 = scalar_lea.hbm %s5377_s25, 480  ;;  %p5383_p4 = scmp.lt.s32.totalorder %s5377_s25, %s8833_s6 }
 0x2a2   : > { %3756 = vst [vmem:[%s7309_s12 + $0xa0] sm:$0xff] %v3696_v10  ;;  %v2151_v47 = vadd.f32 %v2150_v3, %v7840_v34  ;;  %v2085_v40 = vadd.f32 %v2084_v38, %v7844_v48  ;;  %vm2857_vm4 = vweird.f32 %v5178_v21  ;;  %v2928_v53 = vsub.f32 1.0, %v2927_v12  ;;  %v8056_v38 = vpop.f32.mrf.mxu1  ;;  %p5379_p0 = scmp.ne.s32.totalorder %s5377_s25, %s5378_s16 }
 0x2a3   : > { %v5184_v44 = vpop.eup %5183  ;;  %v3025_v57 = vand.u32 2147483647, %v7997_v49  ;;  %v8023_v9 = vadd.f32 1.0, %v5182_v31  ;;  %v2854_v36 = vmul.f32 %v5178_v21, %v2853_v26  ;;  %vm2932_vm5 = vweird.f32 %v5180_v16  ;;  %vm2858_vm9 = vmor %vm2856_vm15, %vm2857_vm4 }
 0x2a4   : > { %vm2946_vm6 = vweird.f32 %v7988_v41  ;;  %v2953_v61 = vor.u32 1.1754944e-38, %v2952_v32  ;;  %v8026_v62 = vadd.f32 1.0, %v5184_v44  ;;  %v2929_v63 = vmul.f32 %v5180_v16, %v2928_v53  ;;  %vm2933_vm11 = vmor %vm2931_vm1, %vm2932_vm5  ;;  %p5380_p1 = pnand %p5379_p0, %p5578_p3 }
 0x2a5   : > { %v5186_v43 = vpop.eup %5185  ;;  %vm3021_vm7 = vweird.f32 %v7997_v49  ;;  %v3027_v34 = vand.u32 2147483648, %v7997_v49  ;;  %5189 = vrcp.f32 %v8023_v9  ;;  %v2855_v3 = vadd.f32 %v5178_v21, %v2854_v36 }
 0x2a6   : > { %v5188_v48 = vpop.eup %5187  ;;  %v2942_v14 = vmul.f32 %v5186_v43, %v7988_v41  ;;  %vm8032_vm8 = vcmp.eq.f32.partialorder %v2950_v20, 8.507059e+37  ;;  %v4780_v35 = vmul.f32 -1.442695, %v2151_v47  ;;  %v8036_v56 = vmul.f32 -1.442695, %v2085_v40  ;;  %p5381_p2 = pneg %p5380_p1 }
 0x2a7   : > { %v2930_v28 = vadd.f32 %v5180_v16, %v2929_v63  ;;  %v3017_v58 = vmul.f32 %v5188_v48, %v7997_v49  ;;  %vm8044_vm10 = vcmp.eq.f32.partialorder %v3025_v57, 8.507059e+37  ;;  %v3042_v50 = vand.u32 2147483648, %v8023_v9  ;;  %v8961_v57 = vld [vmem:[#allocation18_spill] sm:$0xff]  ;;  %v8962_v49 = vld [vmem:[#allocation20_spill] sm:$0xff]  ;;  %v8098_v5 = vpop.f32.mrf.mxu2 }
 0x2a8   : > { %v2859_v15 = vsel %vm2858_vm9, %v5178_v21, %v2855_v3  ;;  %v2943_v17 = vsub.f32 1.0, %v2942_v14  ;;  %v3040_v33 = vand.u32 2147483647, %v8023_v9  ;;  %5191 = vrcp.f32 %v8026_v62 }
 0x2a9   : > { %v2864_v10 = vsel %vm8005_vm2, %v2863_v7, %v2859_v15  ;;  %v2934_v51 = vsel %vm2933_vm11, %v5180_v16, %v2930_v28  ;;  %v3018_v32 = vsub.f32 1.0, %v3017_v58  ;;  %v3028_v21 = vor.u32 1.1754944e-38, %v3027_v34  ;;  %v8958_v16 = vld [vmem:[#allocation17_spill] sm:$0xff] }
 0x2aa   : > { %v3577_v12 = vsub.f32 1.0, %v2864_v10  ;;  %3817 = vst [vmem:[%s7271_s8 + $0xa8] sm:$0xff] %v2864_v10  ;;  %v2939_v27 = vsel %vm8012_vm3, %v2938_v39, %v2934_v51  ;;  %v2944_v31 = vmul.f32 %v5186_v43, %v2943_v17  ;;  %vm2947_vm12 = vweird.f32 %v5186_v43 }
 0x2ab   : > { %vm3036_vm13 = vweird.f32 %v8023_v9  ;;  %v5190_v26 = vpop.eup %5189  ;;  %v3582_v20 = vsub.f32 1.0, %v2939_v27  ;;  %3822 = vst [vmem:[%s7271_s8 + $0xd0] sm:$0xff] %v2939_v27  ;;  %v3019_v47 = vmul.f32 %v5188_v48, %v3018_v32  ;;  %vm3022_vm0 = vweird.f32 %v5188_v48  ;;  %vm2948_vm15 = vmor %vm2946_vm6, %vm2947_vm12 }
 0x2ac   : > { %v3043_v40 = vor.u32 1.1754944e-38, %v3042_v50  ;;  %v3517_v7 = vmul.f32 %v8958_v16, %v2864_v10  ;;  %v3637_v44 = vmul.f32 %v3577_v12, %v8958_v16  ;;  %v2945_v53 = vadd.f32 %v5186_v43, %v2944_v31  ;;  %vm3023_vm2 = vmor %vm3021_vm7, %vm3022_vm0  ;;  %v8092_v12 = vpop.f32.mrf.mxu0 }
 0x2ad   : > { %v3032_v4 = vmul.f32 %v5190_v26, %v8023_v9  ;;  %vm8070_vm14 = vcmp.eq.f32.partialorder %v3040_v33, 8.507059e+37  ;;  %v3522_v36 = vmul.f32 %v8961_v57, %v2939_v27  ;;  %v3642_v63 = vmul.f32 %v3582_v20, %v8961_v57  ;;  %v8963_v27 = vld [vmem:[#allocation19_spill] sm:$0xff] }
 0x2ae   : > { %v3020_v34 = vadd.f32 %v5188_v48, %v3019_v47  ;;  %vm3111_vm1 = vweird.f32 %v8026_v62  ;;  %v3117_v3 = vand.u32 2147483648, %v8026_v62  ;;  %v5192_v14 = vpop.eup %5191  ;;  %v3697_v28 = vadd.f32 %v3637_v44, %v3517_v7 }
 0x2af   : > { %v2949_v58 = vsel %vm2948_vm15, %v5186_v43, %v2945_v53  ;;  %v3033_v50 = vsub.f32 1.0, %v3032_v4  ;;  %5193 = vpow2.f32 %v4780_v35  ;;  %v3702_v15 = vadd.f32 %v3642_v63, %v3522_v36 }
 0x2b0   : > { %v2954_v41 = vsel %vm8032_vm8, %v2953_v61, %v2949_v58  ;;  %v3024_v17 = vsel %vm3023_vm2, %v5188_v48, %v3020_v34  ;;  %v3107_v33 = vmul.f32 %v5192_v14, %v8026_v62  ;;  %3757 = vst [vmem:[%s7309_s12 + $0xa8] sm:$0xff] %v3697_v28  ;;  %vm3037_vm3 = vweird.f32 %v5190_v26  ;;  %v2157_v28 = vpop.f32.mrf.mxu3 }
 0x2b1   : > { %v3583_v10 = vsub.f32 1.0, %v2954_v41  ;;  %v3029_v51 = vsel %vm8044_vm10, %v3028_v21, %v3024_v17  ;;  %v3034_v43 = vmul.f32 %v5190_v26, %v3033_v50  ;;  %3762 = vst [vmem:[%s7309_s12 + $0xd0] sm:$0xff] %v3702_v15  ;;  %v3523_v32 = vmul.f32 %v8962_v49, %v2954_v41  ;;  %v2089_v21 = vpop.f32.mrf.mxu1  ;;  %vm3038_vm4 = vmor %vm3036_vm13, %vm3037_vm3 }
 0x2b2   : > { %v3588_v35 = vsub.f32 1.0, %v3029_v51  ;;  %v3108_v45 = vsub.f32 1.0, %v3107_v33  ;;  %v3115_v61 = vand.u32 2147483647, %v8026_v62  ;;  %3823 = vst [vmem:[%s7271_s8 + $0xd8] sm:$0xff] %v2954_v41  ;;  %v3528_v31 = vmul.f32 %v8963_v27, %v3029_v51 }
 0x2b3   : > { %v3643_v48 = vmul.f32 %v3583_v10, %v8962_v49  ;;  %v3035_v20 = vadd.f32 %v5190_v26, %v3034_v43  ;;  %5195 = vpow2.f32 %v8036_v56  ;;  %3828 = vst [vmem:[%s7271_s8 + $0x100] sm:$0xff] %v3029_v51  ;;  %vm3112_vm5 = vweird.f32 %v5192_v14  ;;  %v2249_v43 = vpop.f32.mrf.mxu2 }
 0x2b4   : > { %v3648_v47 = vmul.f32 %v3588_v35, %v8963_v27  ;;  %v3109_v16 = vmul.f32 %v5192_v14, %v3108_v45  ;;  %v3118_v7 = vor.u32 1.1754944e-38, %v3117_v3  ;;  %v2153_v57 = vadd.f32 %v8016_v37, %v7965_v52  ;;  %vm3113_vm6 = vmor %vm3111_vm1, %vm3112_vm5  ;;  %v2181_v51 = vpop.f32.mrf.mxu0 }
 0x2b5   : > { %v5194_v44 = vpop.eup %5193  ;;  %v3703_v53 = vadd.f32 %v3643_v48, %v3523_v32  ;;  %v3039_v4 = vsel %vm3038_vm4, %v5190_v26, %v3035_v20  ;;  %v2088_v56 = vadd.f32 %v8056_v38, %v7970_v13  ;;  %v2124_v3 = vadd.f32 %v7869_v30, %v7405_v54  ;;  %v8964_v54 = vld [vmem:[#allocation21_spill] sm:$0xff] }
 0x2b6   : > { %v3708_v36 = vadd.f32 %v3648_v47, %v3528_v31  ;;  %v3044_v63 = vsel %vm8070_vm14, %v3043_v40, %v3039_v4  ;;  %v3110_v9 = vadd.f32 %v5192_v14, %v3109_v16  ;;  %v8112_v34 = vadd.f32 1.0, %v5194_v44 }
 0x2b7   : > { %3763 = vst [vmem:[%s7309_s12 + $0xd8] sm:$0xff] %v3703_v53  ;;  %v3589_v26 = vsub.f32 1.0, %v3044_v63  ;;  %v4786_v52 = vmul.f32 -1.442695, %v2153_v57  ;;  %v4791_v13 = vmul.f32 -1.442695, %v2088_v56  ;;  %v8122_v37 = vadd.f32 %v7905_v22, %v7991_v29 }
 0x2b8   : > { %3768 = vst [vmem:[%s7309_s12 + $0x100] sm:$0xff] %v3708_v36  ;;  %v3114_v38 = vsel %vm3113_vm6, %v5192_v14, %v3110_v9  ;;  %vm3116_vm7 = vcmp.eq.f32.partialorder %v3115_v61, 8.507059e+37  ;;  %5197 = vrcp.f32 %v8112_v34  ;;  %v3529_v30 = vmul.f32 %v8964_v54, %v3044_v63  ;;  %v2271_v47 = vpop.f32.mrf.mxu3 }
 0x2b9   : > { %v5196_v40 = vpop.eup %5195  ;;  %v3649_v39 = vmul.f32 %v3589_v26, %v8964_v54  ;;  %3829 = vst [vmem:[%s7271_s8 + $0x108] sm:$0xff] %v3044_v63  ;;  %v3119_v62 = vsel %vm3116_vm7, %v3118_v7, %v3114_v38  ;;  %5199 = vpow2.f32 %v4786_v52  ;;  %v8131_v58 = vadd.f32 %v7910_v24, %v7999_v19  ;;  %v2203_v32 = vpop.f32.mrf.mxu1 }
 0x2ba   : > { %v8135_v22 = vadd.f32 %v7942_v0, %v7991_v29  ;;  %v3594_v14 = vsub.f32 1.0, %v3119_v62  ;;  %3834 = vst [vmem:[%s7271_s8 + $0x130] sm:$0xff] %v3119_v62  ;;  %v8138_v50 = vadd.f32 1.0, %v5196_v40  ;;  %v8142_v15 = vadd.f32 %v7948_v8, %v7999_v19  ;;  %v8965_v0 = vld [vmem:[#allocation22_spill] sm:$0xff] }
 0x2bb   : > { %v8146_v41 = vadd.f32 %v7984_v23, %v7991_v29  ;;  %v3709_v17 = vadd.f32 %v3649_v39, %v3529_v30  ;;  %5201 = vpow2.f32 %v4791_v13  ;;  %v8150_v24 = vadd.f32 %v7995_v11, %v7999_v19 }
 0x2bc   : > { %v3534_v33 = vmul.f32 %v8965_v0, %v3119_v62  ;;  %v3654_v10 = vmul.f32 %v3594_v14, %v8965_v0  ;;  %5203 = vrcp.f32 %v8138_v50  ;;  %v8157_v8 = vadd.f32 %v8041_v55, %v7991_v29 }
 0x2bd   : > { %3769 = vst [vmem:[%s7309_s12 + $0x108] sm:$0xff] %v3709_v17  ;;  %v3130_v23 = vand.u32 2147483647, %v8112_v34  ;;  %v2156_v11 = vadd.f32 %v8065_v18, %v7974_v59  ;;  %v2090_v49 = vadd.f32 %v2089_v21, %v7978_v6  ;;  %v8166_v45 = vadd.f32 %v8052_v25, %v7999_v19 }
 0x2be   : > { %v5198_v35 = vpop.eup %5197  ;;  %v8170_v55 = vadd.f32 %v8092_v12, %v7991_v29  ;;  %v3714_v61 = vadd.f32 %v3654_v10, %v3534_v33  ;;  %v3132_v48 = vand.u32 2147483648, %v8112_v34  ;;  %v8175_v31 = vadd.f32 %v8098_v5, %v7999_v19 }
 0x2bf   : > { %v5200_v27 = vpop.eup %5199  ;;  %v8178_v59 = vadd.f32 %v2181_v51, %v7991_v29  ;;  %v3122_v6 = vmul.f32 %v5198_v35, %v8112_v34  ;;  %v4792_v18 = vmul.f32 -1.442695, %v2156_v11  ;;  %v8183_v25 = vadd.f32 %v2249_v43, %v7999_v19 }
 0x2c0   : > { %3774 = vst [vmem:[%s7309_s12 + $0x130] sm:$0xff] %v3714_v61  ;;  %v8185_v12 = vadd.f32 1.0, %v5200_v27  ;;  %v4797_v20 = vmul.f32 -1.442695, %v2090_v49  ;;  %v2158_v21 = vadd.f32 %v2157_v28, %v2124_v3  ;;  %vm3126_vm8 = vweird.f32 %v8112_v34  ;;  %v8231_v61 = vpop.f32.mrf.mxu3  ;;  %v8972_v27 = vld [vmem:[#allocation24_spill] sm:$0xff] }
 0x2c1   : > { %v5202_v16 = vpop.eup %5201  ;;  %v3123_v7 = vsub.f32 1.0, %v3122_v6  ;;  %vm8188_vm9 = vcmp.eq.f32.partialorder %v3130_v23, 8.507059e+37  ;;  %5205 = vpow2.f32 %v4792_v18  ;;  %v3133_v53 = vor.u32 1.1754944e-38, %v3132_v48  ;;  %v2205_v62 = vpop.f32.mrf.mxu1 }
 0x2c2   : > { %v5204_v44 = vpop.eup %5203  ;;  %v3205_v4 = vand.u32 2147483647, %v8138_v50  ;;  %v3207_v57 = vand.u32 2147483648, %v8138_v50  ;;  %5207 = vrcp.f32 %v8185_v12  ;;  %vm3127_vm10 = vweird.f32 %v5198_v35 }
 0x2c3   : > { %v3124_v56 = vmul.f32 %v5198_v35, %v3123_v7  ;;  %v3197_v36 = vmul.f32 %v5204_v44, %v8138_v50  ;;  %v8196_v63 = vadd.f32 1.0, %v5202_v16  ;;  %vm3201_vm11 = vweird.f32 %v8138_v50  ;;  %vm3128_vm12 = vmor %vm3126_vm8, %vm3127_vm10 }
 0x2c4   : > { %v3222_v9 = vand.u32 2147483648, %v8185_v12  ;;  %5209 = vpow2.f32 %v4797_v20  ;;  %v4798_v28 = vmul.f32 -1.442695, %v2158_v21  ;;  %v3220_v52 = vand.u32 2147483647, %v8185_v12 }
 0x2c5   : > { %v3125_v3 = vadd.f32 %v5198_v35, %v3124_v56  ;;  %v3198_v26 = vsub.f32 1.0, %v3197_v36  ;;  %5211 = vrcp.f32 %v8196_v63  ;;  %vm8204_vm13 = vcmp.eq.f32.partialorder %v3205_v4, 8.507059e+37 }
 0x2c6   : > { %v3208_v38 = vor.u32 1.1754944e-38, %v3207_v57  ;;  %5213 = vpow2.f32 %v4798_v28  ;;  %v2204_v40 = vadd.f32 %v2203_v32, %v8122_v37  ;;  %vm3202_vm0 = vweird.f32 %v5204_v44 }
 0x2c7   : > { %v5206_v54 = vpop.eup %5205  ;;  %v3129_v30 = vsel %vm3128_vm12, %v5198_v35, %v3125_v3  ;;  %v3199_v39 = vmul.f32 %v5204_v44, %v3198_v26  ;;  %vm3216_vm14 = vweird.f32 %v8185_v12  ;;  %v3223_v17 = vor.u32 1.1754944e-38, %v3222_v9  ;;  %vm3203_vm1 = vmor %vm3201_vm11, %vm3202_vm0 }
 0x2c8   : > { %v5208_v14 = vpop.eup %5207  ;;  %v3134_v34 = vsel %vm8188_vm9, %v3133_v53, %v3129_v30  ;;  %v3295_v0 = vand.u32 2147483647, %v8196_v63  ;;  %v8213_v33 = vadd.f32 1.0, %v5206_v54  ;;  %vm8217_vm15 = vcmp.eq.f32.partialorder %v3220_v52, 8.507059e+37 }
 0x2c9   : > { %v3595_v10 = vsub.f32 1.0, %v3134_v34  ;;  %3835 = vst [vmem:[%s7271_s8 + $0x138] sm:$0xff] %v3134_v34  ;;  %v3200_v51 = vadd.f32 %v5204_v44, %v3199_v39  ;;  %v3212_v37 = vmul.f32 %v5208_v14, %v8185_v12  ;;  %v3297_v43 = vand.u32 2147483648, %v8196_v63 }
 0x2ca   : > { %v5210_v11 = vpop.eup %5209  ;;  %vm3291_vm2 = vweird.f32 %v8196_v63  ;;  %5215 = vrcp.f32 %v8213_v33  ;;  %v4745_v49 = vmul.f32 -1.442695, %v2204_v40  ;;  %v2272_v32 = vadd.f32 %v2271_v47, %v8131_v58 }
 0x2cb   : > { %v8229_v35 = vadd.f32 %v2205_v62, %v8135_v22  ;;  %v5212_v48 = vpop.eup %5211  ;;  %v3535_v6 = vmul.f32 %v8972_v27, %v3134_v34  ;;  %v3655_v18 = vmul.f32 %v3595_v10, %v8972_v27  ;;  %v3204_v50 = vsel %vm3203_vm1, %v5204_v44, %v3200_v51  ;;  %v8975_v44 = vld [vmem:[#allocation23_spill] sm:$0xff]  ;;  %v8272_v51 = vpop.f32.mrf.mxu0 }
 0x2cc   : > { %v3213_v20 = vsub.f32 1.0, %v3212_v37  ;;  %v5214_v21 = vpop.eup %5213  ;;  %v3209_v16 = vsel %vm8204_vm13, %v3208_v38, %v3204_v50  ;;  %vm3217_vm3 = vweird.f32 %v5208_v14  ;;  %v3287_v58 = vmul.f32 %v5212_v48, %v8196_v63  ;;  %v2252_v62 = vpop.f32.mrf.mxu2 }
 0x2cd   : > { %vm8238_vm4 = vcmp.eq.f32.partialorder %v3295_v0, 8.507059e+37  ;;  %v3715_v47 = vadd.f32 %v3655_v18, %v3535_v6  ;;  %v3600_v7 = vsub.f32 1.0, %v3209_v16  ;;  %3840 = vst [vmem:[%s7271_s8 + $0x160] sm:$0xff] %v3209_v16  ;;  %v3310_v53 = vand.u32 2147483647, %v8213_v33  ;;  %vm3218_vm5 = vmor %vm3216_vm14, %vm3217_vm3 }
 0x2ce   : > { %v3214_v5 = vmul.f32 %v5208_v14, %v3213_v20  ;;  %v3540_v4 = vmul.f32 %v8975_v44, %v3209_v16  ;;  %v3288_v57 = vsub.f32 1.0, %v3287_v58  ;;  %v3312_v56 = vand.u32 2147483648, %v8213_v33 }
 0x2cf   : > { %v8246_v36 = vadd.f32 1.0, %v5210_v11  ;;  %3775 = vst [vmem:[%s7309_s12 + $0x138] sm:$0xff] %v3715_v47  ;;  %v3660_v9 = vmul.f32 %v3600_v7, %v8975_v44  ;;  %v8250_v3 = vadd.f32 1.0, %v5214_v21  ;;  %5217 = vpow2.f32 %v4745_v49  ;;  %v8980_v49 = vld [vmem:[#allocation25_spill] sm:$0xff] }
 0x2d0   : > { %v3215_v28 = vadd.f32 %v5208_v14, %v3214_v5  ;;  %v5216_v26 = vpop.eup %5215  ;;  %v3289_v52 = vmul.f32 %v5212_v48, %v3288_v57  ;;  %vm3292_vm6 = vweird.f32 %v5212_v48  ;;  %v3298_v13 = vor.u32 1.1754944e-38, %v3297_v43  ;;  %v2276_v43 = vpop.f32.mrf.mxu3  ;;  %v8981_v5 = vld [vmem:[#allocation27_spill] sm:$0xff] }
 0x2d1   : > { %5219 = vrcp.f32 %v8246_v36  ;;  %v3720_v38 = vadd.f32 %v3660_v9, %v3540_v4  ;;  %v3302_v54 = vmul.f32 %v5216_v26, %v8213_v33  ;;  %vm3306_vm7 = vweird.f32 %v8213_v33  ;;  %vm8267_vm9 = vmor %vm3291_vm2, %vm3292_vm6 }
 0x2d2   : > { %v3219_v40 = vsel %vm3218_vm5, %v5208_v14, %v3215_v28  ;;  %v3290_v39 = vadd.f32 %v5212_v48, %v3289_v52  ;;  %vm8260_vm8 = vcmp.eq.f32.partialorder %v3310_v53, 8.507059e+37  ;;  %v3313_v12 = vor.u32 1.1754944e-38, %v3312_v56 }
 0x2d3   : > { %v3224_v30 = vsel %vm8217_vm15, %v3223_v17, %v3219_v40  ;;  %3780 = vst [vmem:[%s7309_s12 + $0x160] sm:$0xff] %v3720_v38  ;;  %v3303_v14 = vsub.f32 1.0, %v3302_v54  ;;  %5221 = vrcp.f32 %v8250_v3  ;;  %v4746_v10 = vmul.f32 -1.442695, %v2272_v32  ;;  %v2208_v17 = vpop.f32.mrf.mxu1 }
 0x2d4   : > { %v3601_v34 = vsub.f32 1.0, %v3224_v30  ;;  %3841 = vst [vmem:[%s7271_s8 + $0x168] sm:$0xff] %v3224_v30  ;;  %v3294_v37 = vsel %vm8267_vm9, %v5212_v48, %v3290_v39  ;;  %vm3307_vm10 = vweird.f32 %v5216_v26  ;;  %v3385_v23 = vand.u32 2147483647, %v8246_v36 }
 0x2d5   : > { %v3387_v63 = vand.u32 2147483648, %v8246_v36  ;;  %v5218_v11 = vpop.eup %5217  ;;  %v3541_v27 = vmul.f32 %v8980_v49, %v3224_v30  ;;  %v3299_v32 = vsel %vm8238_vm4, %v3298_v13, %v3294_v37  ;;  %v3304_v18 = vmul.f32 %v5216_v26, %v3303_v14  ;;  %vm3308_vm12 = vmor %vm3306_vm7, %vm3307_vm10 }
 0x2d6   : > { %v3661_v6 = vmul.f32 %v3601_v34, %v8980_v49  ;;  %v3606_v20 = vsub.f32 1.0, %v3299_v32  ;;  %3846 = vst [vmem:[%s7271_s8 + $0x190] sm:$0xff] %v3299_v32  ;;  %vm3381_vm11 = vweird.f32 %v8246_v36  ;;  %v3400_v48 = vand.u32 2147483647, %v8250_v3 }
 0x2d7   : > { %v5220_v50 = vpop.eup %5219  ;;  %v8286_v21 = vadd.f32 1.0, %v5218_v11  ;;  %v3305_v58 = vadd.f32 %v5216_v26, %v3304_v18  ;;  %v3402_v7 = vand.u32 2147483648, %v8250_v3  ;;  %v3546_v22 = vmul.f32 %v8981_v5, %v3299_v32  ;;  %v2186_v11 = vpop.f32.mrf.mxu0 }
 0x2d8   : > { %v3721_v16 = vadd.f32 %v3661_v6, %v3541_v27  ;;  %v3377_v47 = vmul.f32 %v5220_v50, %v8246_v36  ;;  %v3666_v53 = vmul.f32 %v3606_v20, %v8981_v5  ;;  %vm8295_vm13 = vcmp.eq.f32.partialorder %v3385_v23, 8.507059e+37  ;;  %v2278_v27 = vpop.f32.mrf.mxu3 }
 0x2d9   : > { %5223 = vrcp.f32 %v8286_v21  ;;  %v5222_v4 = vpop.eup %5221  ;;  %v3309_v57 = vsel %vm3308_vm12, %v5216_v26, %v3305_v58  ;;  %v3388_v9 = vor.u32 1.1754944e-38, %v3387_v63  ;;  %vm3396_vm0 = vweird.f32 %v8250_v3 }
 0x2da   : > { %3781 = vst [vmem:[%s7309_s12 + $0x168] sm:$0xff] %v3721_v16  ;;  %v3378_v56 = vsub.f32 1.0, %v3377_v47  ;;  %v3726_v28 = vadd.f32 %v3666_v53, %v3546_v22  ;;  %v3314_v33 = vsel %vm8260_vm8, %v3313_v12, %v3309_v57  ;;  %vm3382_vm14 = vweird.f32 %v5220_v50  ;;  %v8986_v12 = vld [vmem:[#allocation29_spill] sm:$0xff]  ;;  %v8987_v16 = vld [vmem:[#allocation28_spill] sm:$0xff] }
 0x2db   : > { %v3392_v52 = vmul.f32 %v5222_v4, %v8250_v3  ;;  %vm8305_vm15 = vcmp.eq.f32.partialorder %v3400_v48, 8.507059e+37  ;;  %v3607_v38 = vsub.f32 1.0, %v3314_v33  ;;  %3847 = vst [vmem:[%s7271_s8 + $0x198] sm:$0xff] %v3314_v33  ;;  %v3403_v54 = vor.u32 1.1754944e-38, %v3402_v7  ;;  %v2210_v23 = vpop.f32.mrf.mxu1  ;;  %vm3383_vm2 = vmor %vm3381_vm11, %vm3382_vm14 }
 0x2dc   : > { %v3379_v40 = vmul.f32 %v5220_v50, %v3378_v56  ;;  %v2605_v26 = vand.u32 2147483647, %v8286_v21  ;;  %3786 = vst [vmem:[%s7309_s12 + $0x190] sm:$0xff] %v3726_v28  ;;  %vm3397_vm1 = vweird.f32 %v5222_v4  ;;  %5225 = vpow2.f32 %v4746_v10 }
 0x2dd   : > { %v3393_v30 = vsub.f32 1.0, %v3392_v52  ;;  %v4751_v39 = vmul.f32 -1.442695, %v8229_v35  ;;  %v3547_v34 = vmul.f32 %v8986_v12, %v3314_v33  ;;  %v3667_v0 = vmul.f32 %v3607_v38, %v8986_v12  ;;  %vm3398_vm3 = vmor %vm3396_vm0, %vm3397_vm1 }
 0x2de   : > { %v3380_v14 = vadd.f32 %v5220_v50, %v3379_v40  ;;  %v2274_v37 = vadd.f32 %v8231_v61, %v8142_v15  ;;  %v2209_v35 = vadd.f32 %v2208_v17, %v8146_v41  ;;  %v2277_v49 = vadd.f32 %v2276_v43, %v8150_v24 }
 0x2df   : > { %v5224_v63 = vpop.eup %5223  ;;  %v3394_v10 = vmul.f32 %v5222_v4, %v3393_v30  ;;  %5227 = vpow2.f32 %v4751_v39  ;;  %v3727_v6 = vadd.f32 %v3667_v0, %v3547_v34  ;;  %v2607_v61 = vand.u32 2147483648, %v8286_v21  ;;  %v2189_v12 = vpop.f32.mrf.mxu0 }
 0x2e0   : > { %v3384_v32 = vsel %vm3383_vm2, %v5220_v50, %v3380_v14  ;;  %v2597_v15 = vmul.f32 %v5224_v63, %v8286_v21  ;;  %v4752_v36 = vmul.f32 -1.442695, %v2274_v37  ;;  %v4757_v48 = vmul.f32 -1.442695, %v2209_v35 }
 0x2e1   : > { %v3389_v18 = vsel %vm8295_vm13, %v3388_v9, %v3384_v32  ;;  %v3395_v20 = vadd.f32 %v5222_v4, %v3394_v10  ;;  %3787 = vst [vmem:[%s7309_s12 + $0x198] sm:$0xff] %v3727_v6  ;;  %vm2602_vm4 = vweird.f32 %v5224_v63  ;;  %v4758_v50 = vmul.f32 -1.442695, %v2277_v49  ;;  %v8988_v9 = vld [vmem:[#allocation30_spill] sm:$0xff]  ;;  %v8989_v49 = vld [vmem:[#allocation31_spill] sm:$0xff] }
 0x2e2   : > { %v3552_v58 = vmul.f32 %v8987_v16, %v3389_v18  ;;  %v3612_v41 = vsub.f32 1.0, %v3389_v18  ;;  %v2598_v24 = vsub.f32 1.0, %v2597_v15  ;;  %v5226_v17 = vpop.eup %5225  ;;  %3852 = vst [vmem:[%s7271_s8 + $0x1c0] sm:$0xff] %v3389_v18  ;;  %5229 = vpow2.f32 %v4752_v36 }
 0x2e3   : > { %v3399_v43 = vsel %vm3398_vm3, %v5222_v4, %v3395_v20  ;;  %v2211_v47 = vadd.f32 %v2210_v23, %v8157_v8  ;;  %v8336_v53 = vadd.f32 1.0, %v5226_v17  ;;  %vm2601_vm5 = vweird.f32 %v8286_v21 }
 0x2e4   : > { %v3672_v7 = vmul.f32 %v3612_v41, %v8987_v16  ;;  %v3404_v5 = vsel %vm8305_vm15, %v3403_v54, %v3399_v43  ;;  %v2599_v22 = vmul.f32 %v5224_v63, %v2598_v24  ;;  %5231 = vpow2.f32 %v4757_v48  ;;  %vm2603_vm6 = vmor %vm2601_vm5, %vm2602_vm4  ;;  %v2213_v54 = vpop.f32.mrf.mxu1 }
 0x2e5   : > { %v5228_v3 = vpop.eup %5227  ;;  %v3613_v44 = vsub.f32 1.0, %v3404_v5  ;;  %3853 = vst [vmem:[%s7271_s8 + $0x1c8] sm:$0xff] %v3404_v5  ;;  %v2279_v4 = vadd.f32 %v2278_v27, %v8166_v45  ;;  %v2608_v8 = vor.u32 1.1754944e-38, %v2607_v61  ;;  %5233 = vrcp.f32 %v8336_v53  ;;  %v2254_v45 = vpop.f32.mrf.mxu2 }
 0x2e6   : > { %v3732_v57 = vadd.f32 %v3672_v7, %v3552_v58  ;;  %v2600_v56 = vadd.f32 %v5224_v63, %v2599_v22  ;;  %v3553_v28 = vmul.f32 %v8988_v9, %v3404_v5  ;;  %v8345_v52 = vadd.f32 1.0, %v5228_v3 }
 0x2e7   : > { %v3673_v33 = vmul.f32 %v3613_v44, %v8988_v9  ;;  %v4763_v13 = vmul.f32 -1.442695, %v2211_v47  ;;  %v8349_v38 = vadd.f32 %v8272_v51, %v7991_v29  ;;  %vm2606_vm7 = vcmp.eq.f32.partialorder %v2605_v26, 8.507059e+37  ;;  %v8357_v51 = vpop.f32.mrf.mxu3 }
 0x2e8   : > { %3792 = vst [vmem:[%s7309_s12 + $0x1c0] sm:$0xff] %v3732_v57  ;;  %v2604_v40 = vsel %vm2603_vm6, %v5224_v63, %v2600_v56  ;;  %5235 = vpow2.f32 %v4758_v50  ;;  %v5230_v30 = vpop.eup %5229  ;;  %v8355_v39 = vadd.f32 %v2252_v62, %v7999_v19  ;;  %v4764_v14 = vmul.f32 -1.442695, %v2279_v4 }
 0x2e9   : > { %v3733_v34 = vadd.f32 %v3673_v33, %v3553_v28  ;;  %v2609_v0 = vsel %vm2606_vm7, %v2608_v8, %v2604_v40  ;;  %v8360_v37 = vadd.f32 %v2186_v11, %v7991_v29  ;;  %v2620_v21 = vand.u32 2147483647, %v8336_v53 }
 0x2ea   : > { %v3560_v23 = vsub.f32 1.0, %v2609_v0  ;;  %3800 = vst [vmem:[%s7271_s8 + $0x20] sm:$0xff] %v2609_v0  ;;  %5237 = vrcp.f32 %v8345_v52  ;;  %v5232_v26 = vpop.eup %5231  ;;  %v8366_v63 = vadd.f32 %v2254_v45, %v7999_v19  ;;  %v2622_v62 = vand.u32 2147483648, %v8336_v53 }
 0x2eb   : > { %3793 = vst [vmem:[%s7309_s12 + $0x1c8] sm:$0xff] %v3733_v34  ;;  %v8370_v10 = vadd.f32 1.0, %v5230_v30  ;;  %5239 = vpow2.f32 %v4763_v13  ;;  %v5234_v35 = vpop.eup %5233  ;;  %v8373_v11 = vadd.f32 %v2189_v12, %v7991_v29  ;;  %v3500_v27 = vmul.f32 %v8989_v49, %v2609_v0 }
 0x2ec   : > { %v3620_v6 = vmul.f32 %v3560_v23, %v8989_v49  ;;  %v8377_v32 = vadd.f32 1.0, %v5232_v26  ;;  %v2612_v15 = vmul.f32 %v5234_v35, %v8336_v53  ;;  %vm2616_vm8 = vweird.f32 %v8336_v53  ;;  %v8404_v4 = vpop.f32.mrf.mxu1 }
 0x2ed   : > { %5241 = vpow2.f32 %v4764_v14  ;;  %v2214_v61 = vadd.f32 %v2213_v54, %v8170_v55  ;;  %vm8382_vm9 = vcmp.eq.f32.partialorder %v2620_v21, 8.507059e+37  ;;  %v2695_v48 = vand.u32 2147483647, %v8345_v52 }
 0x2ee   : > { %v5236_v18 = vpop.eup %5235  ;;  %v3680_v20 = vadd.f32 %v3620_v6, %v3500_v27  ;;  %5243 = vrcp.f32 %v8370_v10  ;;  %v2613_v16 = vsub.f32 1.0, %v2612_v15  ;;  %v2623_v58 = vor.u32 1.1754944e-38, %v2622_v62  ;;  %v8998_v15 = vld [vmem:[#allocation33_spill] sm:$0xff] }
 0x2ef   : > { %v2697_v41 = vand.u32 2147483648, %v8345_v52  ;;  %5245 = vrcp.f32 %v8377_v32  ;;  %vm2691_vm10 = vweird.f32 %v8345_v52  ;;  %v2712_v55 = vand.u32 2147483648, %v8370_v10  ;;  %v8407_v28 = vpop.f32.mrf.mxu3 }
 0x2f0   : > { %v5238_v24 = vpop.eup %5237  ;;  %3740 = vst [vmem:[%s7309_s12 + $0x20] sm:$0xff] %v3680_v20  ;;  %v2787_v17 = vand.u32 2147483648, %v8377_v32  ;;  %v8394_v43 = vadd.f32 1.0, %v5236_v18  ;;  %v2614_v47 = vmul.f32 %v5234_v35, %v2613_v16  ;;  %vm2617_vm11 = vweird.f32 %v5234_v35 }
 0x2f1   : > { %v5240_v50 = vpop.eup %5239  ;;  %v2687_v7 = vmul.f32 %v5238_v24, %v8345_v52  ;;  %v2710_v5 = vand.u32 2147483647, %v8370_v10  ;;  %vm8398_vm12 = vcmp.eq.f32.partialorder %v2695_v48, 8.507059e+37  ;;  %v2785_v3 = vand.u32 2147483647, %v8377_v32  ;;  %vm2618_vm0 = vmor %vm2616_vm8, %vm2617_vm11 }
 0x2f2   : > { %5247 = vrcp.f32 %v8394_v43  ;;  %v4769_v44 = vmul.f32 -1.442695, %v2214_v61  ;;  %v2615_v56 = vadd.f32 %v5234_v35, %v2614_v47  ;;  %v2698_v9 = vor.u32 1.1754944e-38, %v2697_v41 }
 0x2f3   : > { %v5242_v57 = vpop.eup %5241  ;;  %v2688_v8 = vsub.f32 1.0, %v2687_v7  ;;  %vm2706_vm13 = vweird.f32 %v8370_v10  ;;  %vm2692_vm14 = vweird.f32 %v5238_v24  ;;  %v2713_v13 = vor.u32 1.1754944e-38, %v2712_v55 }
 0x2f4   : > { %v5244_v33 = vpop.eup %5243  ;;  %vm2781_vm15 = vweird.f32 %v8377_v32  ;;  %v2788_v45 = vor.u32 1.1754944e-38, %v2787_v17  ;;  %v8413_v40 = vadd.f32 1.0, %v5240_v50  ;;  %v2619_v30 = vsel %vm2618_vm0, %v5234_v35, %v2615_v56  ;;  %vm2693_vm3 = vmor %vm2691_vm10, %vm2692_vm14 }
 0x2f5   : > { %v5246_v54 = vpop.eup %5245  ;;  %v2689_v12 = vmul.f32 %v5238_v24, %v2688_v8  ;;  %v2702_v34 = vmul.f32 %v5244_v33, %v8370_v10  ;;  %vm8416_vm1 = vcmp.eq.f32.partialorder %v2710_v5, 8.507059e+37  ;;  %v2800_v53 = vand.u32 2147483647, %v8394_v43 }
 0x2f6   : > { %v2624_v14 = vsel %vm8382_vm9, %v2623_v58, %v2619_v30  ;;  %v2777_v23 = vmul.f32 %v5246_v54, %v8377_v32  ;;  %vm8424_vm2 = vcmp.eq.f32.partialorder %v2785_v3, 8.507059e+37  ;;  %v2802_v26 = vand.u32 2147483648, %v8394_v43  ;;  %v8461_v3 = vpop.f32.mrf.mxu1 }
 0x2f7   : > { %v8429_v62 = vadd.f32 1.0, %v5242_v57  ;;  %v3561_v35 = vsub.f32 1.0, %v2624_v14  ;;  %3801 = vst [vmem:[%s7271_s8 + $0x28] sm:$0xff] %v2624_v14  ;;  %v2690_v49 = vadd.f32 %v5238_v24, %v2689_v12  ;;  %v2703_v27 = vsub.f32 1.0, %v2702_v34  ;;  %v8472_v56 = vpop.f32.mrf.mxu3 }
 0x2f8   : > { %5249 = vpow2.f32 %v4769_v44  ;;  %v8432_v6 = vpop.eup %5247  ;;  %v3501_v61 = vmul.f32 %v8998_v15, %v2624_v14  ;;  %vm2707_vm4 = vweird.f32 %v5244_v33  ;;  %v2778_v18 = vsub.f32 1.0, %v2777_v23  ;;  %v9004_v23 = vld [vmem:[#allocation34_spill] sm:$0xff] }
 0x2f9   : > { %5251 = vrcp.f32 %v8413_v40  ;;  %v3621_v20 = vmul.f32 %v3561_v35, %v8998_v15  ;;  %v2694_v36 = vsel %vm2693_vm3, %v5238_v24, %v2690_v49  ;;  %v2704_v48 = vmul.f32 %v5244_v33, %v2703_v27  ;;  %vm8453_vm7 = vmor %vm2706_vm13, %vm2707_vm4  ;;  %v9005_v49 = vld [vmem:[#allocation35_spill] sm:$0xff] }
 0x2fa   : > { %v2792_v16 = vmul.f32 %v8432_v6, %v8394_v43  ;;  %v2699_v58 = vsel %vm8398_vm12, %v2698_v9, %v2694_v36  ;;  %v2779_v41 = vmul.f32 %v5246_v54, %v2778_v18  ;;  %vm2782_vm5 = vweird.f32 %v5246_v54 }
 0x2fb   : > { %vm2796_vm6 = vweird.f32 %v8394_v43  ;;  %v3681_v52 = vadd.f32 %v3621_v20, %v3501_v61  ;;  %v3566_v55 = vsub.f32 1.0, %v2699_v58  ;;  %3806 = vst [vmem:[%s7271_s8 + $0x50] sm:$0xff] %v2699_v58  ;;  %v2705_v17 = vadd.f32 %v5244_v33, %v2704_v48  ;;  %vm2783_vm9 = vmor %vm2781_vm15, %vm2782_vm5 }
 0x2fc   : > { %v8448_v50 = vadd.f32 %v8357_v51, %v8175_v31  ;;  %v2780_v47 = vadd.f32 %v5246_v54, %v2779_v41  ;;  %v2793_v7 = vsub.f32 1.0, %v2792_v16  ;;  %vm8457_vm8 = vcmp.eq.f32.partialorder %v2800_v53, 8.507059e+37  ;;  %v9003_v31 = vld [vmem:[#allocation32_spill] sm:$0xff] }
 0x2fd   : > { %v2803_v22 = vor.u32 1.1754944e-38, %v2802_v26  ;;  %3741 = vst [vmem:[%s7309_s12 + $0x28] sm:$0xff] %v3681_v52  ;;  %v3506_v51 = vmul.f32 %v9003_v31, %v2699_v58  ;;  %v3626_v10 = vmul.f32 %v3566_v55, %v9003_v31  ;;  %v2709_v57 = vsel %vm8453_vm7, %v5244_v33, %v2705_v17  ;;  %v9008_v17 = vld [vmem:[#allocation37_spill] sm:$0xff] }
 0x2fe   : > { %v5250_v44 = vpop.eup %5249  ;;  %5253 = vrcp.f32 %v8429_v62  ;;  %v2714_v9 = vsel %vm8416_vm1, %v2713_v13, %v2709_v57  ;;  %v2784_v30 = vsel %vm2783_vm9, %v5246_v54, %v2780_v47  ;;  %v2794_v12 = vmul.f32 %v8432_v6, %v2793_v7 }
 0x2ff   : > { %v5252_v8 = vpop.eup %5251  ;;  %vm2797_vm10 = vweird.f32 %v8432_v6  ;;  %vm2871_vm11 = vweird.f32 %v8413_v40  ;;  %v3686_v33 = vadd.f32 %v3626_v10, %v3506_v51  ;;  %v3567_v32 = vsub.f32 1.0, %v2714_v9  ;;  %3807 = vst [vmem:[%s7271_s8 + $0x58] sm:$0xff] %v2714_v9  ;;  %v2288_v57 = vpop.f32.mrf.mxu3 }
 0x300   : > { %v2789_v34 = vsel %vm8424_vm2, %v2788_v45, %v2784_v30  ;;  %v2875_v53 = vand.u32 2147483647, %v8413_v40  ;;  %v2795_v0 = vadd.f32 %v8432_v6, %v2794_v12  ;;  %v2867_v13 = vmul.f32 %v5252_v8, %v8413_v40  ;;  %vm2798_vm12 = vmor %vm2796_vm6, %vm2797_vm10 }
 0x301   : > { %v3572_v14 = vsub.f32 1.0, %v2789_v34  ;;  %3812 = vst [vmem:[%s7271_s8 + $0x80] sm:$0xff] %v2789_v34  ;;  %v2877_v54 = vand.u32 2147483648, %v8413_v40  ;;  %v3507_v26 = vmul.f32 %v9004_v23, %v2714_v9  ;;  %v3627_v35 = vmul.f32 %v3567_v32, %v9004_v23 }
 0x302   : > { %3746 = vst [vmem:[%s7309_s12 + $0x50] sm:$0xff] %v3686_v33  ;;  %v3512_v27 = vmul.f32 %v9005_v49, %v2789_v34  ;;  %v2890_v45 = vand.u32 2147483647, %v8429_v62  ;;  %v2799_v15 = vsel %vm2798_vm12, %v8432_v6, %v2795_v0  ;;  %v2868_v61 = vsub.f32 1.0, %v2867_v13  ;;  %v9011_v0 = vld [vmem:[#allocation36_spill] sm:$0xff] }
 0x303   : > { %v3632_v21 = vmul.f32 %v3572_v14, %v9005_v49  ;;  %v8498_v18 = vadd.f32 1.0, %v5250_v44  ;;  %v3687_v36 = vadd.f32 %v3627_v35, %v3507_v26  ;;  %v2804_v48 = vsel %vm8457_vm8, %v2803_v22, %v2799_v15  ;;  %v2220_v22 = vpop.f32.mrf.mxu1  ;;  %v2257_v14 = vpop.f32.mrf.mxu2 }
 0x304   : > { %v5254_v20 = vpop.eup %5253  ;;  %vm2872_vm13 = vweird.f32 %v5252_v8  ;;  %vm8502_vm0 = vcmp.eq.f32.partialorder %v2875_v53, 8.507059e+37  ;;  %v3573_v58 = vsub.f32 1.0, %v2804_v48  ;;  %3813 = vst [vmem:[%s7271_s8 + $0x88] sm:$0xff] %v2804_v48  ;;  %v2869_v41 = vmul.f32 %v5252_v8, %v2868_v61 }
 0x305   : > { %v3692_v16 = vadd.f32 %v3632_v21, %v3512_v27  ;;  %v2892_v6 = vand.u32 2147483648, %v8429_v62  ;;  %3747 = vst [vmem:[%s7309_s12 + $0x58] sm:$0xff] %v3687_v36  ;;  %v2878_v52 = vor.u32 1.1754944e-38, %v2877_v54  ;;  %v2882_v55 = vmul.f32 %v5254_v20, %v8429_v62  ;;  %vm2873_vm1 = vmor %vm2871_vm11, %vm2872_vm13 }
 0x306   : > { %vm2886_vm14 = vweird.f32 %v8429_v62  ;;  %5255 = vrcp.f32 %v8498_v18  ;;  %v3513_v24 = vmul.f32 %v9008_v17, %v2804_v48  ;;  %v3633_v47 = vmul.f32 %v3573_v58, %v9008_v17  ;;  %v9012_v48 = vld [vmem:[#allocation38_spill] sm:$0xff] }
 0x307   : > { %3752 = vst [vmem:[%s7309_s12 + $0x80] sm:$0xff] %v3692_v16  ;;  %v2870_v7 = vadd.f32 %v5252_v8, %v2869_v41  ;;  %vm8515_vm15 = vcmp.eq.f32.partialorder %v2890_v45, 8.507059e+37  ;;  %v2883_v44 = vsub.f32 1.0, %v2882_v55  ;;  %v4770_v31 = vmul.f32 -1.442695, %v8448_v50  ;;  %v2291_v16 = vpop.f32.mrf.mxu3  ;;  %v2191_v55 = vpop.f32.mrf.mxu0 }
 0x308   : > { %v2216_v51 = vadd.f32 %v8404_v4, %v8178_v59  ;;  %v2284_v10 = vadd.f32 %v8407_v28, %v8183_v25  ;;  %v3693_v9 = vadd.f32 %v3633_v47, %v3513_v24  ;;  %vm2887_vm2 = vweird.f32 %v5254_v20 }
 0x309   : > { %v2874_v30 = vsel %vm2873_vm1, %v5252_v8, %v2870_v7  ;;  %v2893_v12 = vor.u32 1.1754944e-38, %v2892_v6  ;;  %v2884_v40 = vmul.f32 %v5254_v20, %v2883_v44  ;;  %5257 = vpow2.f32 %v4770_v31  ;;  %vm2888_vm3 = vmor %vm2886_vm14, %vm2887_vm2  ;;  %v5355_v7 = vld [vmem:[%s5838_s17 + $0x170] sm:$0xff] }
 0x30a   : > { %v2879_v33 = vsel %vm8502_vm0, %v2878_v52, %v2874_v30  ;;  %v4775_v32 = vmul.f32 -1.442695, %v2216_v51  ;;  %3753 = vst [vmem:[%s7309_s12 + $0x88] sm:$0xff] %v3693_v9  ;;  %v2967_v34 = vand.u32 2147483648, %v8498_v18  ;;  %v4776_v59 = vmul.f32 -1.442695, %v2284_v10 }
 0x30b   : > { %v3578_v50 = vsub.f32 1.0, %v2879_v33  ;;  %v2219_v25 = vadd.f32 %v8461_v3, %v8349_v38  ;;  %3818 = vst [vmem:[%s7271_s8 + $0xb0] sm:$0xff] %v2879_v33  ;;  %v2885_v28 = vadd.f32 %v5254_v20, %v2884_v40  ;;  %v2287_v8 = vadd.f32 %v8472_v56, %v8355_v39  ;;  %v5356_v30 = vld [vmem:[%s5838_s17 + $0x148] sm:$0xff] }
 0x30c   : > { %v5256_v4 = vpop.eup %5255  ;;  %5259 = vpow2.f32 %v4775_v32  ;;  %v2221_v53 = vadd.f32 %v2220_v22, %v8360_v37  ;;  %v3518_v13 = vmul.f32 %v9011_v0, %v2879_v33  ;;  %v2289_v49 = vadd.f32 %v2288_v57, %v8366_v63 }
 0x30d   : > { %v3638_v54 = vmul.f32 %v3578_v50, %v9011_v0  ;;  %v2957_v38 = vmul.f32 %v5256_v4, %v8498_v18  ;;  %5261 = vpow2.f32 %v4776_v59  ;;  %v2889_v3 = vsel %vm2888_vm3, %v5254_v20, %v2885_v28  ;;  %v2223_v20 = vpop.f32.mrf.mxu1 }
 0x30e   : > { %v4781_v23 = vmul.f32 -1.442695, %v2219_v25  ;;  %v4782_v26 = vmul.f32 -1.442695, %v2287_v8  ;;  %v4787_v39 = vmul.f32 -1.442695, %v2221_v53  ;;  %v2894_v37 = vsel %vm8515_vm15, %v2893_v12, %v2889_v3 }
 0x30f   : > { %v3698_v56 = vadd.f32 %v3638_v54, %v3518_v13  ;;  %v2958_v35 = vsub.f32 1.0, %v2957_v38  ;;  %v5258_v27 = vpop.eup %5257  ;;  %v2258_v45 = vadd.f32 %v2257_v14, %v7999_v19  ;;  %v3579_v62 = vsub.f32 1.0, %v2894_v37  ;;  %3819 = vst [vmem:[%s7271_s8 + $0xb8] sm:$0xff] %v2894_v37 }
 0x310   : > { %v2965_v21 = vand.u32 2147483647, %v8498_v18  ;;  %5263 = vpow2.f32 %v4781_v23  ;;  %vm2962_vm4 = vweird.f32 %v5256_v4  ;;  %v8550_v61 = vadd.f32 1.0, %v5258_v27 }
 0x311   : > { %3758 = vst [vmem:[%s7309_s12 + $0xb0] sm:$0xff] %v3698_v56  ;;  %v2959_v15 = vmul.f32 %v5256_v4, %v2958_v35  ;;  %5265 = vpow2.f32 %v4782_v26  ;;  %v3519_v43 = vmul.f32 %v9012_v48, %v2894_v37  ;;  %v3639_v63 = vmul.f32 %v3579_v62, %v9012_v48 }
 0x312   : > { %v5260_v36 = vpop.eup %5259  ;;  %vm2961_vm5 = vweird.f32 %v8498_v18  ;;  %5267 = vpow2.f32 %v4787_v39  ;;  %v2968_v6 = vor.u32 1.1754944e-38, %v2967_v34  ;;  %v4788_v52 = vmul.f32 -1.442695, %v2289_v49 }
 0x313   : > { %v5262_v58 = vpop.eup %5261  ;;  %v2960_v41 = vadd.f32 %v5256_v4, %v2959_v15  ;;  %5269 = vrcp.f32 %v8550_v61  ;;  %v3699_v17 = vadd.f32 %v3639_v63, %v3519_v43  ;;  %vm2963_vm6 = vmor %vm2961_vm5, %vm2962_vm4  ;;  %v8557_v24 = vadd.f32 1.0, %v5260_v36 }
 0x314   : > { %v8559_v47 = vadd.f32 1.0, %v5262_v58  ;;  %v2224_v18 = vadd.f32 %v2223_v20, %v8373_v11  ;;  %v8563_v5 = vmul.f32 2.0, %v5355_v7  ;;  %vm2966_vm7 = vcmp.eq.f32.partialorder %v2965_v21, 8.507059e+37 }
 0x315   : > { %v2964_v22 = vsel %vm2963_vm6, %v5256_v4, %v2960_v41  ;;  %v2292_v44 = vadd.f32 %v2291_v16, %v2258_v45  ;;  %3759 = vst [vmem:[%s7309_s12 + $0xb8] sm:$0xff] %v3699_v17  ;;  %v2980_v10 = vand.u32 2147483647, %v8550_v61  ;;  %v2982_v57 = vand.u32 2147483648, %v8550_v61 }
 0x316   : > { %v5264_v31 = vpop.eup %5263  ;;  %v2969_v51 = vsel %vm2966_vm7, %v2968_v6, %v2964_v22  ;;  %5271 = vrcp.f32 %v8557_v24  ;;  %v8570_v12 = vmul.f32 2.0, %v5356_v30  ;;  %v8573_v11 = vadd.f32 %v2191_v55, %v7991_v29 }
 0x317   : > { %v5266_v9 = vpop.eup %5265  ;;  %v3584_v33 = vsub.f32 1.0, %v2969_v51  ;;  %3824 = vst [vmem:[%s7271_s8 + $0xe0] sm:$0xff] %v2969_v51  ;;  %5273 = vpow2.f32 %v4788_v52  ;;  %v3524_v32 = vmul.f32 %v7584_v60, %v2969_v51  ;;  %vm2976_vm8 = vweird.f32 %v8550_v61 }
 0x318   : > { %v5268_v40 = vpop.eup %5267  ;;  %5275 = vrcp.f32 %v8559_v47  ;;  %v8579_v50 = vmul.f32 -1.442695, %v2224_v18  ;;  %v3055_v25 = vand.u32 2147483647, %v8557_v24  ;;  %v3057_v29 = vand.u32 2147483648, %v8557_v24 }
 0x319   : > { %v5270_v34 = vpop.eup %5269  ;;  %v3644_v59 = vmul.f32 %v3584_v33, %v7584_v60  ;;  %v8584_v4 = vadd.f32 1.0, %v5264_v31  ;;  %vm8587_vm9 = vcmp.eq.f32.partialorder %v2980_v10, 8.507059e+37  ;;  %v2983_v53 = vor.u32 1.1754944e-38, %v2982_v57 }
 0x31a   : > { %v2972_v28 = vmul.f32 %v5270_v34, %v8550_v61  ;;  %v8591_v14 = vmul.f32 -1.442695, %v2292_v44  ;;  %v3070_v13 = vand.u32 2147483647, %v8559_v47  ;;  %v3072_v60 = vand.u32 2147483648, %v8559_v47 }
 0x31b   : > { %v3704_v0 = vadd.f32 %v3644_v59, %v3524_v32  ;;  %5277 = vrcp.f32 %v8584_v4  ;;  %vm3051_vm10 = vweird.f32 %v8557_v24  ;;  %v8597_v3 = vadd.f32 1.0, %v5266_v9 }
 0x31c   : > { %v5272_v54 = vpop.eup %5271  ;;  %v2973_v38 = vsub.f32 1.0, %v2972_v28  ;;  %v8599_v23 = vadd.f32 1.0, %v5268_v40  ;;  %vm8603_vm11 = vcmp.eq.f32.partialorder %v3055_v25, 8.507059e+37  ;;  %v3058_v37 = vor.u32 1.1754944e-38, %v3057_v29 }
 0x31d   : > { %v5274_v26 = vpop.eup %5273  ;;  %3764 = vst [vmem:[%s7309_s12 + $0xe0] sm:$0xff] %v3704_v0  ;;  %v3047_v39 = vmul.f32 %v5272_v54, %v8557_v24  ;;  %vm3066_vm12 = vweird.f32 %v8559_v47  ;;  %v3147_v35 = vand.u32 2147483648, %v8584_v4  ;;  %vm2977_vm13 = vweird.f32 %v5270_v34 }
 0x31e   : > { %v5276_v49 = vpop.eup %5275  ;;  %v2974_v27 = vmul.f32 %v5270_v34, %v2973_v38  ;;  %v3145_v45 = vand.u32 2147483647, %v8584_v4  ;;  %5279 = vrcp.f32 %v8597_v3  ;;  %vm8612_vm0 = vcmp.eq.f32.partialorder %v3070_v13, 8.507059e+37  ;;  %vm2978_vm1 = vmor %vm2976_vm8, %vm2977_vm13 }
 0x31f   : > { %v3048_v62 = vsub.f32 1.0, %v3047_v39  ;;  %v3062_v21 = vmul.f32 %v5276_v49, %v8559_v47  ;;  %v3073_v20 = vor.u32 1.1754944e-38, %v3072_v60  ;;  %vm3052_vm14 = vweird.f32 %v5272_v54 }
 0x320   : > { %v2975_v36 = vadd.f32 %v5270_v34, %v2974_v27  ;;  %vm3141_vm15 = vweird.f32 %v8584_v4  ;;  %5281 = vrcp.f32 %v8599_v23  ;;  %v3148_v16 = vor.u32 1.1754944e-38, %v3147_v35  ;;  %vm3053_vm5 = vmor %vm3051_vm10, %vm3052_vm14  ;;  %v2259_v35 = vpop.f32.mrf.mxu2 }
 0x321   : > { %v5278_v48 = vpop.eup %5277  ;;  %v3049_v43 = vmul.f32 %v5272_v54, %v3048_v62  ;;  %v3063_v63 = vsub.f32 1.0, %v3062_v21  ;;  %v8620_v58 = vadd.f32 1.0, %v5274_v26  ;;  %vm3067_vm2 = vweird.f32 %v5276_v49  ;;  %v2225_v21 = vpop.f32.mrf.mxu1 }
 0x322   : > { %v2979_v41 = vsel %vm2978_vm1, %v5270_v34, %v2975_v36  ;;  %v3137_v6 = vmul.f32 %v5278_v48, %v8584_v4  ;;  %vm8623_vm3 = vcmp.eq.f32.partialorder %v3145_v45, 8.507059e+37  ;;  %v3160_v55 = vand.u32 2147483647, %v8597_v3  ;;  %vm3068_vm7 = vmor %vm3066_vm12, %vm3067_vm2 }
 0x323   : > { %v2984_v61 = vsel %vm8587_vm9, %v2983_v53, %v2979_v41  ;;  %v3050_v17 = vadd.f32 %v5272_v54, %v3049_v43  ;;  %v3064_v18 = vmul.f32 %v5276_v49, %v3063_v63  ;;  %vm3156_vm4 = vweird.f32 %v8597_v3  ;;  %v2293_v63 = vpop.f32.mrf.mxu3 }
 0x324   : > { %v3162_v7 = vand.u32 2147483648, %v8597_v3  ;;  %v5280_v22 = vpop.eup %5279  ;;  %v3585_v44 = vsub.f32 1.0, %v2984_v61  ;;  %3825 = vst [vmem:[%s7271_s8 + $0xe8] sm:$0xff] %v2984_v61  ;;  %v3138_v31 = vsub.f32 1.0, %v3137_v6  ;;  %vm3142_vm6 = vweird.f32 %v5278_v48 }
 0x325   : > { %v3235_v51 = vand.u32 2147483647, %v8599_v23  ;;  %v3525_v10 = vmul.f32 %v7592_v46, %v2984_v61  ;;  %v3054_v57 = vsel %vm3053_vm5, %v5272_v54, %v3050_v17  ;;  %v3065_v9 = vadd.f32 %v5276_v49, %v3064_v18  ;;  %vm3143_vm10 = vmor %vm3141_vm15, %vm3142_vm6 }
 0x326   : > { %v3152_v30 = vmul.f32 %v5280_v22, %v8597_v3  ;;  %v8639_v33 = vpop.eup %5281  ;;  %v3645_v40 = vmul.f32 %v3585_v44, %v7592_v46  ;;  %v3059_v32 = vsel %vm8603_vm11, %v3058_v37, %v3054_v57  ;;  %v3139_v24 = vmul.f32 %v5278_v48, %v3138_v31 }
 0x327   : > { %vm3231_vm8 = vweird.f32 %v8599_v23  ;;  %v3237_v34 = vand.u32 2147483648, %v8599_v23  ;;  %v3590_v59 = vsub.f32 1.0, %v3059_v32  ;;  %3830 = vst [vmem:[%s7271_s8 + $0x110] sm:$0xff] %v3059_v32  ;;  %v3069_v25 = vsel %vm3068_vm7, %v5276_v49, %v3065_v9 }
 0x328   : > { %v3153_v29 = vsub.f32 1.0, %v3152_v30  ;;  %vm3157_vm9 = vweird.f32 %v5280_v22  ;;  %v3705_v46 = vadd.f32 %v3645_v40, %v3525_v10  ;;  %v3074_v28 = vsel %vm8612_vm0, %v3073_v20, %v3069_v25  ;;  %v5357_v40 = vld [vmem:[%s5838_s17 + $0x178] sm:$0xff] }
 0x329   : > { %v3140_v8 = vadd.f32 %v5278_v48, %v3139_v24  ;;  %v3227_v47 = vmul.f32 %v8639_v33, %v8599_v23  ;;  %v3530_v53 = vmul.f32 %v7587_v42, %v3059_v32  ;;  %v3650_v0 = vmul.f32 %v3590_v59, %v7587_v42  ;;  %3831 = vst [vmem:[%s7271_s8 + $0x118] sm:$0xff] %v3074_v28  ;;  %vm3158_vm11 = vmor %vm3156_vm4, %vm3157_vm9 }
 0x32a   : > { %v3591_v13 = vsub.f32 1.0, %v3074_v28  ;;  %v3154_v60 = vmul.f32 %v5280_v22, %v3153_v29  ;;  %3765 = vst [vmem:[%s7309_s12 + $0xe8] sm:$0xff] %v3705_v46  ;;  %v3531_v54 = vmul.f32 %v7595_v1, %v3074_v28  ;;  %5283 = vrcp.f32 %v8620_v58 }
 0x32b   : > { %v3144_v38 = vsel %vm3143_vm10, %v5278_v48, %v3140_v8  ;;  %v3228_v26 = vsub.f32 1.0, %v3227_v47  ;;  %v3710_v39 = vadd.f32 %v3650_v0, %v3530_v53  ;;  %v3163_v4 = vor.u32 1.1754944e-38, %v3162_v7 }
 0x32c   : > { %v3651_v56 = vmul.f32 %v3591_v13, %v7595_v1  ;;  %v3149_v42 = vsel %vm8623_vm3, %v3148_v16, %v3144_v38  ;;  %v3155_v37 = vadd.f32 %v5280_v22, %v3154_v60  ;;  %vm3232_vm12 = vweird.f32 %v8639_v33 }
 0x32d   : > { %v3596_v49 = vsub.f32 1.0, %v3149_v42  ;;  %3836 = vst [vmem:[%s7271_s8 + $0x140] sm:$0xff] %v3149_v42  ;;  %v3229_v27 = vmul.f32 %v8639_v33, %v3228_v26  ;;  %v3536_v1 = vmul.f32 %v7598_v2, %v3149_v42  ;;  %vm3161_vm13 = vcmp.eq.f32.partialorder %v3160_v55, 8.507059e+37  ;;  %vm3233_vm0 = vmor %vm3231_vm8, %vm3232_vm12 }
 0x32e   : > { %3770 = vst [vmem:[%s7309_s12 + $0x110] sm:$0xff] %v3710_v39  ;;  %v3711_v45 = vadd.f32 %v3651_v56, %v3531_v54  ;;  %v3159_v62 = vsel %vm3158_vm11, %v5280_v22, %v3155_v37  ;;  %5285 = vpow2.f32 %v8579_v50  ;;  %v2260_v36 = vadd.f32 %v2259_v35, %v7999_v19  ;;  %v5358_v56 = vld [vmem:[%s5838_s17 + $0x1a0] sm:$0xff] }
 0x32f   : > { %v3656_v15 = vmul.f32 %v3596_v49, %v7598_v2  ;;  %v3164_v20 = vsel %vm3161_vm13, %v3163_v4, %v3159_v62  ;;  %v3230_v3 = vadd.f32 %v8639_v33, %v3229_v27  ;;  %vm3236_vm14 = vcmp.eq.f32.partialorder %v3235_v51, 8.507059e+37  ;;  %v5359_v49 = vld [vmem:[%s5838_s17 + $0x1d0] sm:$0xff]  ;;  %v5360_v27 = vld [vmem:[%s5838_s17 + $0x1a8] sm:$0xff] }
 0x330   : > { %3771 = vst [vmem:[%s7309_s12 + $0x118] sm:$0xff] %v3711_v45  ;;  %v3597_v48 = vsub.f32 1.0, %v3164_v20  ;;  %v3238_v43 = vor.u32 1.1754944e-38, %v3237_v34  ;;  %v5284_v16 = vpop.eup %5283  ;;  %5287 = vpow2.f32 %v8591_v14  ;;  %v2226_v50 = vadd.f32 %v2225_v21, %v8573_v11 }
 0x331   : > { %v3716_v41 = vadd.f32 %v3656_v15, %v3536_v1  ;;  %3837 = vst [vmem:[%s7271_s8 + $0x148] sm:$0xff] %v3164_v20  ;;  %v3234_v2 = vsel %vm3233_vm0, %v8639_v33, %v3230_v3  ;;  %v3537_v19 = vmul.f32 %v8570_v12, %v3164_v20  ;;  %v3242_v52 = vmul.f32 %v5284_v16, %v8620_v58 }
 0x332   : > { %v3657_v6 = vmul.f32 %v3597_v48, %v8570_v12  ;;  %v3239_v23 = vsel %vm3236_vm14, %v3238_v43, %v3234_v2  ;;  %v4799_v61 = vmul.f32 -1.442695, %v2226_v50  ;;  %v2294_v17 = vadd.f32 %v2293_v63, %v2260_v36 }
 0x333   : > { %3776 = vst [vmem:[%s7309_s12 + $0x140] sm:$0xff] %v3716_v41  ;;  %v3602_v55 = vsub.f32 1.0, %v3239_v23  ;;  %v3243_v7 = vsub.f32 1.0, %v3242_v52  ;;  %v3252_v22 = vand.u32 2147483648, %v8620_v58  ;;  %v3542_v11 = vmul.f32 %v8563_v5, %v3239_v23 }
 0x334   : > { %v3717_v18 = vadd.f32 %v3657_v6, %v3537_v19  ;;  %3842 = vst [vmem:[%s7271_s8 + $0x170] sm:$0xff] %v3239_v23  ;;  %v5286_v14 = vpop.eup %5285  ;;  %5289 = vpow2.f32 %v4799_v61  ;;  %v4800_v12 = vmul.f32 -1.442695, %v2294_v17  ;;  %vm3247_vm15 = vweird.f32 %v5284_v16 }
 0x335   : > { %v3662_v44 = vmul.f32 %v3602_v55, %v8563_v5  ;;  %v3244_v31 = vmul.f32 %v5284_v16, %v3243_v7  ;;  %v3250_v51 = vand.u32 2147483647, %v8620_v58  ;;  %v2528_v10 = vadd.f32 1.0, %v5286_v14 }
 0x336   : > { %3777 = vst [vmem:[%s7309_s12 + $0x148] sm:$0xff] %v3717_v18  ;;  %v5288_v57 = vpop.eup %5287  ;;  %5291 = vpow2.f32 %v4800_v12  ;;  %vm3246_vm1 = vweird.f32 %v8620_v58  ;;  %v3253_v5 = vor.u32 1.1754944e-38, %v3252_v22  ;;  %v3483_v32 = vmul.f32 2.0, %v5357_v40 }
 0x337   : > { %v3722_v9 = vadd.f32 %v3662_v44, %v3542_v11  ;;  %v3245_v30 = vadd.f32 %v5284_v16, %v3244_v31  ;;  %5293 = vrcp.f32 %v2528_v10  ;;  %vm3248_vm2 = vmor %vm3246_vm1, %vm3247_vm15  ;;  %v8697_v33 = vadd.f32 1.0, %v5288_v57 }
 0x338   : > { %vm3251_vm3 = vcmp.eq.f32.partialorder %v3250_v51, 8.507059e+37  ;;  %v3325_v54 = vand.u32 2147483647, %v2528_v10  ;;  %v3327_v38 = vand.u32 2147483648, %v2528_v10  ;;  %v3488_v42 = vmul.f32 2.0, %v5358_v56 }
 0x339   : > { %3782 = vst [vmem:[%s7309_s12 + $0x170] sm:$0xff] %v3722_v9  ;;  %v3249_v24 = vsel %vm3248_vm2, %v5284_v16, %v3245_v30  ;;  %5295 = vrcp.f32 %v8697_v33  ;;  %v3340_v39 = vand.u32 2147483647, %v8697_v33  ;;  %v3342_v35 = vand.u32 2147483648, %v8697_v33 }
 0x33a   : > { %v5290_v34 = vpop.eup %5289  ;;  %v3254_v59 = vsel %vm3251_vm3, %v3253_v5, %v3249_v24  ;;  %v8716_v4 = vmul.f32 2.0, %v5359_v49  ;;  %v3489_v45 = vmul.f32 2.0, %v5360_v27  ;;  %vm3321_vm5 = vweird.f32 %v2528_v10 }
 0x33b   : > { %v3603_v25 = vsub.f32 1.0, %v3254_v59  ;;  %3843 = vst [vmem:[%s7271_s8 + $0x178] sm:$0xff] %v3254_v59  ;;  %v8702_v58 = vadd.f32 1.0, %v5290_v34  ;;  %v3543_v28 = vmul.f32 %v3483_v32, %v3254_v59  ;;  %vm3326_vm6 = vcmp.eq.f32.partialorder %v3325_v54, 8.507059e+37 }
 0x33c   : > { %v5292_v29 = vpop.eup %5291  ;;  %v3328_v15 = vor.u32 1.1754944e-38, %v3327_v38  ;;  %vm3336_vm7 = vweird.f32 %v8697_v33  ;;  %vm8723_vm10 = vcmp.eq.f32.partialorder %v3340_v39, 8.507059e+37  ;;  %v3343_v63 = vor.u32 1.1754944e-38, %v3342_v35 }
 0x33d   : > { %v5294_v46 = vpop.eup %5293  ;;  %v3663_v8 = vmul.f32 %v3603_v25, %v3483_v32  ;;  %v8704_v47 = vadd.f32 1.0, %v5292_v29  ;;  %5297 = vrcp.f32 %v8702_v58  ;;  %v3415_v16 = vand.u32 2147483647, %v8702_v58 }
 0x33e   : > { %v3317_v53 = vmul.f32 %v5294_v46, %v2528_v10  ;;  %vm3322_vm4 = vweird.f32 %v5294_v46  ;;  %v3417_v6 = vand.u32 2147483648, %v8702_v58  ;;  %vm3411_vm0 = vweird.f32 %v8702_v58 }
 0x33f   : > { %v3723_v0 = vadd.f32 %v3663_v8, %v3543_v28  ;;  %5299 = vrcp.f32 %v8704_v47  ;;  %v5296_v13 = vpop.eup %5295  ;;  %vm3323_vm8 = vmor %vm3321_vm5, %vm3322_vm4  ;;  %v3430_v55 = vand.u32 2147483647, %v8704_v47  ;;  %v3432_v61 = vand.u32 2147483648, %v8704_v47 }
 0x340   : > { %v3318_v60 = vsub.f32 1.0, %v3317_v53  ;;  %v3332_v26 = vmul.f32 %v5296_v13, %v8697_v33  ;;  %vm3337_vm9 = vweird.f32 %v5296_v13  ;;  %vm3426_vm14 = vweird.f32 %v8704_v47  ;;  %v5361_v33 = vld [vmem:[%s5838_s17 + $0x1d8] sm:$0xff]  ;;  %s3877_s17 = sshll.u32 %s7309_s12, 4  ;;  %s3878_s17 = int_to_ptr.vmem [resolvable:$true] %s3877_s17 }
 0x341   : > { %3783 = vst [vmem:[%s7309_s12 + $0x178] sm:$0xff] %v3723_v0  ;;  %vm3338_vm11 = vmor %vm3336_vm7, %vm3337_vm9  ;;  %vm3416_vm1 = vcmp.eq.f32.partialorder %v3415_v16, 8.507059e+37  ;;  %v3418_v51 = vor.u32 1.1754944e-38, %v3417_v6  ;;  %v3433_v5 = vor.u32 1.1754944e-38, %v3432_v61  ;;  %v3495_v40 = vmul.f32 2.0, %v5361_v33 }
 0x342   : > { %v3319_v37 = vmul.f32 %v5294_v46, %v3318_v60  ;;  %v3333_v1 = vsub.f32 1.0, %v3332_v26  ;;  %vm3431_vm3 = vcmp.eq.f32.partialorder %v3430_v55, 8.507059e+37 }
 0x343   : > { %v5298_v62 = vpop.eup %5297 }
 0x344   : > { %v3320_v21 = vadd.f32 %v5294_v46, %v3319_v37  ;;  %v3334_v3 = vmul.f32 %v5296_v13, %v3333_v1  ;;  %v3407_v48 = vmul.f32 %v5298_v62, %v8702_v58  ;;  %vm3412_vm12 = vweird.f32 %v5298_v62 }
 0x345   : > { %v5300_v20 = vpop.eup %5299  ;;  %vm3413_vm15 = vmor %vm3411_vm0, %vm3412_vm12 }
 0x346   : > { %v3324_v43 = vsel %vm3323_vm8, %v5294_v46, %v3320_v21  ;;  %v3422_v41 = vmul.f32 %v5300_v20, %v8704_v47  ;;  %v3335_v50 = vadd.f32 %v5296_v13, %v3334_v3  ;;  %v3408_v19 = vsub.f32 1.0, %v3407_v48 }
 0x347   : > { %v3329_v2 = vsel %vm3326_vm6, %v3328_v15, %v3324_v43  ;;  %vm3427_vm13 = vweird.f32 %v5300_v20 }
 0x348   : > { %v3608_v23 = vsub.f32 1.0, %v3329_v2  ;;  %3848 = vst [vmem:[%s7271_s8 + $0x1a0] sm:$0xff] %v3329_v2  ;;  %v3423_v52 = vsub.f32 1.0, %v3422_v41  ;;  %v3339_v17 = vsel %vm3338_vm11, %v5296_v13, %v3335_v50  ;;  %v3409_v18 = vmul.f32 %v5298_v62, %v3408_v19  ;;  %vm3428_vm2 = vmor %vm3426_vm14, %vm3427_vm13 }
 0x349   : > { %v3548_v7 = vmul.f32 %v3488_v42, %v3329_v2  ;;  %v3344_v14 = vsel %vm8723_vm10, %v3343_v63, %v3339_v17 }
 0x34a   : > { %v3668_v22 = vmul.f32 %v3608_v23, %v3488_v42  ;;  %v3424_v11 = vmul.f32 %v5300_v20, %v3423_v52  ;;  %v3609_v44 = vsub.f32 1.0, %v3344_v14  ;;  %3849 = vst [vmem:[%s7271_s8 + $0x1a8] sm:$0xff] %v3344_v14  ;;  %v3410_v12 = vadd.f32 %v5298_v62, %v3409_v18 }
 0x34b   : > { %v3549_v57 = vmul.f32 %v3489_v45, %v3344_v14 }
 0x34c   : > { %v3728_v31 = vadd.f32 %v3668_v22, %v3548_v7  ;;  %v3425_v10 = vadd.f32 %v5300_v20, %v3424_v11  ;;  %v3669_v9 = vmul.f32 %v3609_v44, %v3489_v45  ;;  %v3414_v30 = vsel %vm3413_vm15, %v5298_v62, %v3410_v12 }
 0x34d   : > { %v3419_v32 = vsel %vm3416_vm1, %v3418_v51, %v3414_v30 }
 0x34e   : > { %3788 = vst [vmem:[%s7309_s12 + $0x1a0] sm:$0xff] %v3728_v31  ;;  %v3429_v24 = vsel %vm3428_vm2, %v5300_v20, %v3425_v10  ;;  %v3729_v34 = vadd.f32 %v3669_v9, %v3549_v57  ;;  %v3614_v59 = vsub.f32 1.0, %v3419_v32  ;;  %v3554_v58 = vmul.f32 %v8716_v4, %v3419_v32 }
 0x34f   : > { %3854 = vst [vmem:[%s7271_s8 + $0x1d0] sm:$0xff] %v3419_v32  ;;  %v3434_v25 = vsel %vm3431_vm3, %v3433_v5, %v3429_v24 }
 0x350   : > { %v3615_v29 = vsub.f32 1.0, %v3434_v25  ;;  %3855 = vst [vmem:[%s7271_s8 + $0x1d8] sm:$0xff] %v3434_v25  ;;  %v3674_v46 = vmul.f32 %v3614_v59, %v8716_v4  ;;  %v3555_v28 = vmul.f32 %v3495_v40, %v3434_v25  ;;  %s5382_s8 = scalar_lea.hbm %s8833_s6, 3840 }
 0x351   : > { %3789 = vst [vmem:[%s7309_s12 + $0x1a8] sm:$0xff] %v3729_v34  ;;  %p5384_p5 = scmp.lt.s32.totalorder %s5382_s8, %s5378_s16 }
 0x352   : > { %v3675_v8 = vmul.f32 %v3615_v29, %v3495_v40 }
 0x353   : > { %p5385_p6 = por %p5384_p5, %p5383_p4 }
 0x355   : > { %p5386_p7 = pnand %p5385_p6, %p5381_p2 }
 0x357   : > { %5389 = shalt.err (!%p5386_p7)
}
 0x358   : > { %s5490_s7 = smov 768   ;;  %s5491_s0 = smov 48   ;;  %v3734_v47 = vadd.f32 %v3674_v46, %v3554_v58  ;;  %v3735_v53 = vadd.f32 %v3675_v8, %v3555_v28 }
 0x359   : > { %4982 = dma.vmem_to_hbm [thread:$0]  (%p5578_p3), %s8762_s20, 7680, %s8764_s30, %s3862_s24, %s5490_s7, %s5490_s7, %s5491_s0  }
 0x35a   : > { %3794 = vst [vmem:[%s7309_s12 + $0x1d0] sm:$0xff] %v3734_v47  ;;  %s3857_s25 = scalar_lea.sflag [#allocation3], %s7202_s19  ;;  %s5404_s16 = sshra.s32 %s3880_s13, 4  ;;  %s5405_s16 = int_to_ptr.hbm [resolvable:$true] %s5404_s16 }
 0x35b   : > { %3795 = vst [vmem:[%s7309_s12 + $0x1d8] sm:$0xff] %v3735_v53  ;;  %s5406_s18 = scalar_lea.hbm %s5405_s16, 480  ;;  %s5410_s29 = scalar_lea.hbm %s8832_s5, 3840 }
 0x35c   : > { %p5407_p9 = scmp.ne.s32.totalorder %s5405_s16, %s5406_s18  ;;  %p5411_p12 = scmp.lt.s32.totalorder %s5405_s16, %s8832_s5 }
 0x35d   : > { %p5412_p13 = scmp.lt.s32.totalorder %s5410_s29, %s5406_s18 }
 0x35e   : > { %p5408_p10 = pnand %p5407_p9, %p5578_p3 }
 0x35f   : > { %p5413_p0 = por %p5412_p13, %p5411_p12 }
 0x360   : > { %p5409_p11 = pneg %p5408_p10 }
 0x362   : > { %p5414_p1 = pnand %p5413_p0, %p5409_p11 }
 0x364   : > { %5417 = shalt.err (!%p5414_p1)
}
 0x365   : > { %4981 = dma.vmem_to_hbm [thread:$0]  (%p5578_p3), %s3878_s17, 7680, %s3880_s13, %s3857_s25, %s5490_s7, %s5490_s7, %s5491_s0  }
 0x366 PF: > { %p4994_p2 = scmp.ge.s32.totalorder %s5488_s28, 2  ;;  %s3914_s19 = sand.u32 1, %s5460_s21  }
 0x367   : > { %s3915_s12 = scalar_lea.sflag [#allocation3], %s3914_s19 }
 0x368   : > { %p4986_p4 = pnand %p4994_p2, %p5587_p8 }
 0x36a   : > { %p4987_p5 = pneg %p4986_p4 }
 0x36c   : > { %5451 = dma.done.wait (%p4987_p5), %s3915_s12, 7680  }
 0x36d   : > { %5453 = vsyncadd (%p4987_p5), %s3915_s12, 4294959616  ;;  %s3925_s30 = scalar_lea.sflag [#allocation5], %s3914_s19 }
 0x36e   : > { %5455 = dma.done.wait (%p4987_p5), %s3925_s30, 7680  }
 0x36f   : > { %5457 = vsyncadd (%p4987_p5), %s3925_s30, 4294959616  ;;  %s23_s28 = sadd.s32 1, %s5488_s28   ;;  %s9023_s0 = sld [smem:[#allocation8_spill]] }
 0x370   : > { %p20_p6 = scmp.ge.s32.totalorder %s23_s28, 10   ;;  %s9024_s10 = sld [smem:[#allocation9_spill]] }
 0x371   : > { %s9025_s21 = smov %s5464_s22  ;;  %s9026_s22 = smov %s5468_s23 }
 0x372   : > { %s9027_s23 = smov %s5596_s15  ;;  %s9028_s24 = smov %s5480_s26 }
 0x373   : > { %s9029_s25 = smov %s5484_s27  ;;  %22 = sbr.rel (!%p20_p6) target bundleno = 9 (0x9), region = 95 }
 0x375   : > { %s9030_s26 = smov %s9023_s0 }
 0x376   : > { %s9031_s27 = smov %s9024_s10 }
 0x378   :  { %3931 = vsyncpa [#allocation3], 1 }
 0x379   :  { %3933 = vsyncpa [#allocation3 + $0x1], 1 }
 0x37a   :  { %3934 = vsyncpa [#allocation5], 1 }
 0x37b   :  { %3936 = vsyncpa [#allocation5 + $0x1], 1 }

</bundles_post_ra>
